<compile_context>
chip_gen: v7x
topology: tpu7x:2x2x1
jax: 0.10.0
libtpu: 0.0.40
codegen_flags: <defaults>
</compile_context>

<pallas_src>
import jax
import jax.numpy as jnp
import numpy as np
from jax.experimental import pallas as pl
from jax.experimental.pallas import tpu as pltpu

MAP_DICT = {0: [0], 1: [1, 2], 2: [3], 3: [4], 4: [6], 5: [5], 6: [7, 9],
            7: [8, 10], 8: [11, 13], 9: [12, 14], 10: [15, 17], 11: [16, 18],
            12: [19, 21], 13: [20, 22], 14: [23, 24]}

KSIZE = 4              # cfg.MODEL.ROI_DENSEPOSE_HEAD.DECONV_KERNEL (default 4)
PAD = KSIZE // 2 - 1   # = 1
N_PARTS = 15
N_CHARTS = 25
N_HEADS = 3            # part_I, part_U, part_V
OC_SLOTS = 2 * N_HEADS # 6 = 3 heads x 2 padded output-channel slots per part
N_TAPS = 16            # 4x4 transposed-conv kernel taps
PARITY = ((0, 0), (0, 1), (1, 0), (1, 1))


# ----------------------------------------------------------------------------
# Fused Pallas kernel: ConvTranspose2d(k=4,s=2,p=1) for all 3 heads of one part
# + bilinear x2 upsample, per (part, sample-batch) tile.
#
# Parity decomposition of the deconv:
#   y[oc, 2m+ry, 2n+rx] = bias[oc]
#       + sum_{a,b,c} xpad[c, m+ry+a, n+rx+b] * W[c, oc, 3-ry-2a, 3-rx-2b]
# With P[row, q] = (Wm @ xflat)[row, q], row = (2ry+rx)*24 + (2a+b)*6 + oc and
# q = i*(W+2)+j flat padded spatial, the deconv is 16 lane-shifted adds on the
# single GEMM result.  The x2 bilinear upsample (align_corners=False) is then
# applied separably on the parity planes (edge clamps via precomputed masks).
# ----------------------------------------------------------------------------
def _make_fused_kernel(H, W, Nb):
    Hp, Wp = H + 2, W + 2
    S = Hp * Wp          # padded flat spatial size (GEMM lane dim)
    LV = H * Wp          # stored lane extent (junk rows dropped, junk cols kept)

    def shift(x, s):
        # out[..., q] = x[..., (q + s) % S]; wrapped lanes only ever land in
        # junk rows/cols, which are clamp-overridden or sliced away later.
        # (cheap lane shift on an [6, S] slab; could also be pltpu.roll / XLU)
        s = s % S
        if s == 0:
            return x
        return jnp.concatenate([x[:, s:], x[:, :s]], axis=1)

    def kernel(x_ref, w_ref, b_ref, m_ref, o_ref, p_scr, y_scr, c_scr):
        part = pl.program_id(0)
        w = w_ref[part]            # [96, C]  bf16, all 16 taps x 6 oc slots
        bias = b_ref[part]         # [6, 1]   f32

        n_is0 = m_ref[0]           # [1, S] {0,1} f32 edge-clamp masks
        n_isW1 = m_ref[1]
        m_is0 = m_ref[2]
        m_isH1 = m_ref[3]

        def blend(mask, a, b):     # mask==1 -> a (clamped), mask==0 -> b
            return mask * a + (1.0 - mask) * b

        for smp in range(Nb):
            # --- single MXU GEMM per sample: [96, C] @ [C, S], f32 accumulate
            p_scr[...] = jnp.dot(w, x_ref[smp],
                                 preferred_element_type=jnp.float32)

            # --- deconv parity planes: 16 shifted VPU adds over [6, S] slabs
            for p, (ry, rx) in enumerate(PARITY):
                acc = None
                for t, (a, b) in enumerate(PARITY):
                    r0 = (p * 4 + t) * OC_SLOTS
                    term = shift(p_scr[r0:r0 + OC_SLOTS, :],
                                 (ry + a) * Wp + (rx + b))
                    acc = term if acc is None else acc + term
                y_scr[p] = acc + bias      # y[:, 2m+ry, 2n+rx] in flat lanes

            # --- fused bilinear x2 (align_corners=False): width pass
            for ry in range(2):
                A = y_scr[2 * ry + 0]      # deconv columns 2n
                B = y_scr[2 * ry + 1]      # deconv columns 2n+1
                Bl = blend(n_is0, A, shift(B, -1))   # B[n-1], clamp at n=0
                Ar = blend(n_isW1, B, shift(A, 1))   # A[n+1], clamp at n=W-1
                c_scr[ry, 0] = 0.25 * Bl + 0.75 * A
                c_scr[ry, 1] = 0.75 * A + 0.25 * B
                c_scr[ry, 2] = 0.25 * A + 0.75 * B
                c_scr[ry, 3] = 0.75 * B + 0.25 * Ar

            # --- height pass; emit lane-dense output parity planes [6, H*Wp]
            for v in range(4):
                A = c_scr[0, v]            # deconv rows 2m
                B = c_scr[1, v]            # deconv rows 2m+1
                Bu = blend(m_is0, A, shift(B, -Wp))  # B[m-1], clamp at m=0
                Ad = blend(m_isH1, B, shift(A, Wp))  # A[m+1], clamp at m=H-1
                o_ref[smp, 0 * 4 + v] = (0.25 * Bu + 0.75 * A)[:, :LV]
                o_ref[smp, 1 * 4 + v] = (0.75 * A + 0.25 * B)[:, :LV]
                o_ref[smp, 2 * 4 + v] = (0.25 * A + 0.75 * B)[:, :LV]
                o_ref[smp, 3 * 4 + v] = (0.75 * B + 0.25 * Ad)[:, :LV]

    return kernel


def fused_chart_predictor(xflat, Wm, Bm, masks, *, Kn, H, W, C, Nb):
    Hp, Wp = H + 2, W + 2
    S = Hp * Wp
    LV = H * Wp
    kernel = _make_fused_kernel(H, W, Nb)
    return pl.pallas_call(
        kernel,
        out_shape=jax.ShapeDtypeStruct((N_PARTS, Kn, 16, OC_SLOTS, LV),
                                       jnp.float32),
        grid=(N_PARTS, Kn // Nb),
        in_specs=[
            # per-tile input block (Nb samples of one part), channels-first
            pl.BlockSpec((None, Nb, C, S), lambda i, n: (i, n, 0, 0)),
            # full-extent weight / bias / mask blocks: preloaded once
            pl.BlockSpec((N_PARTS, N_TAPS * OC_SLOTS, C),
                         lambda i, n: (0, 0, 0)),
            pl.BlockSpec((N_PARTS, OC_SLOTS, 1), lambda i, n: (0, 0, 0)),
            pl.BlockSpec((4, 1, S), lambda i, n: (0, 0, 0)),
        ],
        out_specs=pl.BlockSpec((None, Nb, 16, OC_SLOTS, LV),
                               lambda i, n: (i, n, 0, 0, 0)),
        scratch_shapes=[
            pltpu.VMEM((N_TAPS * OC_SLOTS, S), jnp.float32),  # GEMM result P
            pltpu.VMEM((4, OC_SLOTS, S), jnp.float32),        # deconv parities
            pltpu.VMEM((2, 4, OC_SLOTS, S), jnp.float32),     # width-pass tmp
        ],
        compiler_params=pltpu.CompilerParams(
            dimension_semantics=("parallel", "parallel"),
            vmem_limit_bytes=48 * 1024 * 1024),
    )(xflat, Wm, Bm, masks)


# ----------------------------------------------------------------------------
# Static packing helpers (permutations pre-baked into weights / index tables)
# ----------------------------------------------------------------------------
def _pack_weights(W_all):
    """W_all: [3, 15, C, 2, 4, 4] (head, part, c_in, out_slot, kh, kw) ->
    Wm: [15, 96, C] bf16, row = (2ry+rx)*24 + (2a+b)*6 + (2*head + slot)."""
    C = W_all.shape[2]
    Wt = jnp.transpose(W_all, (1, 0, 3, 2, 4, 5))  # [15, 3, 2, C, kh, kw]
    rows = []
    for ry, rx in PARITY:
        for a, b in PARITY:
            kh, kw = 3 - ry - 2 * a, 3 - rx - 2 * b
            rows.append(Wt[:, :, :, :, kh, kw].reshape(N_PARTS, OC_SLOTS, C))
    return jnp.concatenate(rows, axis=1).astype(jnp.bfloat16)


def _pack_bias(B_all):
    """B_all: [3, 15, 2] -> [15, 6, 1] f32 (oc = 2*head + slot)."""
    return jnp.transpose(B_all, (1, 0, 2)).reshape(
        N_PARTS, OC_SLOTS, 1).astype(jnp.float32)


def _edge_masks(H, W):
    """{0,1} f32 clamp masks over the flat padded spatial lanes: [4, 1, S]."""
    Hp, Wp = H + 2, W + 2
    q = np.arange(Hp * Wp)
    col, row = q % Wp, q // Wp
    m = np.stack([col == 0, col == W - 1, row == 0, row == H - 1])
    return jnp.asarray(m.astype(np.float32).reshape(4, 1, Hp * Wp))


def _chart_slot_index():
    """chart channel c -> flat (part, slot) index part*2 + slot."""
    idx = np.zeros(N_CHARTS, np.int32)
    for part, charts in MAP_DICT.items():
        for j, c in enumerate(charts):
            idx[c] = part * 2 + j
    return jnp.asarray(idx)


# ----------------------------------------------------------------------------
# Forward pass (wrapper glue + fused Pallas kernel)
# ----------------------------------------------------------------------------
def densepose_forward(head_outputs, coarse_segm, W_all, B_all):
    """head_outputs: [K*15, C, H, W] (NCHW).  W_all: [3, 15, C, 2, 4, 4]
    (PyTorch ConvTranspose2d weight layout [in, out, kh, kw], out padded to
    2 slots).  B_all: [3, 15, 2]."""
    KH, C, H, W = head_outputs.shape
    Kn = KH // N_PARTS
    Hp, Wp = H + 2, W + 2
    S = Hp * Wp

    # reshape(-1, 15, C, H, W).permute(1, 0, 2, 3, 4) -> [15, K, C, H, W]
    ho = head_outputs.reshape(Kn, N_PARTS, C, H, W).transpose(1, 0, 2, 3, 4)
    # 1px zero spatial pad + flatten spatial, keep native channels-first layout
    xpad = jnp.pad(ho, ((0, 0), (0, 0), (0, 0), (1, 1), (1, 1)))
    xflat = xpad.reshape(N_PARTS, Kn, C, S).astype(jnp.bfloat16)

    Wm = _pack_weights(W_all)   # [15, 96, C] bf16
    Bm = _pack_bias(B_all)      # [15, 6, 1]  f32
    masks = _edge_masks(H, W)   # [4, 1, S]   f32

    Nb = max(c for c in (4, 2, 1) if Kn % c == 0)   # samples per grid step
    out = fused_chart_predictor(xflat, Wm, Bm, masks,
                                Kn=Kn, H=H, W=W, C=C, Nb=Nb)

    # [15, K, 16(uv), 6(head,slot), H*(W+2)] -> [3, K, 25, 4H, 4W]
    o = out.reshape(N_PARTS, Kn, 4, 4, N_HEADS, 2, H, Wp)[..., :W]
    o = jnp.transpose(o, (4, 1, 0, 5, 6, 2, 7, 3))    # [3,K,15,2,H,4,W,4]
    o = o.reshape(N_HEADS, Kn, N_PARTS * 2, 4 * H, 4 * W)
    o = jnp.take(o, _chart_slot_index(), axis=2)       # chart scatter (map_dict)

    # TODO(synk): coarse_segm is returned unchanged by the PyTorch forward; no compute.
    return {"coarse_segm": coarse_segm, "fine_segm": o[0], "u": o[1], "v": o[2]}


# ----------------------------------------------------------------------------
# Pure-JAX reference (independent check of the Pallas path)
# ----------------------------------------------------------------------------
def deconv_ref(x_nchw, w, bias):
    w_conv = jnp.transpose(jnp.flip(w, axis=(2, 3)), (1, 0, 2, 3))
    y = jax.lax.conv_general_dilated(
        x_nchw, w_conv, window_strides=(1, 1),
        padding=[(KSIZE - 1 - PAD, KSIZE - 1 - PAD)] * 2,
        lhs_dilation=(2, 2), dimension_numbers=('NCHW', 'OIHW', 'NCHW'),
        precision=jax.lax.Precision.HIGHEST)
    return y + bias[None, :, None, None]


def interp_ref(x):
    N, Cc, Hh, Ww = x.shape
    up = jnp.concatenate([x[:, :, :1, :], x[:, :, :-1, :]], axis=2)
    dn = jnp.concatenate([x[:, :, 1:, :], x[:, :, -1:, :]], axis=2)
    r0 = 0.25 * up + 0.75 * x
    r1 = 0.75 * x + 0.25 * dn
    xr = jnp.stack([r0, r1], axis=3).reshape(N, Cc, 2 * Hh, Ww)
    lf = jnp.concatenate([xr[..., :1], xr[..., :-1]], axis=3)
    rt = jnp.concatenate([xr[..., 1:], xr[..., -1:]], axis=3)
    c0 = 0.25 * lf + 0.75 * xr
    c1 = 0.75 * xr + 0.25 * rt
    return jnp.stack([c0, c1], axis=4).reshape(N, Cc, 2 * Hh, 2 * Ww)


def reference_forward(head_outputs, W_all, B_all):
    KH, C, H, W = head_outputs.shape
    Kn = KH // N_PARTS
    ho = head_outputs.reshape(Kn, N_PARTS, C, H, W).transpose(1, 0, 2, 3, 4)
    results = []
    for h in range(N_HEADS):
        answer = [None] * N_CHARTS
        for i in range(N_PARTS):
            oc = len(MAP_DICT[i])
            y = deconv_ref(ho[i], W_all[h, i, :, :oc], B_all[h, i, :oc])
            for j in range(oc):
                answer[MAP_DICT[i][j]] = y[:, j:j + 1]
        results.append(interp_ref(jnp.concatenate(answer, axis=1)))
    return results


if __name__ == "__main__":
    key = jax.random.PRNGKey(0)
    Kn, C, H, W = 2, 32, 8, 8  # small synthetic shapes (real: C=512, H=W=28)
    k1, k2, k3, k4 = jax.random.split(key, 4)

    head_outputs = jax.random.normal(k1, (Kn * N_PARTS, C, H, W), jnp.float32)
    coarse_segm = jax.random.normal(k2, (Kn, 2, 4 * H, 4 * W), jnp.float32)
    # deterministic synthetic ConvTranspose2d params (out-channel dim padded to 2)
    W_all = jax.random.normal(k3, (N_HEADS, N_PARTS, C, 2, KSIZE, KSIZE),
                              jnp.float32) * 0.05
    B_all = jax.random.normal(k4, (N_HEADS, N_PARTS, 2), jnp.float32) * 0.05

    out = jax.jit(densepose_forward)(head_outputs, coarse_segm, W_all, B_all)
    out = jax.block_until_ready(out)

    assert out["fine_segm"].shape == (Kn, N_CHARTS, 4 * H, 4 * W)
    assert out["u"].shape == (Kn, N_CHARTS, 4 * H, 4 * W)
    assert out["v"].shape == (Kn, N_CHARTS, 4 * H, 4 * W)

    ref = reference_forward(head_outputs, W_all, B_all)
    for name, r in zip(("fine_segm", "u", "v"), ref):
        np.testing.assert_allclose(np.asarray(out[name]), np.asarray(r),
                                   rtol=2e-2, atol=2e-2)
    np.testing.assert_allclose(np.asarray(out["coarse_segm"]),
                               np.asarray(coarse_segm))

    print("KERNEL_OK")
</pallas_src>

<mosaic_0001>
module attributes {stable_mosaic.version = 11 : i64} {
  func.func @kernel(%arg0: i32, %arg1: i32, %arg2: memref<1x2x32x100xbf16, #tpu.memory_space<vmem>>, %arg3: memref<15x96x32xbf16, #tpu.memory_space<vmem>>, %arg4: memref<15x6x1xf32, #tpu.memory_space<vmem>>, %arg5: memref<4x1x100xf32, #tpu.memory_space<vmem>>, %arg6: memref<1x2x16x6x80xf32, #tpu.memory_space<vmem>>, %arg7: memref<96x100xf32, #tpu.memory_space<vmem>>, %arg8: memref<4x6x100xf32, #tpu.memory_space<vmem>>, %arg9: memref<2x4x6x100xf32, #tpu.memory_space<vmem>>) attributes {dimension_semantics = [#tpu.dimension_semantics<parallel>, #tpu.dimension_semantics<parallel>], iteration_bounds = array<i64: 15, 1>, scalar_prefetch = 0 : i64, scratch_operands = 3 : i64, tpu.core_type = #tpu.core_type<tc>, window_params = [{transform_indices = @transform_0, window_bounds = array<i64: 1, 2, 32, 100>}, {pipeline_mode = #tpu.pipeline_mode<synchronous>, transform_indices = @transform_1, window_bounds = array<i64: 15, 96, 32>}, {pipeline_mode = #tpu.pipeline_mode<synchronous>, transform_indices = @transform_2, window_bounds = array<i64: 15, 6, 1>}, {pipeline_mode = #tpu.pipeline_mode<synchronous>, transform_indices = @transform_3, window_bounds = array<i64: 4, 1, 100>}, {transform_indices = @transform_4, window_bounds = array<i64: 1, 2, 16, 6, 80>}]} {
    %0 = arith.index_cast %arg0 : i32 to index
    %c0 = arith.constant 0 : index
    %c0_0 = arith.constant 0 : index
    %1 = vector.load %arg3[%0, %c0, %c0_0] : memref<15x96x32xbf16, #tpu.memory_space<vmem>>, vector<1x96x32xbf16>
    %2 = vector.shape_cast %1 : vector<1x96x32xbf16> to vector<96x32xbf16>
    %3 = arith.index_cast %arg0 : i32 to index
    %c0_1 = arith.constant 0 : index
    %c0_2 = arith.constant 0 : index
    %4 = vector.load %arg4[%3, %c0_1, %c0_2] : memref<15x6x1xf32, #tpu.memory_space<vmem>>, vector<1x6x1xf32>
    %5 = vector.shape_cast %4 : vector<1x6x1xf32> to vector<6x1xf32>
    %c0_3 = arith.constant 0 : index
    %c0_4 = arith.constant 0 : index
    %c0_5 = arith.constant 0 : index
    %6 = vector.load %arg5[%c0_3, %c0_4, %c0_5] : memref<4x1x100xf32, #tpu.memory_space<vmem>>, vector<1x1x100xf32>
    %7 = vector.shape_cast %6 : vector<1x1x100xf32> to vector<1x100xf32>
    %c1 = arith.constant 1 : index
    %c0_6 = arith.constant 0 : index
    %c0_7 = arith.constant 0 : index
    %8 = vector.load %arg5[%c1, %c0_6, %c0_7] : memref<4x1x100xf32, #tpu.memory_space<vmem>>, vector<1x1x100xf32>
    %9 = vector.shape_cast %8 : vector<1x1x100xf32> to vector<1x100xf32>
    %c2 = arith.constant 2 : index
    %c0_8 = arith.constant 0 : index
    %c0_9 = arith.constant 0 : index
    %10 = vector.load %arg5[%c2, %c0_8, %c0_9] : memref<4x1x100xf32, #tpu.memory_space<vmem>>, vector<1x1x100xf32>
    %11 = vector.shape_cast %10 : vector<1x1x100xf32> to vector<1x100xf32>
    %c3 = arith.constant 3 : index
    %c0_10 = arith.constant 0 : index
    %c0_11 = arith.constant 0 : index
    %12 = vector.load %arg5[%c3, %c0_10, %c0_11] : memref<4x1x100xf32, #tpu.memory_space<vmem>>, vector<1x1x100xf32>
    %13 = vector.shape_cast %12 : vector<1x1x100xf32> to vector<1x100xf32>
    %c0_12 = arith.constant 0 : index
    %c0_13 = arith.constant 0 : index
    %c0_14 = arith.constant 0 : index
    %c0_15 = arith.constant 0 : index
    %14 = vector.load %arg2[%c0_12, %c0_13, %c0_14, %c0_15] : memref<1x2x32x100xbf16, #tpu.memory_space<vmem>>, vector<1x1x32x100xbf16>
    %15 = vector.shape_cast %14 : vector<1x1x32x100xbf16> to vector<32x100xbf16>
    %cst = arith.constant dense<0.000000e+00> : vector<96x100xf32>
    %16 = tpu.matmul %2, %15, %cst {dimension_numbers = #tpu.dot_dimension_numbers<[1], [0], [0], [1], [0, 0, 1, 1], [], []>} : vector<96x32xbf16>, vector<32x100xbf16>, vector<96x100xf32> -> vector<96x100xf32>
    %c0_16 = arith.constant 0 : index
    %c0_17 = arith.constant 0 : index
    %17 = vector.load %arg7[%c0_16, %c0_17] : memref<96x100xf32, #tpu.memory_space<vmem>>, vector<96x100xf32>
    tpu.vector_store %arg7[%c0_16, %c0_17], %16 {strides = array<i32>} : memref<96x100xf32, #tpu.memory_space<vmem>>, vector<96x100xf32>,
    %c0_18 = arith.constant 0 : index
    %c0_19 = arith.constant 0 : index
    %18 = vector.load %arg7[%c0_18, %c0_19] : memref<96x100xf32, #tpu.memory_space<vmem>>, vector<6x100xf32>
    %c6 = arith.constant 6 : index
    %c0_20 = arith.constant 0 : index
    %19 = vector.load %arg7[%c6, %c0_20] : memref<96x100xf32, #tpu.memory_space<vmem>>, vector<6x100xf32>
    %20 = vector.extract_strided_slice %19 {offsets = [0, 1], sizes = [6, 99], strides = [1, 1]} : vector<6x100xf32> to vector<6x99xf32>
    %21 = vector.extract_strided_slice %19 {offsets = [0, 0], sizes = [6, 1], strides = [1, 1]} : vector<6x100xf32> to vector<6x1xf32>
    %22 = tpu.concatenate %20, %21 in 1 : vector<6x99xf32>, vector<6x1xf32> -> vector<6x100xf32>
    %23 = arith.addf %18, %22 : vector<6x100xf32>
    %c12 = arith.constant 12 : index
    %c0_21 = arith.constant 0 : index
    %24 = vector.load %arg7[%c12, %c0_21] : memref<96x100xf32, #tpu.memory_space<vmem>>, vector<6x100xf32>
    %25 = vector.extract_strided_slice %24 {offsets = [0, 10], sizes = [6, 90], strides = [1, 1]} : vector<6x100xf32> to vector<6x90xf32>
    %26 = vector.extract_strided_slice %24 {offsets = [0, 0], sizes = [6, 10], strides = [1, 1]} : vector<6x100xf32> to vector<6x10xf32>
    %27 = tpu.concatenate %25, %26 in 1 : vector<6x90xf32>, vector<6x10xf32> -> vector<6x100xf32>
    %28 = arith.addf %23, %27 : vector<6x100xf32>
    %c18 = arith.constant 18 : index
    %c0_22 = arith.constant 0 : index
    %29 = vector.load %arg7[%c18, %c0_22] : memref<96x100xf32, #tpu.memory_space<vmem>>, vector<6x100xf32>
    %30 = vector.extract_strided_slice %29 {offsets = [0, 11], sizes = [6, 89], strides = [1, 1]} : vector<6x100xf32> to vector<6x89xf32>
    %31 = vector.extract_strided_slice %29 {offsets = [0, 0], sizes = [6, 11], strides = [1, 1]} : vector<6x100xf32> to vector<6x11xf32>
    %32 = tpu.concatenate %30, %31 in 1 : vector<6x89xf32>, vector<6x11xf32> -> vector<6x100xf32>
    %33 = arith.addf %28, %32 : vector<6x100xf32>
    %34 = vector.broadcast %5 : vector<6x1xf32> to vector<6x100xf32>
    %35 = arith.addf %33, %34 : vector<6x100xf32>
    %c0_23 = arith.constant 0 : index
    %c0_24 = arith.constant 0 : index
    %c0_25 = arith.constant 0 : index
    %36 = vector.load %arg8[%c0_23, %c0_24, %c0_25] : memref<4x6x100xf32, #tpu.memory_space<vmem>>, vector<1x6x100xf32>
    %37 = vector.shape_cast %36 : vector<1x6x100xf32> to vector<6x100xf32>
    %38 = vector.shape_cast %35 : vector<6x100xf32> to vector<1x6x100xf32>
    tpu.vector_store %arg8[%c0_23, %c0_24, %c0_25], %38 {strides = array<i32>} : memref<4x6x100xf32, #tpu.memory_space<vmem>>, vector<1x6x100xf32>,
    %c24 = arith.constant 24 : index
    %c0_26 = arith.constant 0 : index
    %39 = vector.load %arg7[%c24, %c0_26] : memref<96x100xf32, #tpu.memory_space<vmem>>, vector<6x100xf32>
    %40 = vector.extract_strided_slice %39 {offsets = [0, 1], sizes = [6, 99], strides = [1, 1]} : vector<6x100xf32> to vector<6x99xf32>
    %41 = vector.extract_strided_slice %39 {offsets = [0, 0], sizes = [6, 1], strides = [1, 1]} : vector<6x100xf32> to vector<6x1xf32>
    %42 = tpu.concatenate %40, %41 in 1 : vector<6x99xf32>, vector<6x1xf32> -> vector<6x100xf32>
    %c30 = arith.constant 30 : index
    %c0_27 = arith.constant 0 : index
    %43 = vector.load %arg7[%c30, %c0_27] : memref<96x100xf32, #tpu.memory_space<vmem>>, vector<6x100xf32>
    %44 = vector.extract_strided_slice %43 {offsets = [0, 2], sizes = [6, 98], strides = [1, 1]} : vector<6x100xf32> to vector<6x98xf32>
    %45 = vector.extract_strided_slice %43 {offsets = [0, 0], sizes = [6, 2], strides = [1, 1]} : vector<6x100xf32> to vector<6x2xf32>
    %46 = tpu.concatenate %44, %45 in 1 : vector<6x98xf32>, vector<6x2xf32> -> vector<6x100xf32>
    %47 = arith.addf %42, %46 : vector<6x100xf32>
    %c36 = arith.constant 36 : index
    %c0_28 = arith.constant 0 : index
    %48 = vector.load %arg7[%c36, %c0_28] : memref<96x100xf32, #tpu.memory_space<vmem>>, vector<6x100xf32>
    %49 = vector.extract_strided_slice %48 {offsets = [0, 11], sizes = [6, 89], strides = [1, 1]} : vector<6x100xf32> to vector<6x89xf32>
    %50 = vector.extract_strided_slice %48 {offsets = [0, 0], sizes = [6, 11], strides = [1, 1]} : vector<6x100xf32> to vector<6x11xf32>
    %51 = tpu.concatenate %49, %50 in 1 : vector<6x89xf32>, vector<6x11xf32> -> vector<6x100xf32>
    %52 = arith.addf %47, %51 : vector<6x100xf32>
    %c42 = arith.constant 42 : index
    %c0_29 = arith.constant 0 : index
    %53 = vector.load %arg7[%c42, %c0_29] : memref<96x100xf32, #tpu.memory_space<vmem>>, vector<6x100xf32>
    %54 = vector.extract_strided_slice %53 {offsets = [0, 12], sizes = [6, 88], strides = [1, 1]} : vector<6x100xf32> to vector<6x88xf32>
    %55 = vector.extract_strided_slice %53 {offsets = [0, 0], sizes = [6, 12], strides = [1, 1]} : vector<6x100xf32> to vector<6x12xf32>
    %56 = tpu.concatenate %54, %55 in 1 : vector<6x88xf32>, vector<6x12xf32> -> vector<6x100xf32>
    %57 = arith.addf %52, %56 : vector<6x100xf32>
    %58 = vector.broadcast %5 : vector<6x1xf32> to vector<6x100xf32>
    %59 = arith.addf %57, %58 : vector<6x100xf32>
    %c1_30 = arith.constant 1 : index
    %c0_31 = arith.constant 0 : index
    %c0_32 = arith.constant 0 : index
    %60 = vector.load %arg8[%c1_30, %c0_31, %c0_32] : memref<4x6x100xf32, #tpu.memory_space<vmem>>, vector<1x6x100xf32>
    %61 = vector.shape_cast %60 : vector<1x6x100xf32> to vector<6x100xf32>
    %62 = vector.shape_cast %59 : vector<6x100xf32> to vector<1x6x100xf32>
    tpu.vector_store %arg8[%c1_30, %c0_31, %c0_32], %62 {strides = array<i32>} : memref<4x6x100xf32, #tpu.memory_space<vmem>>, vector<1x6x100xf32>,
    %c48 = arith.constant 48 : index
    %c0_33 = arith.constant 0 : index
    %63 = vector.load %arg7[%c48, %c0_33] : memref<96x100xf32, #tpu.memory_space<vmem>>, vector<6x100xf32>
    %64 = vector.extract_strided_slice %63 {offsets = [0, 10], sizes = [6, 90], strides = [1, 1]} : vector<6x100xf32> to vector<6x90xf32>
    %65 = vector.extract_strided_slice %63 {offsets = [0, 0], sizes = [6, 10], strides = [1, 1]} : vector<6x100xf32> to vector<6x10xf32>
    %66 = tpu.concatenate %64, %65 in 1 : vector<6x90xf32>, vector<6x10xf32> -> vector<6x100xf32>
    %c54 = arith.constant 54 : index
    %c0_34 = arith.constant 0 : index
    %67 = vector.load %arg7[%c54, %c0_34] : memref<96x100xf32, #tpu.memory_space<vmem>>, vector<6x100xf32>
    %68 = vector.extract_strided_slice %67 {offsets = [0, 11], sizes = [6, 89], strides = [1, 1]} : vector<6x100xf32> to vector<6x89xf32>
    %69 = vector.extract_strided_slice %67 {offsets = [0, 0], sizes = [6, 11], strides = [1, 1]} : vector<6x100xf32> to vector<6x11xf32>
    %70 = tpu.concatenate %68, %69 in 1 : vector<6x89xf32>, vector<6x11xf32> -> vector<6x100xf32>
    %71 = arith.addf %66, %70 : vector<6x100xf32>
    %c60 = arith.constant 60 : index
    %c0_35 = arith.constant 0 : index
    %72 = vector.load %arg7[%c60, %c0_35] : memref<96x100xf32, #tpu.memory_space<vmem>>, vector<6x100xf32>
    %73 = vector.extract_strided_slice %72 {offsets = [0, 20], sizes = [6, 80], strides = [1, 1]} : vector<6x100xf32> to vector<6x80xf32>
    %74 = vector.extract_strided_slice %72 {offsets = [0, 0], sizes = [6, 20], strides = [1, 1]} : vector<6x100xf32> to vector<6x20xf32>
    %75 = tpu.concatenate %73, %74 in 1 : vector<6x80xf32>, vector<6x20xf32> -> vector<6x100xf32>
    %76 = arith.addf %71, %75 : vector<6x100xf32>
    %c66 = arith.constant 66 : index
    %c0_36 = arith.constant 0 : index
    %77 = vector.load %arg7[%c66, %c0_36] : memref<96x100xf32, #tpu.memory_space<vmem>>, vector<6x100xf32>
    %78 = vector.extract_strided_slice %77 {offsets = [0, 21], sizes = [6, 79], strides = [1, 1]} : vector<6x100xf32> to vector<6x79xf32>
    %79 = vector.extract_strided_slice %77 {offsets = [0, 0], sizes = [6, 21], strides = [1, 1]} : vector<6x100xf32> to vector<6x21xf32>
    %80 = tpu.concatenate %78, %79 in 1 : vector<6x79xf32>, vector<6x21xf32> -> vector<6x100xf32>
    %81 = arith.addf %76, %80 : vector<6x100xf32>
    %82 = vector.broadcast %5 : vector<6x1xf32> to vector<6x100xf32>
    %83 = arith.addf %81, %82 : vector<6x100xf32>
    %c2_37 = arith.constant 2 : index
    %c0_38 = arith.constant 0 : index
    %c0_39 = arith.constant 0 : index
    %84 = vector.load %arg8[%c2_37, %c0_38, %c0_39] : memref<4x6x100xf32, #tpu.memory_space<vmem>>, vector<1x6x100xf32>
    %85 = vector.shape_cast %84 : vector<1x6x100xf32> to vector<6x100xf32>
    %86 = vector.shape_cast %83 : vector<6x100xf32> to vector<1x6x100xf32>
    tpu.vector_store %arg8[%c2_37, %c0_38, %c0_39], %86 {strides = array<i32>} : memref<4x6x100xf32, #tpu.memory_space<vmem>>, vector<1x6x100xf32>,
    %c72 = arith.constant 72 : index
    %c0_40 = arith.constant 0 : index
    %87 = vector.load %arg7[%c72, %c0_40] : memref<96x100xf32, #tpu.memory_space<vmem>>, vector<6x100xf32>
    %88 = vector.extract_strided_slice %87 {offsets = [0, 11], sizes = [6, 89], strides = [1, 1]} : vector<6x100xf32> to vector<6x89xf32>
    %89 = vector.extract_strided_slice %87 {offsets = [0, 0], sizes = [6, 11], strides = [1, 1]} : vector<6x100xf32> to vector<6x11xf32>
    %90 = tpu.concatenate %88, %89 in 1 : vector<6x89xf32>, vector<6x11xf32> -> vector<6x100xf32>
    %c78 = arith.constant 78 : index
    %c0_41 = arith.constant 0 : index
    %91 = vector.load %arg7[%c78, %c0_41] : memref<96x100xf32, #tpu.memory_space<vmem>>, vector<6x100xf32>
    %92 = vector.extract_strided_slice %91 {offsets = [0, 12], sizes = [6, 88], strides = [1, 1]} : vector<6x100xf32> to vector<6x88xf32>
    %93 = vector.extract_strided_slice %91 {offsets = [0, 0], sizes = [6, 12], strides = [1, 1]} : vector<6x100xf32> to vector<6x12xf32>
    %94 = tpu.concatenate %92, %93 in 1 : vector<6x88xf32>, vector<6x12xf32> -> vector<6x100xf32>
    %95 = arith.addf %90, %94 : vector<6x100xf32>
    %c84 = arith.constant 84 : index
    %c0_42 = arith.constant 0 : index
    %96 = vector.load %arg7[%c84, %c0_42] : memref<96x100xf32, #tpu.memory_space<vmem>>, vector<6x100xf32>
    %97 = vector.extract_strided_slice %96 {offsets = [0, 21], sizes = [6, 79], strides = [1, 1]} : vector<6x100xf32> to vector<6x79xf32>
    %98 = vector.extract_strided_slice %96 {offsets = [0, 0], sizes = [6, 21], strides = [1, 1]} : vector<6x100xf32> to vector<6x21xf32>
    %99 = tpu.concatenate %97, %98 in 1 : vector<6x79xf32>, vector<6x21xf32> -> vector<6x100xf32>
    %100 = arith.addf %95, %99 : vector<6x100xf32>
    %c90 = arith.constant 90 : index
    %c0_43 = arith.constant 0 : index
    %101 = vector.load %arg7[%c90, %c0_43] : memref<96x100xf32, #tpu.memory_space<vmem>>, vector<6x100xf32>
    %102 = vector.extract_strided_slice %101 {offsets = [0, 22], sizes = [6, 78], strides = [1, 1]} : vector<6x100xf32> to vector<6x78xf32>
    %103 = vector.extract_strided_slice %101 {offsets = [0, 0], sizes = [6, 22], strides = [1, 1]} : vector<6x100xf32> to vector<6x22xf32>
    %104 = tpu.concatenate %102, %103 in 1 : vector<6x78xf32>, vector<6x22xf32> -> vector<6x100xf32>
    %105 = arith.addf %100, %104 : vector<6x100xf32>
    %106 = vector.broadcast %5 : vector<6x1xf32> to vector<6x100xf32>
    %107 = arith.addf %105, %106 : vector<6x100xf32>
    %c3_44 = arith.constant 3 : index
    %c0_45 = arith.constant 0 : index
    %c0_46 = arith.constant 0 : index
    %108 = vector.load %arg8[%c3_44, %c0_45, %c0_46] : memref<4x6x100xf32, #tpu.memory_space<vmem>>, vector<1x6x100xf32>
    %109 = vector.shape_cast %108 : vector<1x6x100xf32> to vector<6x100xf32>
    %110 = vector.shape_cast %107 : vector<6x100xf32> to vector<1x6x100xf32>
    tpu.vector_store %arg8[%c3_44, %c0_45, %c0_46], %110 {strides = array<i32>} : memref<4x6x100xf32, #tpu.memory_space<vmem>>, vector<1x6x100xf32>,
    %c0_47 = arith.constant 0 : index
    %c0_48 = arith.constant 0 : index
    %c0_49 = arith.constant 0 : index
    %111 = vector.load %arg8[%c0_47, %c0_48, %c0_49] : memref<4x6x100xf32, #tpu.memory_space<vmem>>, vector<1x6x100xf32>
    %112 = vector.shape_cast %111 : vector<1x6x100xf32> to vector<6x100xf32>
    %c1_50 = arith.constant 1 : index
    %c0_51 = arith.constant 0 : index
    %c0_52 = arith.constant 0 : index
    %113 = vector.load %arg8[%c1_50, %c0_51, %c0_52] : memref<4x6x100xf32, #tpu.memory_space<vmem>>, vector<1x6x100xf32>
    %114 = vector.shape_cast %113 : vector<1x6x100xf32> to vector<6x100xf32>
    %115 = vector.extract_strided_slice %114 {offsets = [0, 99], sizes = [6, 1], strides = [1, 1]} : vector<6x100xf32> to vector<6x1xf32>
    %116 = vector.extract_strided_slice %114 {offsets = [0, 0], sizes = [6, 99], strides = [1, 1]} : vector<6x100xf32> to vector<6x99xf32>
    %117 = tpu.concatenate %115, %116 in 1 : vector<6x1xf32>, vector<6x99xf32> -> vector<6x100xf32>
    %118 = vector.broadcast %7 : vector<1x100xf32> to vector<6x100xf32>
    %119 = arith.mulf %118, %112 : vector<6x100xf32>
    %cst_53 = arith.constant 1.000000e+00 : f32
    %120 = vector.broadcast %cst_53 : f32 to vector<1x100xf32>
    %121 = arith.subf %120, %7 : vector<1x100xf32>
    %122 = vector.broadcast %121 : vector<1x100xf32> to vector<6x100xf32>
    %123 = arith.mulf %122, %117 : vector<6x100xf32>
    %124 = arith.addf %119, %123 : vector<6x100xf32>
    %125 = vector.extract_strided_slice %112 {offsets = [0, 1], sizes = [6, 99], strides = [1, 1]} : vector<6x100xf32> to vector<6x99xf32>
    %126 = vector.extract_strided_slice %112 {offsets = [0, 0], sizes = [6, 1], strides = [1, 1]} : vector<6x100xf32> to vector<6x1xf32>
    %127 = tpu.concatenate %125, %126 in 1 : vector<6x99xf32>, vector<6x1xf32> -> vector<6x100xf32>
    %128 = vector.broadcast %9 : vector<1x100xf32> to vector<6x100xf32>
    %129 = arith.mulf %128, %114 : vector<6x100xf32>
    %cst_54 = arith.constant 1.000000e+00 : f32
    %130 = vector.broadcast %cst_54 : f32 to vector<1x100xf32>
    %131 = arith.subf %130, %9 : vector<1x100xf32>
    %132 = vector.broadcast %131 : vector<1x100xf32> to vector<6x100xf32>
    %133 = arith.mulf %132, %127 : vector<6x100xf32>
    %134 = arith.addf %129, %133 : vector<6x100xf32>
    %cst_55 = arith.constant 2.500000e-01 : f32
    %135 = vector.broadcast %cst_55 : f32 to vector<6x100xf32>
    %136 = arith.mulf %135, %124 : vector<6x100xf32>
    %cst_56 = arith.constant 7.500000e-01 : f32
    %137 = vector.broadcast %cst_56 : f32 to vector<6x100xf32>
    %138 = arith.mulf %137, %112 : vector<6x100xf32>
    %139 = arith.addf %136, %138 : vector<6x100xf32>
    %c0_57 = arith.constant 0 : index
    %c0_58 = arith.constant 0 : index
    %c0_59 = arith.constant 0 : index
    %c0_60 = arith.constant 0 : index
    %140 = vector.load %arg9[%c0_57, %c0_58, %c0_59, %c0_60] : memref<2x4x6x100xf32, #tpu.memory_space<vmem>>, vector<1x1x6x100xf32>
    %141 = vector.shape_cast %140 : vector<1x1x6x100xf32> to vector<6x100xf32>
    %142 = vector.shape_cast %139 : vector<6x100xf32> to vector<1x1x6x100xf32>
    tpu.vector_store %arg9[%c0_57, %c0_58, %c0_59, %c0_60], %142 {strides = array<i32>} : memref<2x4x6x100xf32, #tpu.memory_space<vmem>>, vector<1x1x6x100xf32>,
    %cst_61 = arith.constant 7.500000e-01 : f32
    %143 = vector.broadcast %cst_61 : f32 to vector<6x100xf32>
    %144 = arith.mulf %143, %112 : vector<6x100xf32>
    %cst_62 = arith.constant 2.500000e-01 : f32
    %145 = vector.broadcast %cst_62 : f32 to vector<6x100xf32>
    %146 = arith.mulf %145, %114 : vector<6x100xf32>
    %147 = arith.addf %144, %146 : vector<6x100xf32>
    %c0_63 = arith.constant 0 : index
    %c1_64 = arith.constant 1 : index
    %c0_65 = arith.constant 0 : index
    %c0_66 = arith.constant 0 : index
    %148 = vector.load %arg9[%c0_63, %c1_64, %c0_65, %c0_66] : memref<2x4x6x100xf32, #tpu.memory_space<vmem>>, vector<1x1x6x100xf32>
    %149 = vector.shape_cast %148 : vector<1x1x6x100xf32> to vector<6x100xf32>
    %150 = vector.shape_cast %147 : vector<6x100xf32> to vector<1x1x6x100xf32>
    tpu.vector_store %arg9[%c0_63, %c1_64, %c0_65, %c0_66], %150 {strides = array<i32>} : memref<2x4x6x100xf32, #tpu.memory_space<vmem>>, vector<1x1x6x100xf32>,
    %cst_67 = arith.constant 2.500000e-01 : f32
    %151 = vector.broadcast %cst_67 : f32 to vector<6x100xf32>
    %152 = arith.mulf %151, %112 : vector<6x100xf32>
    %cst_68 = arith.constant 7.500000e-01 : f32
    %153 = vector.broadcast %cst_68 : f32 to vector<6x100xf32>
    %154 = arith.mulf %153, %114 : vector<6x100xf32>
    %155 = arith.addf %152, %154 : vector<6x100xf32>
    %c0_69 = arith.constant 0 : index
    %c2_70 = arith.constant 2 : index
    %c0_71 = arith.constant 0 : index
    %c0_72 = arith.constant 0 : index
    %156 = vector.load %arg9[%c0_69, %c2_70, %c0_71, %c0_72] : memref<2x4x6x100xf32, #tpu.memory_space<vmem>>, vector<1x1x6x100xf32>
    %157 = vector.shape_cast %156 : vector<1x1x6x100xf32> to vector<6x100xf32>
    %158 = vector.shape_cast %155 : vector<6x100xf32> to vector<1x1x6x100xf32>
    tpu.vector_store %arg9[%c0_69, %c2_70, %c0_71, %c0_72], %158 {strides = array<i32>} : memref<2x4x6x100xf32, #tpu.memory_space<vmem>>, vector<1x1x6x100xf32>,
    %cst_73 = arith.constant 7.500000e-01 : f32
    %159 = vector.broadcast %cst_73 : f32 to vector<6x100xf32>
    %160 = arith.mulf %159, %114 : vector<6x100xf32>
    %cst_74 = arith.constant 2.500000e-01 : f32
    %161 = vector.broadcast %cst_74 : f32 to vector<6x100xf32>
    %162 = arith.mulf %161, %134 : vector<6x100xf32>
    %163 = arith.addf %160, %162 : vector<6x100xf32>
    %c0_75 = arith.constant 0 : index
    %c3_76 = arith.constant 3 : index
    %c0_77 = arith.constant 0 : index
    %c0_78 = arith.constant 0 : index
    %164 = vector.load %arg9[%c0_75, %c3_76, %c0_77, %c0_78] : memref<2x4x6x100xf32, #tpu.memory_space<vmem>>, vector<1x1x6x100xf32>
    %165 = vector.shape_cast %164 : vector<1x1x6x100xf32> to vector<6x100xf32>
    %166 = vector.shape_cast %163 : vector<6x100xf32> to vector<1x1x6x100xf32>
    tpu.vector_store %arg9[%c0_75, %c3_76, %c0_77, %c0_78], %166 {strides = array<i32>} : memref<2x4x6x100xf32, #tpu.memory_space<vmem>>, vector<1x1x6x100xf32>,
    %c2_79 = arith.constant 2 : index
    %c0_80 = arith.constant 0 : index
    %c0_81 = arith.constant 0 : index
    %167 = vector.load %arg8[%c2_79, %c0_80, %c0_81] : memref<4x6x100xf32, #tpu.memory_space<vmem>>, vector<1x6x100xf32>
    %168 = vector.shape_cast %167 : vector<1x6x100xf32> to vector<6x100xf32>
    %c3_82 = arith.constant 3 : index
    %c0_83 = arith.constant 0 : index
    %c0_84 = arith.constant 0 : index
    %169 = vector.load %arg8[%c3_82, %c0_83, %c0_84] : memref<4x6x100xf32, #tpu.memory_space<vmem>>, vector<1x6x100xf32>
    %170 = vector.shape_cast %169 : vector<1x6x100xf32> to vector<6x100xf32>
    %171 = vector.extract_strided_slice %170 {offsets = [0, 99], sizes = [6, 1], strides = [1, 1]} : vector<6x100xf32> to vector<6x1xf32>
    %172 = vector.extract_strided_slice %170 {offsets = [0, 0], sizes = [6, 99], strides = [1, 1]} : vector<6x100xf32> to vector<6x99xf32>
    %173 = tpu.concatenate %171, %172 in 1 : vector<6x1xf32>, vector<6x99xf32> -> vector<6x100xf32>
    %174 = vector.broadcast %7 : vector<1x100xf32> to vector<6x100xf32>
    %175 = arith.mulf %174, %168 : vector<6x100xf32>
    %cst_85 = arith.constant 1.000000e+00 : f32
    %176 = vector.broadcast %cst_85 : f32 to vector<1x100xf32>
    %177 = arith.subf %176, %7 : vector<1x100xf32>
    %178 = vector.broadcast %177 : vector<1x100xf32> to vector<6x100xf32>
    %179 = arith.mulf %178, %173 : vector<6x100xf32>
    %180 = arith.addf %175, %179 : vector<6x100xf32>
    %181 = vector.extract_strided_slice %168 {offsets = [0, 1], sizes = [6, 99], strides = [1, 1]} : vector<6x100xf32> to vector<6x99xf32>
    %182 = vector.extract_strided_slice %168 {offsets = [0, 0], sizes = [6, 1], strides = [1, 1]} : vector<6x100xf32> to vector<6x1xf32>
    %183 = tpu.concatenate %181, %182 in 1 : vector<6x99xf32>, vector<6x1xf32> -> vector<6x100xf32>
    %184 = vector.broadcast %9 : vector<1x100xf32> to vector<6x100xf32>
    %185 = arith.mulf %184, %170 : vector<6x100xf32>
    %cst_86 = arith.constant 1.000000e+00 : f32
    %186 = vector.broadcast %cst_86 : f32 to vector<1x100xf32>
    %187 = arith.subf %186, %9 : vector<1x100xf32>
    %188 = vector.broadcast %187 : vector<1x100xf32> to vector<6x100xf32>
    %189 = arith.mulf %188, %183 : vector<6x100xf32>
    %190 = arith.addf %185, %189 : vector<6x100xf32>
    %cst_87 = arith.constant 2.500000e-01 : f32
    %191 = vector.broadcast %cst_87 : f32 to vector<6x100xf32>
    %192 = arith.mulf %191, %180 : vector<6x100xf32>
    %cst_88 = arith.constant 7.500000e-01 : f32
    %193 = vector.broadcast %cst_88 : f32 to vector<6x100xf32>
    %194 = arith.mulf %193, %168 : vector<6x100xf32>
    %195 = arith.addf %192, %194 : vector<6x100xf32>
    %c1_89 = arith.constant 1 : index
    %c0_90 = arith.constant 0 : index
    %c0_91 = arith.constant 0 : index
    %c0_92 = arith.constant 0 : index
    %196 = vector.load %arg9[%c1_89, %c0_90, %c0_91, %c0_92] : memref<2x4x6x100xf32, #tpu.memory_space<vmem>>, vector<1x1x6x100xf32>
    %197 = vector.shape_cast %196 : vector<1x1x6x100xf32> to vector<6x100xf32>
    %198 = vector.shape_cast %195 : vector<6x100xf32> to vector<1x1x6x100xf32>
    tpu.vector_store %arg9[%c1_89, %c0_90, %c0_91, %c0_92], %198 {strides = array<i32>} : memref<2x4x6x100xf32, #tpu.memory_space<vmem>>, vector<1x1x6x100xf32>,
    %cst_93 = arith.constant 7.500000e-01 : f32
    %199 = vector.broadcast %cst_93 : f32 to vector<6x100xf32>
    %200 = arith.mulf %199, %168 : vector<6x100xf32>
    %cst_94 = arith.constant 2.500000e-01 : f32
    %201 = vector.broadcast %cst_94 : f32 to vector<6x100xf32>
    %202 = arith.mulf %201, %170 : vector<6x100xf32>
    %203 = arith.addf %200, %202 : vector<6x100xf32>
    %c1_95 = arith.constant 1 : index
    %c1_96 = arith.constant 1 : index
    %c0_97 = arith.constant 0 : index
    %c0_98 = arith.constant 0 : index
    %204 = vector.load %arg9[%c1_95, %c1_96, %c0_97, %c0_98] : memref<2x4x6x100xf32, #tpu.memory_space<vmem>>, vector<1x1x6x100xf32>
    %205 = vector.shape_cast %204 : vector<1x1x6x100xf32> to vector<6x100xf32>
    %206 = vector.shape_cast %203 : vector<6x100xf32> to vector<1x1x6x100xf32>
    tpu.vector_store %arg9[%c1_95, %c1_96, %c0_97, %c0_98], %206 {strides = array<i32>} : memref<2x4x6x100xf32, #tpu.memory_space<vmem>>, vector<1x1x6x100xf32>,
    %cst_99 = arith.constant 2.500000e-01 : f32
    %207 = vector.broadcast %cst_99 : f32 to vector<6x100xf32>
    %208 = arith.mulf %207, %168 : vector<6x100xf32>
    %cst_100 = arith.constant 7.500000e-01 : f32
    %209 = vector.broadcast %cst_100 : f32 to vector<6x100xf32>
    %210 = arith.mulf %209, %170 : vector<6x100xf32>
    %211 = arith.addf %208, %210 : vector<6x100xf32>
    %c1_101 = arith.constant 1 : index
    %c2_102 = arith.constant 2 : index
    %c0_103 = arith.constant 0 : index
    %c0_104 = arith.constant 0 : index
    %212 = vector.load %arg9[%c1_101, %c2_102, %c0_103, %c0_104] : memref<2x4x6x100xf32, #tpu.memory_space<vmem>>, vector<1x1x6x100xf32>
    %213 = vector.shape_cast %212 : vector<1x1x6x100xf32> to vector<6x100xf32>
    %214 = vector.shape_cast %211 : vector<6x100xf32> to vector<1x1x6x100xf32>
    tpu.vector_store %arg9[%c1_101, %c2_102, %c0_103, %c0_104], %214 {strides = array<i32>} : memref<2x4x6x100xf32, #tpu.memory_space<vmem>>, vector<1x1x6x100xf32>,
    %cst_105 = arith.constant 7.500000e-01 : f32
    %215 = vector.broadcast %cst_105 : f32 to vector<6x100xf32>
    %216 = arith.mulf %215, %170 : vector<6x100xf32>
    %cst_106 = arith.constant 2.500000e-01 : f32
    %217 = vector.broadcast %cst_106 : f32 to vector<6x100xf32>
    %218 = arith.mulf %217, %190 : vector<6x100xf32>
    %219 = arith.addf %216, %218 : vector<6x100xf32>
    %c1_107 = arith.constant 1 : index
    %c3_108 = arith.constant 3 : index
    %c0_109 = arith.constant 0 : index
    %c0_110 = arith.constant 0 : index
    %220 = vector.load %arg9[%c1_107, %c3_108, %c0_109, %c0_110] : memref<2x4x6x100xf32, #tpu.memory_space<vmem>>, vector<1x1x6x100xf32>
    %221 = vector.shape_cast %220 : vector<1x1x6x100xf32> to vector<6x100xf32>
    %222 = vector.shape_cast %219 : vector<6x100xf32> to vector<1x1x6x100xf32>
    tpu.vector_store %arg9[%c1_107, %c3_108, %c0_109, %c0_110], %222 {strides = array<i32>} : memref<2x4x6x100xf32, #tpu.memory_space<vmem>>, vector<1x1x6x100xf32>,
    %c0_111 = arith.constant 0 : index
    %c0_112 = arith.constant 0 : index
    %c0_113 = arith.constant 0 : index
    %c0_114 = arith.constant 0 : index
    %223 = vector.load %arg9[%c0_111, %c0_112, %c0_113, %c0_114] : memref<2x4x6x100xf32, #tpu.memory_space<vmem>>, vector<1x1x6x100xf32>
    %224 = vector.shape_cast %223 : vector<1x1x6x100xf32> to vector<6x100xf32>
    %c1_115 = arith.constant 1 : index
    %c0_116 = arith.constant 0 : index
    %c0_117 = arith.constant 0 : index
    %c0_118 = arith.constant 0 : index
    %225 = vector.load %arg9[%c1_115, %c0_116, %c0_117, %c0_118] : memref<2x4x6x100xf32, #tpu.memory_space<vmem>>, vector<1x1x6x100xf32>
    %226 = vector.shape_cast %225 : vector<1x1x6x100xf32> to vector<6x100xf32>
    %227 = vector.extract_strided_slice %226 {offsets = [0, 90], sizes = [6, 10], strides = [1, 1]} : vector<6x100xf32> to vector<6x10xf32>
    %228 = vector.extract_strided_slice %226 {offsets = [0, 0], sizes = [6, 90], strides = [1, 1]} : vector<6x100xf32> to vector<6x90xf32>
    %229 = tpu.concatenate %227, %228 in 1 : vector<6x10xf32>, vector<6x90xf32> -> vector<6x100xf32>
    %230 = vector.broadcast %11 : vector<1x100xf32> to vector<6x100xf32>
    %231 = arith.mulf %230, %224 : vector<6x100xf32>
    %cst_119 = arith.constant 1.000000e+00 : f32
    %232 = vector.broadcast %cst_119 : f32 to vector<1x100xf32>
    %233 = arith.subf %232, %11 : vector<1x100xf32>
    %234 = vector.broadcast %233 : vector<1x100xf32> to vector<6x100xf32>
    %235 = arith.mulf %234, %229 : vector<6x100xf32>
    %236 = arith.addf %231, %235 : vector<6x100xf32>
    %237 = vector.extract_strided_slice %224 {offsets = [0, 10], sizes = [6, 90], strides = [1, 1]} : vector<6x100xf32> to vector<6x90xf32>
    %238 = vector.extract_strided_slice %224 {offsets = [0, 0], sizes = [6, 10], strides = [1, 1]} : vector<6x100xf32> to vector<6x10xf32>
    %239 = tpu.concatenate %237, %238 in 1 : vector<6x90xf32>, vector<6x10xf32> -> vector<6x100xf32>
    %240 = vector.broadcast %13 : vector<1x100xf32> to vector<6x100xf32>
    %241 = arith.mulf %240, %226 : vector<6x100xf32>
    %cst_120 = arith.constant 1.000000e+00 : f32
    %242 = vector.broadcast %cst_120 : f32 to vector<1x100xf32>
    %243 = arith.subf %242, %13 : vector<1x100xf32>
    %244 = vector.broadcast %243 : vector<1x100xf32> to vector<6x100xf32>
    %245 = arith.mulf %244, %239 : vector<6x100xf32>
    %246 = arith.addf %241, %245 : vector<6x100xf32>
    %cst_121 = arith.constant 2.500000e-01 : f32
    %247 = vector.broadcast %cst_121 : f32 to vector<6x100xf32>
    %248 = arith.mulf %247, %236 : vector<6x100xf32>
    %cst_122 = arith.constant 7.500000e-01 : f32
    %249 = vector.broadcast %cst_122 : f32 to vector<6x100xf32>
    %250 = arith.mulf %249, %224 : vector<6x100xf32>
    %251 = arith.addf %248, %250 : vector<6x100xf32>
    %252 = vector.extract_strided_slice %251 {offsets = [0, 0], sizes = [6, 80], strides = [1, 1]} : vector<6x100xf32> to vector<6x80xf32>
    %c0_123 = arith.constant 0 : index
    %c0_124 = arith.constant 0 : index
    %c0_125 = arith.constant 0 : index
    %c0_126 = arith.constant 0 : index
    %c0_127 = arith.constant 0 : index
    %253 = vector.load %arg6[%c0_123, %c0_124, %c0_125, %c0_126, %c0_127] : memref<1x2x16x6x80xf32, #tpu.memory_space<vmem>>, vector<1x1x1x6x80xf32>
    %254 = vector.shape_cast %253 : vector<1x1x1x6x80xf32> to vector<6x80xf32>
    %255 = vector.shape_cast %252 : vector<6x80xf32> to vector<1x1x1x6x80xf32>
    tpu.vector_store %arg6[%c0_123, %c0_124, %c0_125, %c0_126, %c0_127], %255 {strides = array<i32>} : memref<1x2x16x6x80xf32, #tpu.memory_space<vmem>>, vector<1x1x1x6x80xf32>,
    %cst_128 = arith.constant 7.500000e-01 : f32
    %256 = vector.broadcast %cst_128 : f32 to vector<6x100xf32>
    %257 = arith.mulf %256, %224 : vector<6x100xf32>
    %cst_129 = arith.constant 2.500000e-01 : f32
    %258 = vector.broadcast %cst_129 : f32 to vector<6x100xf32>
    %259 = arith.mulf %258, %226 : vector<6x100xf32>
    %260 = arith.addf %257, %259 : vector<6x100xf32>
    %261 = vector.extract_strided_slice %260 {offsets = [0, 0], sizes = [6, 80], strides = [1, 1]} : vector<6x100xf32> to vector<6x80xf32>
    %c0_130 = arith.constant 0 : index
    %c0_131 = arith.constant 0 : index
    %c4 = arith.constant 4 : index
    %c0_132 = arith.constant 0 : index
    %c0_133 = arith.constant 0 : index
    %262 = vector.load %arg6[%c0_130, %c0_131, %c4, %c0_132, %c0_133] : memref<1x2x16x6x80xf32, #tpu.memory_space<vmem>>, vector<1x1x1x6x80xf32>
    %263 = vector.shape_cast %262 : vector<1x1x1x6x80xf32> to vector<6x80xf32>
    %264 = vector.shape_cast %261 : vector<6x80xf32> to vector<1x1x1x6x80xf32>
    tpu.vector_store %arg6[%c0_130, %c0_131, %c4, %c0_132, %c0_133], %264 {strides = array<i32>} : memref<1x2x16x6x80xf32, #tpu.memory_space<vmem>>, vector<1x1x1x6x80xf32>,
    %cst_134 = arith.constant 2.500000e-01 : f32
    %265 = vector.broadcast %cst_134 : f32 to vector<6x100xf32>
    %266 = arith.mulf %265, %224 : vector<6x100xf32>
    %cst_135 = arith.constant 7.500000e-01 : f32
    %267 = vector.broadcast %cst_135 : f32 to vector<6x100xf32>
    %268 = arith.mulf %267, %226 : vector<6x100xf32>
    %269 = arith.addf %266, %268 : vector<6x100xf32>
    %270 = vector.extract_strided_slice %269 {offsets = [0, 0], sizes = [6, 80], strides = [1, 1]} : vector<6x100xf32> to vector<6x80xf32>
    %c0_136 = arith.constant 0 : index
    %c0_137 = arith.constant 0 : index
    %c8 = arith.constant 8 : index
    %c0_138 = arith.constant 0 : index
    %c0_139 = arith.constant 0 : index
    %271 = vector.load %arg6[%c0_136, %c0_137, %c8, %c0_138, %c0_139] : memref<1x2x16x6x80xf32, #tpu.memory_space<vmem>>, vector<1x1x1x6x80xf32>
    %272 = vector.shape_cast %271 : vector<1x1x1x6x80xf32> to vector<6x80xf32>
    %273 = vector.shape_cast %270 : vector<6x80xf32> to vector<1x1x1x6x80xf32>
    tpu.vector_store %arg6[%c0_136, %c0_137, %c8, %c0_138, %c0_139], %273 {strides = array<i32>} : memref<1x2x16x6x80xf32, #tpu.memory_space<vmem>>, vector<1x1x1x6x80xf32>,
    %cst_140 = arith.constant 7.500000e-01 : f32
    %274 = vector.broadcast %cst_140 : f32 to vector<6x100xf32>
    %275 = arith.mulf %274, %226 : vector<6x100xf32>
    %cst_141 = arith.constant 2.500000e-01 : f32
    %276 = vector.broadcast %cst_141 : f32 to vector<6x100xf32>
    %277 = arith.mulf %276, %246 : vector<6x100xf32>
    %278 = arith.addf %275, %277 : vector<6x100xf32>
    %279 = vector.extract_strided_slice %278 {offsets = [0, 0], sizes = [6, 80], strides = [1, 1]} : vector<6x100xf32> to vector<6x80xf32>
    %c0_142 = arith.constant 0 : index
    %c0_143 = arith.constant 0 : index
    %c12_144 = arith.constant 12 : index
    %c0_145 = arith.constant 0 : index
    %c0_146 = arith.constant 0 : index
    %280 = vector.load %arg6[%c0_142, %c0_143, %c12_144, %c0_145, %c0_146] : memref<1x2x16x6x80xf32, #tpu.memory_space<vmem>>, vector<1x1x1x6x80xf32>
    %281 = vector.shape_cast %280 : vector<1x1x1x6x80xf32> to vector<6x80xf32>
    %282 = vector.shape_cast %279 : vector<6x80xf32> to vector<1x1x1x6x80xf32>
    tpu.vector_store %arg6[%c0_142, %c0_143, %c12_144, %c0_145, %c0_146], %282 {strides = array<i32>} : memref<1x2x16x6x80xf32, #tpu.memory_space<vmem>>, vector<1x1x1x6x80xf32>,
    %c0_147 = arith.constant 0 : index
    %c1_148 = arith.constant 1 : index
    %c0_149 = arith.constant 0 : index
    %c0_150 = arith.constant 0 : index
    %283 = vector.load %arg9[%c0_147, %c1_148, %c0_149, %c0_150] : memref<2x4x6x100xf32, #tpu.memory_space<vmem>>, vector<1x1x6x100xf32>
    %284 = vector.shape_cast %283 : vector<1x1x6x100xf32> to vector<6x100xf32>
    %c1_151 = arith.constant 1 : index
    %c1_152 = arith.constant 1 : index
    %c0_153 = arith.constant 0 : index
    %c0_154 = arith.constant 0 : index
    %285 = vector.load %arg9[%c1_151, %c1_152, %c0_153, %c0_154] : memref<2x4x6x100xf32, #tpu.memory_space<vmem>>, vector<1x1x6x100xf32>
    %286 = vector.shape_cast %285 : vector<1x1x6x100xf32> to vector<6x100xf32>
    %287 = vector.extract_strided_slice %286 {offsets = [0, 90], sizes = [6, 10], strides = [1, 1]} : vector<6x100xf32> to vector<6x10xf32>
    %288 = vector.extract_strided_slice %286 {offsets = [0, 0], sizes = [6, 90], strides = [1, 1]} : vector<6x100xf32> to vector<6x90xf32>
    %289 = tpu.concatenate %287, %288 in 1 : vector<6x10xf32>, vector<6x90xf32> -> vector<6x100xf32>
    %290 = vector.broadcast %11 : vector<1x100xf32> to vector<6x100xf32>
    %291 = arith.mulf %290, %284 : vector<6x100xf32>
    %cst_155 = arith.constant 1.000000e+00 : f32
    %292 = vector.broadcast %cst_155 : f32 to vector<1x100xf32>
    %293 = arith.subf %292, %11 : vector<1x100xf32>
    %294 = vector.broadcast %293 : vector<1x100xf32> to vector<6x100xf32>
    %295 = arith.mulf %294, %289 : vector<6x100xf32>
    %296 = arith.addf %291, %295 : vector<6x100xf32>
    %297 = vector.extract_strided_slice %284 {offsets = [0, 10], sizes = [6, 90], strides = [1, 1]} : vector<6x100xf32> to vector<6x90xf32>
    %298 = vector.extract_strided_slice %284 {offsets = [0, 0], sizes = [6, 10], strides = [1, 1]} : vector<6x100xf32> to vector<6x10xf32>
    %299 = tpu.concatenate %297, %298 in 1 : vector<6x90xf32>, vector<6x10xf32> -> vector<6x100xf32>
    %300 = vector.broadcast %13 : vector<1x100xf32> to vector<6x100xf32>
    %301 = arith.mulf %300, %286 : vector<6x100xf32>
    %cst_156 = arith.constant 1.000000e+00 : f32
    %302 = vector.broadcast %cst_156 : f32 to vector<1x100xf32>
    %303 = arith.subf %302, %13 : vector<1x100xf32>
    %304 = vector.broadcast %303 : vector<1x100xf32> to vector<6x100xf32>
    %305 = arith.mulf %304, %299 : vector<6x100xf32>
    %306 = arith.addf %301, %305 : vector<6x100xf32>
    %cst_157 = arith.constant 2.500000e-01 : f32
    %307 = vector.broadcast %cst_157 : f32 to vector<6x100xf32>
    %308 = arith.mulf %307, %296 : vector<6x100xf32>
    %cst_158 = arith.constant 7.500000e-01 : f32
    %309 = vector.broadcast %cst_158 : f32 to vector<6x100xf32>
    %310 = arith.mulf %309, %284 : vector<6x100xf32>
    %311 = arith.addf %308, %310 : vector<6x100xf32>
    %312 = vector.extract_strided_slice %311 {offsets = [0, 0], sizes = [6, 80], strides = [1, 1]} : vector<6x100xf32> to vector<6x80xf32>
    %c0_159 = arith.constant 0 : index
    %c0_160 = arith.constant 0 : index
    %c1_161 = arith.constant 1 : index
    %c0_162 = arith.constant 0 : index
    %c0_163 = arith.constant 0 : index
    %313 = vector.load %arg6[%c0_159, %c0_160, %c1_161, %c0_162, %c0_163] : memref<1x2x16x6x80xf32, #tpu.memory_space<vmem>>, vector<1x1x1x6x80xf32>
    %314 = vector.shape_cast %313 : vector<1x1x1x6x80xf32> to vector<6x80xf32>
    %315 = vector.shape_cast %312 : vector<6x80xf32> to vector<1x1x1x6x80xf32>
    tpu.vector_store %arg6[%c0_159, %c0_160, %c1_161, %c0_162, %c0_163], %315 {strides = array<i32>} : memref<1x2x16x6x80xf32, #tpu.memory_space<vmem>>, vector<1x1x1x6x80xf32>,
    %cst_164 = arith.constant 7.500000e-01 : f32
    %316 = vector.broadcast %cst_164 : f32 to vector<6x100xf32>
    %317 = arith.mulf %316, %284 : vector<6x100xf32>
    %cst_165 = arith.constant 2.500000e-01 : f32
    %318 = vector.broadcast %cst_165 : f32 to vector<6x100xf32>
    %319 = arith.mulf %318, %286 : vector<6x100xf32>
    %320 = arith.addf %317, %319 : vector<6x100xf32>
    %321 = vector.extract_strided_slice %320 {offsets = [0, 0], sizes = [6, 80], strides = [1, 1]} : vector<6x100xf32> to vector<6x80xf32>
    %c0_166 = arith.constant 0 : index
    %c0_167 = arith.constant 0 : index
    %c5 = arith.constant 5 : index
    %c0_168 = arith.constant 0 : index
    %c0_169 = arith.constant 0 : index
    %322 = vector.load %arg6[%c0_166, %c0_167, %c5, %c0_168, %c0_169] : memref<1x2x16x6x80xf32, #tpu.memory_space<vmem>>, vector<1x1x1x6x80xf32>
    %323 = vector.shape_cast %322 : vector<1x1x1x6x80xf32> to vector<6x80xf32>
    %324 = vector.shape_cast %321 : vector<6x80xf32> to vector<1x1x1x6x80xf32>
    tpu.vector_store %arg6[%c0_166, %c0_167, %c5, %c0_168, %c0_169], %324 {strides = array<i32>} : memref<1x2x16x6x80xf32, #tpu.memory_space<vmem>>, vector<1x1x1x6x80xf32>,
    %cst_170 = arith.constant 2.500000e-01 : f32
    %325 = vector.broadcast %cst_170 : f32 to vector<6x100xf32>
    %326 = arith.mulf %325, %284 : vector<6x100xf32>
    %cst_171 = arith.constant 7.500000e-01 : f32
    %327 = vector.broadcast %cst_171 : f32 to vector<6x100xf32>
    %328 = arith.mulf %327, %286 : vector<6x100xf32>
    %329 = arith.addf %326, %328 : vector<6x100xf32>
    %330 = vector.extract_strided_slice %329 {offsets = [0, 0], sizes = [6, 80], strides = [1, 1]} : vector<6x100xf32> to vector<6x80xf32>
    %c0_172 = arith.constant 0 : index
    %c0_173 = arith.constant 0 : index
    %c9 = arith.constant 9 : index
    %c0_174 = arith.constant 0 : index
    %c0_175 = arith.constant 0 : index
    %331 = vector.load %arg6[%c0_172, %c0_173, %c9, %c0_174, %c0_175] : memref<1x2x16x6x80xf32, #tpu.memory_space<vmem>>, vector<1x1x1x6x80xf32>
    %332 = vector.shape_cast %331 : vector<1x1x1x6x80xf32> to vector<6x80xf32>
    %333 = vector.shape_cast %330 : vector<6x80xf32> to vector<1x1x1x6x80xf32>
    tpu.vector_store %arg6[%c0_172, %c0_173, %c9, %c0_174, %c0_175], %333 {strides = array<i32>} : memref<1x2x16x6x80xf32, #tpu.memory_space<vmem>>, vector<1x1x1x6x80xf32>,
    %cst_176 = arith.constant 7.500000e-01 : f32
    %334 = vector.broadcast %cst_176 : f32 to vector<6x100xf32>
    %335 = arith.mulf %334, %286 : vector<6x100xf32>
    %cst_177 = arith.constant 2.500000e-01 : f32
    %336 = vector.broadcast %cst_177 : f32 to vector<6x100xf32>
    %337 = arith.mulf %336, %306 : vector<6x100xf32>
    %338 = arith.addf %335, %337 : vector<6x100xf32>
    %339 = vector.extract_strided_slice %338 {offsets = [0, 0], sizes = [6, 80], strides = [1, 1]} : vector<6x100xf32> to vector<6x80xf32>
    %c0_178 = arith.constant 0 : index
    %c0_179 = arith.constant 0 : index
    %c13 = arith.constant 13 : index
    %c0_180 = arith.constant 0 : index
    %c0_181 = arith.constant 0 : index
    %340 = vector.load %arg6[%c0_178, %c0_179, %c13, %c0_180, %c0_181] : memref<1x2x16x6x80xf32, #tpu.memory_space<vmem>>, vector<1x1x1x6x80xf32>
    %341 = vector.shape_cast %340 : vector<1x1x1x6x80xf32> to vector<6x80xf32>
    %342 = vector.shape_cast %339 : vector<6x80xf32> to vector<1x1x1x6x80xf32>
    tpu.vector_store %arg6[%c0_178, %c0_179, %c13, %c0_180, %c0_181], %342 {strides = array<i32>} : memref<1x2x16x6x80xf32, #tpu.memory_space<vmem>>, vector<1x1x1x6x80xf32>,
    %c0_182 = arith.constant 0 : index
    %c2_183 = arith.constant 2 : index
    %c0_184 = arith.constant 0 : index
    %c0_185 = arith.constant 0 : index
    %343 = vector.load %arg9[%c0_182, %c2_183, %c0_184, %c0_185] : memref<2x4x6x100xf32, #tpu.memory_space<vmem>>, vector<1x1x6x100xf32>
    %344 = vector.shape_cast %343 : vector<1x1x6x100xf32> to vector<6x100xf32>
    %c1_186 = arith.constant 1 : index
    %c2_187 = arith.constant 2 : index
    %c0_188 = arith.constant 0 : index
    %c0_189 = arith.constant 0 : index
    %345 = vector.load %arg9[%c1_186, %c2_187, %c0_188, %c0_189] : memref<2x4x6x100xf32, #tpu.memory_space<vmem>>, vector<1x1x6x100xf32>
    %346 = vector.shape_cast %345 : vector<1x1x6x100xf32> to vector<6x100xf32>
    %347 = vector.extract_strided_slice %346 {offsets = [0, 90], sizes = [6, 10], strides = [1, 1]} : vector<6x100xf32> to vector<6x10xf32>
    %348 = vector.extract_strided_slice %346 {offsets = [0, 0], sizes = [6, 90], strides = [1, 1]} : vector<6x100xf32> to vector<6x90xf32>
    %349 = tpu.concatenate %347, %348 in 1 : vector<6x10xf32>, vector<6x90xf32> -> vector<6x100xf32>
    %350 = vector.broadcast %11 : vector<1x100xf32> to vector<6x100xf32>
    %351 = arith.mulf %350, %344 : vector<6x100xf32>
    %cst_190 = arith.constant 1.000000e+00 : f32
    %352 = vector.broadcast %cst_190 : f32 to vector<1x100xf32>
    %353 = arith.subf %352, %11 : vector<1x100xf32>
    %354 = vector.broadcast %353 : vector<1x100xf32> to vector<6x100xf32>
    %355 = arith.mulf %354, %349 : vector<6x100xf32>
    %356 = arith.addf %351, %355 : vector<6x100xf32>
    %357 = vector.extract_strided_slice %344 {offsets = [0, 10], sizes = [6, 90], strides = [1, 1]} : vector<6x100xf32> to vector<6x90xf32>
    %358 = vector.extract_strided_slice %344 {offsets = [0, 0], sizes = [6, 10], strides = [1, 1]} : vector<6x100xf32> to vector<6x10xf32>
    %359 = tpu.concatenate %357, %358 in 1 : vector<6x90xf32>, vector<6x10xf32> -> vector<6x100xf32>
    %360 = vector.broadcast %13 : vector<1x100xf32> to vector<6x100xf32>
    %361 = arith.mulf %360, %346 : vector<6x100xf32>
    %cst_191 = arith.constant 1.000000e+00 : f32
    %362 = vector.broadcast %cst_191 : f32 to vector<1x100xf32>
    %363 = arith.subf %362, %13 : vector<1x100xf32>
    %364 = vector.broadcast %363 : vector<1x100xf32> to vector<6x100xf32>
    %365 = arith.mulf %364, %359 : vector<6x100xf32>
    %366 = arith.addf %361, %365 : vector<6x100xf32>
    %cst_192 = arith.constant 2.500000e-01 : f32
    %367 = vector.broadcast %cst_192 : f32 to vector<6x100xf32>
    %368 = arith.mulf %367, %356 : vector<6x100xf32>
    %cst_193 = arith.constant 7.500000e-01 : f32
    %369 = vector.broadcast %cst_193 : f32 to vector<6x100xf32>
    %370 = arith.mulf %369, %344 : vector<6x100xf32>
    %371 = arith.addf %368, %370 : vector<6x100xf32>
    %372 = vector.extract_strided_slice %371 {offsets = [0, 0], sizes = [6, 80], strides = [1, 1]} : vector<6x100xf32> to vector<6x80xf32>
    %c0_194 = arith.constant 0 : index
    %c0_195 = arith.constant 0 : index
    %c2_196 = arith.constant 2 : index
    %c0_197 = arith.constant 0 : index
    %c0_198 = arith.constant 0 : index
    %373 = vector.load %arg6[%c0_194, %c0_195, %c2_196, %c0_197, %c0_198] : memref<1x2x16x6x80xf32, #tpu.memory_space<vmem>>, vector<1x1x1x6x80xf32>
    %374 = vector.shape_cast %373 : vector<1x1x1x6x80xf32> to vector<6x80xf32>
    %375 = vector.shape_cast %372 : vector<6x80xf32> to vector<1x1x1x6x80xf32>
    tpu.vector_store %arg6[%c0_194, %c0_195, %c2_196, %c0_197, %c0_198], %375 {strides = array<i32>} : memref<1x2x16x6x80xf32, #tpu.memory_space<vmem>>, vector<1x1x1x6x80xf32>,
    %cst_199 = arith.constant 7.500000e-01 : f32
    %376 = vector.broadcast %cst_199 : f32 to vector<6x100xf32>
    %377 = arith.mulf %376, %344 : vector<6x100xf32>
    %cst_200 = arith.constant 2.500000e-01 : f32
    %378 = vector.broadcast %cst_200 : f32 to vector<6x100xf32>
    %379 = arith.mulf %378, %346 : vector<6x100xf32>
    %380 = arith.addf %377, %379 : vector<6x100xf32>
    %381 = vector.extract_strided_slice %380 {offsets = [0, 0], sizes = [6, 80], strides = [1, 1]} : vector<6x100xf32> to vector<6x80xf32>
    %c0_201 = arith.constant 0 : index
    %c0_202 = arith.constant 0 : index
    %c6_203 = arith.constant 6 : index
    %c0_204 = arith.constant 0 : index
    %c0_205 = arith.constant 0 : index
    %382 = vector.load %arg6[%c0_201, %c0_202, %c6_203, %c0_204, %c0_205] : memref<1x2x16x6x80xf32, #tpu.memory_space<vmem>>, vector<1x1x1x6x80xf32>
    %383 = vector.shape_cast %382 : vector<1x1x1x6x80xf32> to vector<6x80xf32>
    %384 = vector.shape_cast %381 : vector<6x80xf32> to vector<1x1x1x6x80xf32>
    tpu.vector_store %arg6[%c0_201, %c0_202, %c6_203, %c0_204, %c0_205], %384 {strides = array<i32>} : memref<1x2x16x6x80xf32, #tpu.memory_space<vmem>>, vector<1x1x1x6x80xf32>,
    %cst_206 = arith.constant 2.500000e-01 : f32
    %385 = vector.broadcast %cst_206 : f32 to vector<6x100xf32>
    %386 = arith.mulf %385, %344 : vector<6x100xf32>
    %cst_207 = arith.constant 7.500000e-01 : f32
    %387 = vector.broadcast %cst_207 : f32 to vector<6x100xf32>
    %388 = arith.mulf %387, %346 : vector<6x100xf32>
    %389 = arith.addf %386, %388 : vector<6x100xf32>
    %390 = vector.extract_strided_slice %389 {offsets = [0, 0], sizes = [6, 80], strides = [1, 1]} : vector<6x100xf32> to vector<6x80xf32>
    %c0_208 = arith.constant 0 : index
    %c0_209 = arith.constant 0 : index
    %c10 = arith.constant 10 : index
    %c0_210 = arith.constant 0 : index
    %c0_211 = arith.constant 0 : index
    %391 = vector.load %arg6[%c0_208, %c0_209, %c10, %c0_210, %c0_211] : memref<1x2x16x6x80xf32, #tpu.memory_space<vmem>>, vector<1x1x1x6x80xf32>
    %392 = vector.shape_cast %391 : vector<1x1x1x6x80xf32> to vector<6x80xf32>
    %393 = vector.shape_cast %390 : vector<6x80xf32> to vector<1x1x1x6x80xf32>
    tpu.vector_store %arg6[%c0_208, %c0_209, %c10, %c0_210, %c0_211], %393 {strides = array<i32>} : memref<1x2x16x6x80xf32, #tpu.memory_space<vmem>>, vector<1x1x1x6x80xf32>,
    %cst_212 = arith.constant 7.500000e-01 : f32
    %394 = vector.broadcast %cst_212 : f32 to vector<6x100xf32>
    %395 = arith.mulf %394, %346 : vector<6x100xf32>
    %cst_213 = arith.constant 2.500000e-01 : f32
    %396 = vector.broadcast %cst_213 : f32 to vector<6x100xf32>
    %397 = arith.mulf %396, %366 : vector<6x100xf32>
    %398 = arith.addf %395, %397 : vector<6x100xf32>
    %399 = vector.extract_strided_slice %398 {offsets = [0, 0], sizes = [6, 80], strides = [1, 1]} : vector<6x100xf32> to vector<6x80xf32>
    %c0_214 = arith.constant 0 : index
    %c0_215 = arith.constant 0 : index
    %c14 = arith.constant 14 : index
    %c0_216 = arith.constant 0 : index
    %c0_217 = arith.constant 0 : index
    %400 = vector.load %arg6[%c0_214, %c0_215, %c14, %c0_216, %c0_217] : memref<1x2x16x6x80xf32, #tpu.memory_space<vmem>>, vector<1x1x1x6x80xf32>
    %401 = vector.shape_cast %400 : vector<1x1x1x6x80xf32> to vector<6x80xf32>
    %402 = vector.shape_cast %399 : vector<6x80xf32> to vector<1x1x1x6x80xf32>
    tpu.vector_store %arg6[%c0_214, %c0_215, %c14, %c0_216, %c0_217], %402 {strides = array<i32>} : memref<1x2x16x6x80xf32, #tpu.memory_space<vmem>>, vector<1x1x1x6x80xf32>,
    %c0_218 = arith.constant 0 : index
    %c3_219 = arith.constant 3 : index
    %c0_220 = arith.constant 0 : index
    %c0_221 = arith.constant 0 : index
    %403 = vector.load %arg9[%c0_218, %c3_219, %c0_220, %c0_221] : memref<2x4x6x100xf32, #tpu.memory_space<vmem>>, vector<1x1x6x100xf32>
    %404 = vector.shape_cast %403 : vector<1x1x6x100xf32> to vector<6x100xf32>
    %c1_222 = arith.constant 1 : index
    %c3_223 = arith.constant 3 : index
    %c0_224 = arith.constant 0 : index
    %c0_225 = arith.constant 0 : index
    %405 = vector.load %arg9[%c1_222, %c3_223, %c0_224, %c0_225] : memref<2x4x6x100xf32, #tpu.memory_space<vmem>>, vector<1x1x6x100xf32>
    %406 = vector.shape_cast %405 : vector<1x1x6x100xf32> to vector<6x100xf32>
    %407 = vector.extract_strided_slice %406 {offsets = [0, 90], sizes = [6, 10], strides = [1, 1]} : vector<6x100xf32> to vector<6x10xf32>
    %408 = vector.extract_strided_slice %406 {offsets = [0, 0], sizes = [6, 90], strides = [1, 1]} : vector<6x100xf32> to vector<6x90xf32>
    %409 = tpu.concatenate %407, %408 in 1 : vector<6x10xf32>, vector<6x90xf32> -> vector<6x100xf32>
    %410 = vector.broadcast %11 : vector<1x100xf32> to vector<6x100xf32>
    %411 = arith.mulf %410, %404 : vector<6x100xf32>
    %cst_226 = arith.constant 1.000000e+00 : f32
    %412 = vector.broadcast %cst_226 : f32 to vector<1x100xf32>
    %413 = arith.subf %412, %11 : vector<1x100xf32>
    %414 = vector.broadcast %413 : vector<1x100xf32> to vector<6x100xf32>
    %415 = arith.mulf %414, %409 : vector<6x100xf32>
    %416 = arith.addf %411, %415 : vector<6x100xf32>
    %417 = vector.extract_strided_slice %404 {offsets = [0, 10], sizes = [6, 90], strides = [1, 1]} : vector<6x100xf32> to vector<6x90xf32>
    %418 = vector.extract_strided_slice %404 {offsets = [0, 0], sizes = [6, 10], strides = [1, 1]} : vector<6x100xf32> to vector<6x10xf32>
    %419 = tpu.concatenate %417, %418 in 1 : vector<6x90xf32>, vector<6x10xf32> -> vector<6x100xf32>
    %420 = vector.broadcast %13 : vector<1x100xf32> to vector<6x100xf32>
    %421 = arith.mulf %420, %406 : vector<6x100xf32>
    %cst_227 = arith.constant 1.000000e+00 : f32
    %422 = vector.broadcast %cst_227 : f32 to vector<1x100xf32>
    %423 = arith.subf %422, %13 : vector<1x100xf32>
    %424 = vector.broadcast %423 : vector<1x100xf32> to vector<6x100xf32>
    %425 = arith.mulf %424, %419 : vector<6x100xf32>
    %426 = arith.addf %421, %425 : vector<6x100xf32>
    %cst_228 = arith.constant 2.500000e-01 : f32
    %427 = vector.broadcast %cst_228 : f32 to vector<6x100xf32>
    %428 = arith.mulf %427, %416 : vector<6x100xf32>
    %cst_229 = arith.constant 7.500000e-01 : f32
    %429 = vector.broadcast %cst_229 : f32 to vector<6x100xf32>
    %430 = arith.mulf %429, %404 : vector<6x100xf32>
    %431 = arith.addf %428, %430 : vector<6x100xf32>
    %432 = vector.extract_strided_slice %431 {offsets = [0, 0], sizes = [6, 80], strides = [1, 1]} : vector<6x100xf32> to vector<6x80xf32>
    %c0_230 = arith.constant 0 : index
    %c0_231 = arith.constant 0 : index
    %c3_232 = arith.constant 3 : index
    %c0_233 = arith.constant 0 : index
    %c0_234 = arith.constant 0 : index
    %433 = vector.load %arg6[%c0_230, %c0_231, %c3_232, %c0_233, %c0_234] : memref<1x2x16x6x80xf32, #tpu.memory_space<vmem>>, vector<1x1x1x6x80xf32>
    %434 = vector.shape_cast %433 : vector<1x1x1x6x80xf32> to vector<6x80xf32>
    %435 = vector.shape_cast %432 : vector<6x80xf32> to vector<1x1x1x6x80xf32>
    tpu.vector_store %arg6[%c0_230, %c0_231, %c3_232, %c0_233, %c0_234], %435 {strides = array<i32>} : memref<1x2x16x6x80xf32, #tpu.memory_space<vmem>>, vector<1x1x1x6x80xf32>,
    %cst_235 = arith.constant 7.500000e-01 : f32
    %436 = vector.broadcast %cst_235 : f32 to vector<6x100xf32>
    %437 = arith.mulf %436, %404 : vector<6x100xf32>
    %cst_236 = arith.constant 2.500000e-01 : f32
    %438 = vector.broadcast %cst_236 : f32 to vector<6x100xf32>
    %439 = arith.mulf %438, %406 : vector<6x100xf32>
    %440 = arith.addf %437, %439 : vector<6x100xf32>
    %441 = vector.extract_strided_slice %440 {offsets = [0, 0], sizes = [6, 80], strides = [1, 1]} : vector<6x100xf32> to vector<6x80xf32>
    %c0_237 = arith.constant 0 : index
    %c0_238 = arith.constant 0 : index
    %c7 = arith.constant 7 : index
    %c0_239 = arith.constant 0 : index
    %c0_240 = arith.constant 0 : index
    %442 = vector.load %arg6[%c0_237, %c0_238, %c7, %c0_239, %c0_240] : memref<1x2x16x6x80xf32, #tpu.memory_space<vmem>>, vector<1x1x1x6x80xf32>
    %443 = vector.shape_cast %442 : vector<1x1x1x6x80xf32> to vector<6x80xf32>
    %444 = vector.shape_cast %441 : vector<6x80xf32> to vector<1x1x1x6x80xf32>
    tpu.vector_store %arg6[%c0_237, %c0_238, %c7, %c0_239, %c0_240], %444 {strides = array<i32>} : memref<1x2x16x6x80xf32, #tpu.memory_space<vmem>>, vector<1x1x1x6x80xf32>,
    %cst_241 = arith.constant 2.500000e-01 : f32
    %445 = vector.broadcast %cst_241 : f32 to vector<6x100xf32>
    %446 = arith.mulf %445, %404 : vector<6x100xf32>
    %cst_242 = arith.constant 7.500000e-01 : f32
    %447 = vector.broadcast %cst_242 : f32 to vector<6x100xf32>
    %448 = arith.mulf %447, %406 : vector<6x100xf32>
    %449 = arith.addf %446, %448 : vector<6x100xf32>
    %450 = vector.extract_strided_slice %449 {offsets = [0, 0], sizes = [6, 80], strides = [1, 1]} : vector<6x100xf32> to vector<6x80xf32>
    %c0_243 = arith.constant 0 : index
    %c0_244 = arith.constant 0 : index
    %c11 = arith.constant 11 : index
    %c0_245 = arith.constant 0 : index
    %c0_246 = arith.constant 0 : index
    %451 = vector.load %arg6[%c0_243, %c0_244, %c11, %c0_245, %c0_246] : memref<1x2x16x6x80xf32, #tpu.memory_space<vmem>>, vector<1x1x1x6x80xf32>
    %452 = vector.shape_cast %451 : vector<1x1x1x6x80xf32> to vector<6x80xf32>
    %453 = vector.shape_cast %450 : vector<6x80xf32> to vector<1x1x1x6x80xf32>
    tpu.vector_store %arg6[%c0_243, %c0_244, %c11, %c0_245, %c0_246], %453 {strides = array<i32>} : memref<1x2x16x6x80xf32, #tpu.memory_space<vmem>>, vector<1x1x1x6x80xf32>,
    %cst_247 = arith.constant 7.500000e-01 : f32
    %454 = vector.broadcast %cst_247 : f32 to vector<6x100xf32>
    %455 = arith.mulf %454, %406 : vector<6x100xf32>
    %cst_248 = arith.constant 2.500000e-01 : f32
    %456 = vector.broadcast %cst_248 : f32 to vector<6x100xf32>
    %457 = arith.mulf %456, %426 : vector<6x100xf32>
    %458 = arith.addf %455, %457 : vector<6x100xf32>
    %459 = vector.extract_strided_slice %458 {offsets = [0, 0], sizes = [6, 80], strides = [1, 1]} : vector<6x100xf32> to vector<6x80xf32>
    %c0_249 = arith.constant 0 : index
    %c0_250 = arith.constant 0 : index
    %c15 = arith.constant 15 : index
    %c0_251 = arith.constant 0 : index
    %c0_252 = arith.constant 0 : index
    %460 = vector.load %arg6[%c0_249, %c0_250, %c15, %c0_251, %c0_252] : memref<1x2x16x6x80xf32, #tpu.memory_space<vmem>>, vector<1x1x1x6x80xf32>
    %461 = vector.shape_cast %460 : vector<1x1x1x6x80xf32> to vector<6x80xf32>
    %462 = vector.shape_cast %459 : vector<6x80xf32> to vector<1x1x1x6x80xf32>
    tpu.vector_store %arg6[%c0_249, %c0_250, %c15, %c0_251, %c0_252], %462 {strides = array<i32>} : memref<1x2x16x6x80xf32, #tpu.memory_space<vmem>>, vector<1x1x1x6x80xf32>,
    %c0_253 = arith.constant 0 : index
    %c1_254 = arith.constant 1 : index
    %c0_255 = arith.constant 0 : index
    %c0_256 = arith.constant 0 : index
    %463 = vector.load %arg2[%c0_253, %c1_254, %c0_255, %c0_256] : memref<1x2x32x100xbf16, #tpu.memory_space<vmem>>, vector<1x1x32x100xbf16>
    %464 = vector.shape_cast %463 : vector<1x1x32x100xbf16> to vector<32x100xbf16>
    %cst_257 = arith.constant dense<0.000000e+00> : vector<96x100xf32>
    %465 = tpu.matmul %2, %464, %cst_257 {dimension_numbers = #tpu.dot_dimension_numbers<[1], [0], [0], [1], [0, 0, 1, 1], [], []>} : vector<96x32xbf16>, vector<32x100xbf16>, vector<96x100xf32> -> vector<96x100xf32>
    %c0_258 = arith.constant 0 : index
    %c0_259 = arith.constant 0 : index
    %466 = vector.load %arg7[%c0_258, %c0_259] : memref<96x100xf32, #tpu.memory_space<vmem>>, vector<96x100xf32>
    tpu.vector_store %arg7[%c0_258, %c0_259], %465 {strides = array<i32>} : memref<96x100xf32, #tpu.memory_space<vmem>>, vector<96x100xf32>,
    %c0_260 = arith.constant 0 : index
    %c0_261 = arith.constant 0 : index
    %467 = vector.load %arg7[%c0_260, %c0_261] : memref<96x100xf32, #tpu.memory_space<vmem>>, vector<6x100xf32>
    %c6_262 = arith.constant 6 : index
    %c0_263 = arith.constant 0 : index
    %468 = vector.load %arg7[%c6_262, %c0_263] : memref<96x100xf32, #tpu.memory_space<vmem>>, vector<6x100xf32>
    %469 = vector.extract_strided_slice %468 {offsets = [0, 1], sizes = [6, 99], strides = [1, 1]} : vector<6x100xf32> to vector<6x99xf32>
    %470 = vector.extract_strided_slice %468 {offsets = [0, 0], sizes = [6, 1], strides = [1, 1]} : vector<6x100xf32> to vector<6x1xf32>
    %471 = tpu.concatenate %469, %470 in 1 : vector<6x99xf32>, vector<6x1xf32> -> vector<6x100xf32>
    %472 = arith.addf %467, %471 : vector<6x100xf32>
    %c12_264 = arith.constant 12 : index
    %c0_265 = arith.constant 0 : index
    %473 = vector.load %arg7[%c12_264, %c0_265] : memref<96x100xf32, #tpu.memory_space<vmem>>, vector<6x100xf32>
    %474 = vector.extract_strided_slice %473 {offsets = [0, 10], sizes = [6, 90], strides = [1, 1]} : vector<6x100xf32> to vector<6x90xf32>
    %475 = vector.extract_strided_slice %473 {offsets = [0, 0], sizes = [6, 10], strides = [1, 1]} : vector<6x100xf32> to vector<6x10xf32>
    %476 = tpu.concatenate %474, %475 in 1 : vector<6x90xf32>, vector<6x10xf32> -> vector<6x100xf32>
    %477 = arith.addf %472, %476 : vector<6x100xf32>
    %c18_266 = arith.constant 18 : index
    %c0_267 = arith.constant 0 : index
    %478 = vector.load %arg7[%c18_266, %c0_267] : memref<96x100xf32, #tpu.memory_space<vmem>>, vector<6x100xf32>
    %479 = vector.extract_strided_slice %478 {offsets = [0, 11], sizes = [6, 89], strides = [1, 1]} : vector<6x100xf32> to vector<6x89xf32>
    %480 = vector.extract_strided_slice %478 {offsets = [0, 0], sizes = [6, 11], strides = [1, 1]} : vector<6x100xf32> to vector<6x11xf32>
    %481 = tpu.concatenate %479, %480 in 1 : vector<6x89xf32>, vector<6x11xf32> -> vector<6x100xf32>
    %482 = arith.addf %477, %481 : vector<6x100xf32>
    %483 = vector.broadcast %5 : vector<6x1xf32> to vector<6x100xf32>
    %484 = arith.addf %482, %483 : vector<6x100xf32>
    %c0_268 = arith.constant 0 : index
    %c0_269 = arith.constant 0 : index
    %c0_270 = arith.constant 0 : index
    %485 = vector.load %arg8[%c0_268, %c0_269, %c0_270] : memref<4x6x100xf32, #tpu.memory_space<vmem>>, vector<1x6x100xf32>
    %486 = vector.shape_cast %485 : vector<1x6x100xf32> to vector<6x100xf32>
    %487 = vector.shape_cast %484 : vector<6x100xf32> to vector<1x6x100xf32>
    tpu.vector_store %arg8[%c0_268, %c0_269, %c0_270], %487 {strides = array<i32>} : memref<4x6x100xf32, #tpu.memory_space<vmem>>, vector<1x6x100xf32>,
    %c24_271 = arith.constant 24 : index
    %c0_272 = arith.constant 0 : index
    %488 = vector.load %arg7[%c24_271, %c0_272] : memref<96x100xf32, #tpu.memory_space<vmem>>, vector<6x100xf32>
    %489 = vector.extract_strided_slice %488 {offsets = [0, 1], sizes = [6, 99], strides = [1, 1]} : vector<6x100xf32> to vector<6x99xf32>
    %490 = vector.extract_strided_slice %488 {offsets = [0, 0], sizes = [6, 1], strides = [1, 1]} : vector<6x100xf32> to vector<6x1xf32>
    %491 = tpu.concatenate %489, %490 in 1 : vector<6x99xf32>, vector<6x1xf32> -> vector<6x100xf32>
    %c30_273 = arith.constant 30 : index
    %c0_274 = arith.constant 0 : index
    %492 = vector.load %arg7[%c30_273, %c0_274] : memref<96x100xf32, #tpu.memory_space<vmem>>, vector<6x100xf32>
    %493 = vector.extract_strided_slice %492 {offsets = [0, 2], sizes = [6, 98], strides = [1, 1]} : vector<6x100xf32> to vector<6x98xf32>
    %494 = vector.extract_strided_slice %492 {offsets = [0, 0], sizes = [6, 2], strides = [1, 1]} : vector<6x100xf32> to vector<6x2xf32>
    %495 = tpu.concatenate %493, %494 in 1 : vector<6x98xf32>, vector<6x2xf32> -> vector<6x100xf32>
    %496 = arith.addf %491, %495 : vector<6x100xf32>
    %c36_275 = arith.constant 36 : index
    %c0_276 = arith.constant 0 : index
    %497 = vector.load %arg7[%c36_275, %c0_276] : memref<96x100xf32, #tpu.memory_space<vmem>>, vector<6x100xf32>
    %498 = vector.extract_strided_slice %497 {offsets = [0, 11], sizes = [6, 89], strides = [1, 1]} : vector<6x100xf32> to vector<6x89xf32>
    %499 = vector.extract_strided_slice %497 {offsets = [0, 0], sizes = [6, 11], strides = [1, 1]} : vector<6x100xf32> to vector<6x11xf32>
    %500 = tpu.concatenate %498, %499 in 1 : vector<6x89xf32>, vector<6x11xf32> -> vector<6x100xf32>
    %501 = arith.addf %496, %500 : vector<6x100xf32>
    %c42_277 = arith.constant 42 : index
    %c0_278 = arith.constant 0 : index
    %502 = vector.load %arg7[%c42_277, %c0_278] : memref<96x100xf32, #tpu.memory_space<vmem>>, vector<6x100xf32>
    %503 = vector.extract_strided_slice %502 {offsets = [0, 12], sizes = [6, 88], strides = [1, 1]} : vector<6x100xf32> to vector<6x88xf32>
    %504 = vector.extract_strided_slice %502 {offsets = [0, 0], sizes = [6, 12], strides = [1, 1]} : vector<6x100xf32> to vector<6x12xf32>
    %505 = tpu.concatenate %503, %504 in 1 : vector<6x88xf32>, vector<6x12xf32> -> vector<6x100xf32>
    %506 = arith.addf %501, %505 : vector<6x100xf32>
    %507 = vector.broadcast %5 : vector<6x1xf32> to vector<6x100xf32>
    %508 = arith.addf %506, %507 : vector<6x100xf32>
    %c1_279 = arith.constant 1 : index
    %c0_280 = arith.constant 0 : index
    %c0_281 = arith.constant 0 : index
    %509 = vector.load %arg8[%c1_279, %c0_280, %c0_281] : memref<4x6x100xf32, #tpu.memory_space<vmem>>, vector<1x6x100xf32>
    %510 = vector.shape_cast %509 : vector<1x6x100xf32> to vector<6x100xf32>
    %511 = vector.shape_cast %508 : vector<6x100xf32> to vector<1x6x100xf32>
    tpu.vector_store %arg8[%c1_279, %c0_280, %c0_281], %511 {strides = array<i32>} : memref<4x6x100xf32, #tpu.memory_space<vmem>>, vector<1x6x100xf32>,
    %c48_282 = arith.constant 48 : index
    %c0_283 = arith.constant 0 : index
    %512 = vector.load %arg7[%c48_282, %c0_283] : memref<96x100xf32, #tpu.memory_space<vmem>>, vector<6x100xf32>
    %513 = vector.extract_strided_slice %512 {offsets = [0, 10], sizes = [6, 90], strides = [1, 1]} : vector<6x100xf32> to vector<6x90xf32>
    %514 = vector.extract_strided_slice %512 {offsets = [0, 0], sizes = [6, 10], strides = [1, 1]} : vector<6x100xf32> to vector<6x10xf32>
    %515 = tpu.concatenate %513, %514 in 1 : vector<6x90xf32>, vector<6x10xf32> -> vector<6x100xf32>
    %c54_284 = arith.constant 54 : index
    %c0_285 = arith.constant 0 : index
    %516 = vector.load %arg7[%c54_284, %c0_285] : memref<96x100xf32, #tpu.memory_space<vmem>>, vector<6x100xf32>
    %517 = vector.extract_strided_slice %516 {offsets = [0, 11], sizes = [6, 89], strides = [1, 1]} : vector<6x100xf32> to vector<6x89xf32>
    %518 = vector.extract_strided_slice %516 {offsets = [0, 0], sizes = [6, 11], strides = [1, 1]} : vector<6x100xf32> to vector<6x11xf32>
    %519 = tpu.concatenate %517, %518 in 1 : vector<6x89xf32>, vector<6x11xf32> -> vector<6x100xf32>
    %520 = arith.addf %515, %519 : vector<6x100xf32>
    %c60_286 = arith.constant 60 : index
    %c0_287 = arith.constant 0 : index
    %521 = vector.load %arg7[%c60_286, %c0_287] : memref<96x100xf32, #tpu.memory_space<vmem>>, vector<6x100xf32>
    %522 = vector.extract_strided_slice %521 {offsets = [0, 20], sizes = [6, 80], strides = [1, 1]} : vector<6x100xf32> to vector<6x80xf32>
    %523 = vector.extract_strided_slice %521 {offsets = [0, 0], sizes = [6, 20], strides = [1, 1]} : vector<6x100xf32> to vector<6x20xf32>
    %524 = tpu.concatenate %522, %523 in 1 : vector<6x80xf32>, vector<6x20xf32> -> vector<6x100xf32>
    %525 = arith.addf %520, %524 : vector<6x100xf32>
    %c66_288 = arith.constant 66 : index
    %c0_289 = arith.constant 0 : index
    %526 = vector.load %arg7[%c66_288, %c0_289] : memref<96x100xf32, #tpu.memory_space<vmem>>, vector<6x100xf32>
    %527 = vector.extract_strided_slice %526 {offsets = [0, 21], sizes = [6, 79], strides = [1, 1]} : vector<6x100xf32> to vector<6x79xf32>
    %528 = vector.extract_strided_slice %526 {offsets = [0, 0], sizes = [6, 21], strides = [1, 1]} : vector<6x100xf32> to vector<6x21xf32>
    %529 = tpu.concatenate %527, %528 in 1 : vector<6x79xf32>, vector<6x21xf32> -> vector<6x100xf32>
    %530 = arith.addf %525, %529 : vector<6x100xf32>
    %531 = vector.broadcast %5 : vector<6x1xf32> to vector<6x100xf32>
    %532 = arith.addf %530, %531 : vector<6x100xf32>
    %c2_290 = arith.constant 2 : index
    %c0_291 = arith.constant 0 : index
    %c0_292 = arith.constant 0 : index
    %533 = vector.load %arg8[%c2_290, %c0_291, %c0_292] : memref<4x6x100xf32, #tpu.memory_space<vmem>>, vector<1x6x100xf32>
    %534 = vector.shape_cast %533 : vector<1x6x100xf32> to vector<6x100xf32>
    %535 = vector.shape_cast %532 : vector<6x100xf32> to vector<1x6x100xf32>
    tpu.vector_store %arg8[%c2_290, %c0_291, %c0_292], %535 {strides = array<i32>} : memref<4x6x100xf32, #tpu.memory_space<vmem>>, vector<1x6x100xf32>,
    %c72_293 = arith.constant 72 : index
    %c0_294 = arith.constant 0 : index
    %536 = vector.load %arg7[%c72_293, %c0_294] : memref<96x100xf32, #tpu.memory_space<vmem>>, vector<6x100xf32>
    %537 = vector.extract_strided_slice %536 {offsets = [0, 11], sizes = [6, 89], strides = [1, 1]} : vector<6x100xf32> to vector<6x89xf32>
    %538 = vector.extract_strided_slice %536 {offsets = [0, 0], sizes = [6, 11], strides = [1, 1]} : vector<6x100xf32> to vector<6x11xf32>
    %539 = tpu.concatenate %537, %538 in 1 : vector<6x89xf32>, vector<6x11xf32> -> vector<6x100xf32>
    %c78_295 = arith.constant 78 : index
    %c0_296 = arith.constant 0 : index
    %540 = vector.load %arg7[%c78_295, %c0_296] : memref<96x100xf32, #tpu.memory_space<vmem>>, vector<6x100xf32>
    %541 = vector.extract_strided_slice %540 {offsets = [0, 12], sizes = [6, 88], strides = [1, 1]} : vector<6x100xf32> to vector<6x88xf32>
    %542 = vector.extract_strided_slice %540 {offsets = [0, 0], sizes = [6, 12], strides = [1, 1]} : vector<6x100xf32> to vector<6x12xf32>
    %543 = tpu.concatenate %541, %542 in 1 : vector<6x88xf32>, vector<6x12xf32> -> vector<6x100xf32>
    %544 = arith.addf %539, %543 : vector<6x100xf32>
    %c84_297 = arith.constant 84 : index
    %c0_298 = arith.constant 0 : index
    %545 = vector.load %arg7[%c84_297, %c0_298] : memref<96x100xf32, #tpu.memory_space<vmem>>, vector<6x100xf32>
    %546 = vector.extract_strided_slice %545 {offsets = [0, 21], sizes = [6, 79], strides = [1, 1]} : vector<6x100xf32> to vector<6x79xf32>
    %547 = vector.extract_strided_slice %545 {offsets = [0, 0], sizes = [6, 21], strides = [1, 1]} : vector<6x100xf32> to vector<6x21xf32>
    %548 = tpu.concatenate %546, %547 in 1 : vector<6x79xf32>, vector<6x21xf32> -> vector<6x100xf32>
    %549 = arith.addf %544, %548 : vector<6x100xf32>
    %c90_299 = arith.constant 90 : index
    %c0_300 = arith.constant 0 : index
    %550 = vector.load %arg7[%c90_299, %c0_300] : memref<96x100xf32, #tpu.memory_space<vmem>>, vector<6x100xf32>
    %551 = vector.extract_strided_slice %550 {offsets = [0, 22], sizes = [6, 78], strides = [1, 1]} : vector<6x100xf32> to vector<6x78xf32>
    %552 = vector.extract_strided_slice %550 {offsets = [0, 0], sizes = [6, 22], strides = [1, 1]} : vector<6x100xf32> to vector<6x22xf32>
    %553 = tpu.concatenate %551, %552 in 1 : vector<6x78xf32>, vector<6x22xf32> -> vector<6x100xf32>
    %554 = arith.addf %549, %553 : vector<6x100xf32>
    %555 = vector.broadcast %5 : vector<6x1xf32> to vector<6x100xf32>
    %556 = arith.addf %554, %555 : vector<6x100xf32>
    %c3_301 = arith.constant 3 : index
    %c0_302 = arith.constant 0 : index
    %c0_303 = arith.constant 0 : index
    %557 = vector.load %arg8[%c3_301, %c0_302, %c0_303] : memref<4x6x100xf32, #tpu.memory_space<vmem>>, vector<1x6x100xf32>
    %558 = vector.shape_cast %557 : vector<1x6x100xf32> to vector<6x100xf32>
    %559 = vector.shape_cast %556 : vector<6x100xf32> to vector<1x6x100xf32>
    tpu.vector_store %arg8[%c3_301, %c0_302, %c0_303], %559 {strides = array<i32>} : memref<4x6x100xf32, #tpu.memory_space<vmem>>, vector<1x6x100xf32>,
    %c0_304 = arith.constant 0 : index
    %c0_305 = arith.constant 0 : index
    %c0_306 = arith.constant 0 : index
    %560 = vector.load %arg8[%c0_304, %c0_305, %c0_306] : memref<4x6x100xf32, #tpu.memory_space<vmem>>, vector<1x6x100xf32>
    %561 = vector.shape_cast %560 : vector<1x6x100xf32> to vector<6x100xf32>
    %c1_307 = arith.constant 1 : index
    %c0_308 = arith.constant 0 : index
    %c0_309 = arith.constant 0 : index
    %562 = vector.load %arg8[%c1_307, %c0_308, %c0_309] : memref<4x6x100xf32, #tpu.memory_space<vmem>>, vector<1x6x100xf32>
    %563 = vector.shape_cast %562 : vector<1x6x100xf32> to vector<6x100xf32>
    %564 = vector.extract_strided_slice %563 {offsets = [0, 99], sizes = [6, 1], strides = [1, 1]} : vector<6x100xf32> to vector<6x1xf32>
    %565 = vector.extract_strided_slice %563 {offsets = [0, 0], sizes = [6, 99], strides = [1, 1]} : vector<6x100xf32> to vector<6x99xf32>
    %566 = tpu.concatenate %564, %565 in 1 : vector<6x1xf32>, vector<6x99xf32> -> vector<6x100xf32>
    %567 = vector.broadcast %7 : vector<1x100xf32> to vector<6x100xf32>
    %568 = arith.mulf %567, %561 : vector<6x100xf32>
    %cst_310 = arith.constant 1.000000e+00 : f32
    %569 = vector.broadcast %cst_310 : f32 to vector<1x100xf32>
    %570 = arith.subf %569, %7 : vector<1x100xf32>
    %571 = vector.broadcast %570 : vector<1x100xf32> to vector<6x100xf32>
    %572 = arith.mulf %571, %566 : vector<6x100xf32>
    %573 = arith.addf %568, %572 : vector<6x100xf32>
    %574 = vector.extract_strided_slice %561 {offsets = [0, 1], sizes = [6, 99], strides = [1, 1]} : vector<6x100xf32> to vector<6x99xf32>
    %575 = vector.extract_strided_slice %561 {offsets = [0, 0], sizes = [6, 1], strides = [1, 1]} : vector<6x100xf32> to vector<6x1xf32>
    %576 = tpu.concatenate %574, %575 in 1 : vector<6x99xf32>, vector<6x1xf32> -> vector<6x100xf32>
    %577 = vector.broadcast %9 : vector<1x100xf32> to vector<6x100xf32>
    %578 = arith.mulf %577, %563 : vector<6x100xf32>
    %cst_311 = arith.constant 1.000000e+00 : f32
    %579 = vector.broadcast %cst_311 : f32 to vector<1x100xf32>
    %580 = arith.subf %579, %9 : vector<1x100xf32>
    %581 = vector.broadcast %580 : vector<1x100xf32> to vector<6x100xf32>
    %582 = arith.mulf %581, %576 : vector<6x100xf32>
    %583 = arith.addf %578, %582 : vector<6x100xf32>
    %cst_312 = arith.constant 2.500000e-01 : f32
    %584 = vector.broadcast %cst_312 : f32 to vector<6x100xf32>
    %585 = arith.mulf %584, %573 : vector<6x100xf32>
    %cst_313 = arith.constant 7.500000e-01 : f32
    %586 = vector.broadcast %cst_313 : f32 to vector<6x100xf32>
    %587 = arith.mulf %586, %561 : vector<6x100xf32>
    %588 = arith.addf %585, %587 : vector<6x100xf32>
    %c0_314 = arith.constant 0 : index
    %c0_315 = arith.constant 0 : index
    %c0_316 = arith.constant 0 : index
    %c0_317 = arith.constant 0 : index
    %589 = vector.load %arg9[%c0_314, %c0_315, %c0_316, %c0_317] : memref<2x4x6x100xf32, #tpu.memory_space<vmem>>, vector<1x1x6x100xf32>
    %590 = vector.shape_cast %589 : vector<1x1x6x100xf32> to vector<6x100xf32>
    %591 = vector.shape_cast %588 : vector<6x100xf32> to vector<1x1x6x100xf32>
    tpu.vector_store %arg9[%c0_314, %c0_315, %c0_316, %c0_317], %591 {strides = array<i32>} : memref<2x4x6x100xf32, #tpu.memory_space<vmem>>, vector<1x1x6x100xf32>,
    %cst_318 = arith.constant 7.500000e-01 : f32
    %592 = vector.broadcast %cst_318 : f32 to vector<6x100xf32>
    %593 = arith.mulf %592, %561 : vector<6x100xf32>
    %cst_319 = arith.constant 2.500000e-01 : f32
    %594 = vector.broadcast %cst_319 : f32 to vector<6x100xf32>
    %595 = arith.mulf %594, %563 : vector<6x100xf32>
    %596 = arith.addf %593, %595 : vector<6x100xf32>
    %c0_320 = arith.constant 0 : index
    %c1_321 = arith.constant 1 : index
    %c0_322 = arith.constant 0 : index
    %c0_323 = arith.constant 0 : index
    %597 = vector.load %arg9[%c0_320, %c1_321, %c0_322, %c0_323] : memref<2x4x6x100xf32, #tpu.memory_space<vmem>>, vector<1x1x6x100xf32>
    %598 = vector.shape_cast %597 : vector<1x1x6x100xf32> to vector<6x100xf32>
    %599 = vector.shape_cast %596 : vector<6x100xf32> to vector<1x1x6x100xf32>
    tpu.vector_store %arg9[%c0_320, %c1_321, %c0_322, %c0_323], %599 {strides = array<i32>} : memref<2x4x6x100xf32, #tpu.memory_space<vmem>>, vector<1x1x6x100xf32>,
    %cst_324 = arith.constant 2.500000e-01 : f32
    %600 = vector.broadcast %cst_324 : f32 to vector<6x100xf32>
    %601 = arith.mulf %600, %561 : vector<6x100xf32>
    %cst_325 = arith.constant 7.500000e-01 : f32
    %602 = vector.broadcast %cst_325 : f32 to vector<6x100xf32>
    %603 = arith.mulf %602, %563 : vector<6x100xf32>
    %604 = arith.addf %601, %603 : vector<6x100xf32>
    %c0_326 = arith.constant 0 : index
    %c2_327 = arith.constant 2 : index
    %c0_328 = arith.constant 0 : index
    %c0_329 = arith.constant 0 : index
    %605 = vector.load %arg9[%c0_326, %c2_327, %c0_328, %c0_329] : memref<2x4x6x100xf32, #tpu.memory_space<vmem>>, vector<1x1x6x100xf32>
    %606 = vector.shape_cast %605 : vector<1x1x6x100xf32> to vector<6x100xf32>
    %607 = vector.shape_cast %604 : vector<6x100xf32> to vector<1x1x6x100xf32>
    tpu.vector_store %arg9[%c0_326, %c2_327, %c0_328, %c0_329], %607 {strides = array<i32>} : memref<2x4x6x100xf32, #tpu.memory_space<vmem>>, vector<1x1x6x100xf32>,
    %cst_330 = arith.constant 7.500000e-01 : f32
    %608 = vector.broadcast %cst_330 : f32 to vector<6x100xf32>
    %609 = arith.mulf %608, %563 : vector<6x100xf32>
    %cst_331 = arith.constant 2.500000e-01 : f32
    %610 = vector.broadcast %cst_331 : f32 to vector<6x100xf32>
    %611 = arith.mulf %610, %583 : vector<6x100xf32>
    %612 = arith.addf %609, %611 : vector<6x100xf32>
    %c0_332 = arith.constant 0 : index
    %c3_333 = arith.constant 3 : index
    %c0_334 = arith.constant 0 : index
    %c0_335 = arith.constant 0 : index
    %613 = vector.load %arg9[%c0_332, %c3_333, %c0_334, %c0_335] : memref<2x4x6x100xf32, #tpu.memory_space<vmem>>, vector<1x1x6x100xf32>
    %614 = vector.shape_cast %613 : vector<1x1x6x100xf32> to vector<6x100xf32>
    %615 = vector.shape_cast %612 : vector<6x100xf32> to vector<1x1x6x100xf32>
    tpu.vector_store %arg9[%c0_332, %c3_333, %c0_334, %c0_335], %615 {strides = array<i32>} : memref<2x4x6x100xf32, #tpu.memory_space<vmem>>, vector<1x1x6x100xf32>,
    %c2_336 = arith.constant 2 : index
    %c0_337 = arith.constant 0 : index
    %c0_338 = arith.constant 0 : index
    %616 = vector.load %arg8[%c2_336, %c0_337, %c0_338] : memref<4x6x100xf32, #tpu.memory_space<vmem>>, vector<1x6x100xf32>
    %617 = vector.shape_cast %616 : vector<1x6x100xf32> to vector<6x100xf32>
    %c3_339 = arith.constant 3 : index
    %c0_340 = arith.constant 0 : index
    %c0_341 = arith.constant 0 : index
    %618 = vector.load %arg8[%c3_339, %c0_340, %c0_341] : memref<4x6x100xf32, #tpu.memory_space<vmem>>, vector<1x6x100xf32>
    %619 = vector.shape_cast %618 : vector<1x6x100xf32> to vector<6x100xf32>
    %620 = vector.extract_strided_slice %619 {offsets = [0, 99], sizes = [6, 1], strides = [1, 1]} : vector<6x100xf32> to vector<6x1xf32>
    %621 = vector.extract_strided_slice %619 {offsets = [0, 0], sizes = [6, 99], strides = [1, 1]} : vector<6x100xf32> to vector<6x99xf32>
    %622 = tpu.concatenate %620, %621 in 1 : vector<6x1xf32>, vector<6x99xf32> -> vector<6x100xf32>
    %623 = vector.broadcast %7 : vector<1x100xf32> to vector<6x100xf32>
    %624 = arith.mulf %623, %617 : vector<6x100xf32>
    %cst_342 = arith.constant 1.000000e+00 : f32
    %625 = vector.broadcast %cst_342 : f32 to vector<1x100xf32>
    %626 = arith.subf %625, %7 : vector<1x100xf32>
    %627 = vector.broadcast %626 : vector<1x100xf32> to vector<6x100xf32>
    %628 = arith.mulf %627, %622 : vector<6x100xf32>
    %629 = arith.addf %624, %628 : vector<6x100xf32>
    %630 = vector.extract_strided_slice %617 {offsets = [0, 1], sizes = [6, 99], strides = [1, 1]} : vector<6x100xf32> to vector<6x99xf32>
    %631 = vector.extract_strided_slice %617 {offsets = [0, 0], sizes = [6, 1], strides = [1, 1]} : vector<6x100xf32> to vector<6x1xf32>
    %632 = tpu.concatenate %630, %631 in 1 : vector<6x99xf32>, vector<6x1xf32> -> vector<6x100xf32>
    %633 = vector.broadcast %9 : vector<1x100xf32> to vector<6x100xf32>
    %634 = arith.mulf %633, %619 : vector<6x100xf32>
    %cst_343 = arith.constant 1.000000e+00 : f32
    %635 = vector.broadcast %cst_343 : f32 to vector<1x100xf32>
    %636 = arith.subf %635, %9 : vector<1x100xf32>
    %637 = vector.broadcast %636 : vector<1x100xf32> to vector<6x100xf32>
    %638 = arith.mulf %637, %632 : vector<6x100xf32>
    %639 = arith.addf %634, %638 : vector<6x100xf32>
    %cst_344 = arith.constant 2.500000e-01 : f32
    %640 = vector.broadcast %cst_344 : f32 to vector<6x100xf32>
    %641 = arith.mulf %640, %629 : vector<6x100xf32>
    %cst_345 = arith.constant 7.500000e-01 : f32
    %642 = vector.broadcast %cst_345 : f32 to vector<6x100xf32>
    %643 = arith.mulf %642, %617 : vector<6x100xf32>
    %644 = arith.addf %641, %643 : vector<6x100xf32>
    %c1_346 = arith.constant 1 : index
    %c0_347 = arith.constant 0 : index
    %c0_348 = arith.constant 0 : index
    %c0_349 = arith.constant 0 : index
    %645 = vector.load %arg9[%c1_346, %c0_347, %c0_348, %c0_349] : memref<2x4x6x100xf32, #tpu.memory_space<vmem>>, vector<1x1x6x100xf32>
    %646 = vector.shape_cast %645 : vector<1x1x6x100xf32> to vector<6x100xf32>
    %647 = vector.shape_cast %644 : vector<6x100xf32> to vector<1x1x6x100xf32>
    tpu.vector_store %arg9[%c1_346, %c0_347, %c0_348, %c0_349], %647 {strides = array<i32>} : memref<2x4x6x100xf32, #tpu.memory_space<vmem>>, vector<1x1x6x100xf32>,
    %cst_350 = arith.constant 7.500000e-01 : f32
    %648 = vector.broadcast %cst_350 : f32 to vector<6x100xf32>
    %649 = arith.mulf %648, %617 : vector<6x100xf32>
    %cst_351 = arith.constant 2.500000e-01 : f32
    %650 = vector.broadcast %cst_351 : f32 to vector<6x100xf32>
    %651 = arith.mulf %650, %619 : vector<6x100xf32>
    %652 = arith.addf %649, %651 : vector<6x100xf32>
    %c1_352 = arith.constant 1 : index
    %c1_353 = arith.constant 1 : index
    %c0_354 = arith.constant 0 : index
    %c0_355 = arith.constant 0 : index
    %653 = vector.load %arg9[%c1_352, %c1_353, %c0_354, %c0_355] : memref<2x4x6x100xf32, #tpu.memory_space<vmem>>, vector<1x1x6x100xf32>
    %654 = vector.shape_cast %653 : vector<1x1x6x100xf32> to vector<6x100xf32>
    %655 = vector.shape_cast %652 : vector<6x100xf32> to vector<1x1x6x100xf32>
    tpu.vector_store %arg9[%c1_352, %c1_353, %c0_354, %c0_355], %655 {strides = array<i32>} : memref<2x4x6x100xf32, #tpu.memory_space<vmem>>, vector<1x1x6x100xf32>,
    %cst_356 = arith.constant 2.500000e-01 : f32
    %656 = vector.broadcast %cst_356 : f32 to vector<6x100xf32>
    %657 = arith.mulf %656, %617 : vector<6x100xf32>
    %cst_357 = arith.constant 7.500000e-01 : f32
    %658 = vector.broadcast %cst_357 : f32 to vector<6x100xf32>
    %659 = arith.mulf %658, %619 : vector<6x100xf32>
    %660 = arith.addf %657, %659 : vector<6x100xf32>
    %c1_358 = arith.constant 1 : index
    %c2_359 = arith.constant 2 : index
    %c0_360 = arith.constant 0 : index
    %c0_361 = arith.constant 0 : index
    %661 = vector.load %arg9[%c1_358, %c2_359, %c0_360, %c0_361] : memref<2x4x6x100xf32, #tpu.memory_space<vmem>>, vector<1x1x6x100xf32>
    %662 = vector.shape_cast %661 : vector<1x1x6x100xf32> to vector<6x100xf32>
    %663 = vector.shape_cast %660 : vector<6x100xf32> to vector<1x1x6x100xf32>
    tpu.vector_store %arg9[%c1_358, %c2_359, %c0_360, %c0_361], %663 {strides = array<i32>} : memref<2x4x6x100xf32, #tpu.memory_space<vmem>>, vector<1x1x6x100xf32>,
    %cst_362 = arith.constant 7.500000e-01 : f32
    %664 = vector.broadcast %cst_362 : f32 to vector<6x100xf32>
    %665 = arith.mulf %664, %619 : vector<6x100xf32>
    %cst_363 = arith.constant 2.500000e-01 : f32
    %666 = vector.broadcast %cst_363 : f32 to vector<6x100xf32>
    %667 = arith.mulf %666, %639 : vector<6x100xf32>
    %668 = arith.addf %665, %667 : vector<6x100xf32>
    %c1_364 = arith.constant 1 : index
    %c3_365 = arith.constant 3 : index
    %c0_366 = arith.constant 0 : index
    %c0_367 = arith.constant 0 : index
    %669 = vector.load %arg9[%c1_364, %c3_365, %c0_366, %c0_367] : memref<2x4x6x100xf32, #tpu.memory_space<vmem>>, vector<1x1x6x100xf32>
    %670 = vector.shape_cast %669 : vector<1x1x6x100xf32> to vector<6x100xf32>
    %671 = vector.shape_cast %668 : vector<6x100xf32> to vector<1x1x6x100xf32>
    tpu.vector_store %arg9[%c1_364, %c3_365, %c0_366, %c0_367], %671 {strides = array<i32>} : memref<2x4x6x100xf32, #tpu.memory_space<vmem>>, vector<1x1x6x100xf32>,
    %c0_368 = arith.constant 0 : index
    %c0_369 = arith.constant 0 : index
    %c0_370 = arith.constant 0 : index
    %c0_371 = arith.constant 0 : index
    %672 = vector.load %arg9[%c0_368, %c0_369, %c0_370, %c0_371] : memref<2x4x6x100xf32, #tpu.memory_space<vmem>>, vector<1x1x6x100xf32>
    %673 = vector.shape_cast %672 : vector<1x1x6x100xf32> to vector<6x100xf32>
    %c1_372 = arith.constant 1 : index
    %c0_373 = arith.constant 0 : index
    %c0_374 = arith.constant 0 : index
    %c0_375 = arith.constant 0 : index
    %674 = vector.load %arg9[%c1_372, %c0_373, %c0_374, %c0_375] : memref<2x4x6x100xf32, #tpu.memory_space<vmem>>, vector<1x1x6x100xf32>
    %675 = vector.shape_cast %674 : vector<1x1x6x100xf32> to vector<6x100xf32>
    %676 = vector.extract_strided_slice %675 {offsets = [0, 90], sizes = [6, 10], strides = [1, 1]} : vector<6x100xf32> to vector<6x10xf32>
    %677 = vector.extract_strided_slice %675 {offsets = [0, 0], sizes = [6, 90], strides = [1, 1]} : vector<6x100xf32> to vector<6x90xf32>
    %678 = tpu.concatenate %676, %677 in 1 : vector<6x10xf32>, vector<6x90xf32> -> vector<6x100xf32>
    %679 = vector.broadcast %11 : vector<1x100xf32> to vector<6x100xf32>
    %680 = arith.mulf %679, %673 : vector<6x100xf32>
    %cst_376 = arith.constant 1.000000e+00 : f32
    %681 = vector.broadcast %cst_376 : f32 to vector<1x100xf32>
    %682 = arith.subf %681, %11 : vector<1x100xf32>
    %683 = vector.broadcast %682 : vector<1x100xf32> to vector<6x100xf32>
    %684 = arith.mulf %683, %678 : vector<6x100xf32>
    %685 = arith.addf %680, %684 : vector<6x100xf32>
    %686 = vector.extract_strided_slice %673 {offsets = [0, 10], sizes = [6, 90], strides = [1, 1]} : vector<6x100xf32> to vector<6x90xf32>
    %687 = vector.extract_strided_slice %673 {offsets = [0, 0], sizes = [6, 10], strides = [1, 1]} : vector<6x100xf32> to vector<6x10xf32>
    %688 = tpu.concatenate %686, %687 in 1 : vector<6x90xf32>, vector<6x10xf32> -> vector<6x100xf32>
    %689 = vector.broadcast %13 : vector<1x100xf32> to vector<6x100xf32>
    %690 = arith.mulf %689, %675 : vector<6x100xf32>
    %cst_377 = arith.constant 1.000000e+00 : f32
    %691 = vector.broadcast %cst_377 : f32 to vector<1x100xf32>
    %692 = arith.subf %691, %13 : vector<1x100xf32>
    %693 = vector.broadcast %692 : vector<1x100xf32> to vector<6x100xf32>
    %694 = arith.mulf %693, %688 : vector<6x100xf32>
    %695 = arith.addf %690, %694 : vector<6x100xf32>
    %cst_378 = arith.constant 2.500000e-01 : f32
    %696 = vector.broadcast %cst_378 : f32 to vector<6x100xf32>
    %697 = arith.mulf %696, %685 : vector<6x100xf32>
    %cst_379 = arith.constant 7.500000e-01 : f32
    %698 = vector.broadcast %cst_379 : f32 to vector<6x100xf32>
    %699 = arith.mulf %698, %673 : vector<6x100xf32>
    %700 = arith.addf %697, %699 : vector<6x100xf32>
    %701 = vector.extract_strided_slice %700 {offsets = [0, 0], sizes = [6, 80], strides = [1, 1]} : vector<6x100xf32> to vector<6x80xf32>
    %c0_380 = arith.constant 0 : index
    %c1_381 = arith.constant 1 : index
    %c0_382 = arith.constant 0 : index
    %c0_383 = arith.constant 0 : index
    %c0_384 = arith.constant 0 : index
    %702 = vector.load %arg6[%c0_380, %c1_381, %c0_382, %c0_383, %c0_384] : memref<1x2x16x6x80xf32, #tpu.memory_space<vmem>>, vector<1x1x1x6x80xf32>
    %703 = vector.shape_cast %702 : vector<1x1x1x6x80xf32> to vector<6x80xf32>
    %704 = vector.shape_cast %701 : vector<6x80xf32> to vector<1x1x1x6x80xf32>
    tpu.vector_store %arg6[%c0_380, %c1_381, %c0_382, %c0_383, %c0_384], %704 {strides = array<i32>} : memref<1x2x16x6x80xf32, #tpu.memory_space<vmem>>, vector<1x1x1x6x80xf32>,
    %cst_385 = arith.constant 7.500000e-01 : f32
    %705 = vector.broadcast %cst_385 : f32 to vector<6x100xf32>
    %706 = arith.mulf %705, %673 : vector<6x100xf32>
    %cst_386 = arith.constant 2.500000e-01 : f32
    %707 = vector.broadcast %cst_386 : f32 to vector<6x100xf32>
    %708 = arith.mulf %707, %675 : vector<6x100xf32>
    %709 = arith.addf %706, %708 : vector<6x100xf32>
    %710 = vector.extract_strided_slice %709 {offsets = [0, 0], sizes = [6, 80], strides = [1, 1]} : vector<6x100xf32> to vector<6x80xf32>
    %c0_387 = arith.constant 0 : index
    %c1_388 = arith.constant 1 : index
    %c4_389 = arith.constant 4 : index
    %c0_390 = arith.constant 0 : index
    %c0_391 = arith.constant 0 : index
    %711 = vector.load %arg6[%c0_387, %c1_388, %c4_389, %c0_390, %c0_391] : memref<1x2x16x6x80xf32, #tpu.memory_space<vmem>>, vector<1x1x1x6x80xf32>
    %712 = vector.shape_cast %711 : vector<1x1x1x6x80xf32> to vector<6x80xf32>
    %713 = vector.shape_cast %710 : vector<6x80xf32> to vector<1x1x1x6x80xf32>
    tpu.vector_store %arg6[%c0_387, %c1_388, %c4_389, %c0_390, %c0_391], %713 {strides = array<i32>} : memref<1x2x16x6x80xf32, #tpu.memory_space<vmem>>, vector<1x1x1x6x80xf32>,
    %cst_392 = arith.constant 2.500000e-01 : f32
    %714 = vector.broadcast %cst_392 : f32 to vector<6x100xf32>
    %715 = arith.mulf %714, %673 : vector<6x100xf32>
    %cst_393 = arith.constant 7.500000e-01 : f32
    %716 = vector.broadcast %cst_393 : f32 to vector<6x100xf32>
    %717 = arith.mulf %716, %675 : vector<6x100xf32>
    %718 = arith.addf %715, %717 : vector<6x100xf32>
    %719 = vector.extract_strided_slice %718 {offsets = [0, 0], sizes = [6, 80], strides = [1, 1]} : vector<6x100xf32> to vector<6x80xf32>
    %c0_394 = arith.constant 0 : index
    %c1_395 = arith.constant 1 : index
    %c8_396 = arith.constant 8 : index
    %c0_397 = arith.constant 0 : index
    %c0_398 = arith.constant 0 : index
    %720 = vector.load %arg6[%c0_394, %c1_395, %c8_396, %c0_397, %c0_398] : memref<1x2x16x6x80xf32, #tpu.memory_space<vmem>>, vector<1x1x1x6x80xf32>
    %721 = vector.shape_cast %720 : vector<1x1x1x6x80xf32> to vector<6x80xf32>
    %722 = vector.shape_cast %719 : vector<6x80xf32> to vector<1x1x1x6x80xf32>
    tpu.vector_store %arg6[%c0_394, %c1_395, %c8_396, %c0_397, %c0_398], %722 {strides = array<i32>} : memref<1x2x16x6x80xf32, #tpu.memory_space<vmem>>, vector<1x1x1x6x80xf32>,
    %cst_399 = arith.constant 7.500000e-01 : f32
    %723 = vector.broadcast %cst_399 : f32 to vector<6x100xf32>
    %724 = arith.mulf %723, %675 : vector<6x100xf32>
    %cst_400 = arith.constant 2.500000e-01 : f32
    %725 = vector.broadcast %cst_400 : f32 to vector<6x100xf32>
    %726 = arith.mulf %725, %695 : vector<6x100xf32>
    %727 = arith.addf %724, %726 : vector<6x100xf32>
    %728 = vector.extract_strided_slice %727 {offsets = [0, 0], sizes = [6, 80], strides = [1, 1]} : vector<6x100xf32> to vector<6x80xf32>
    %c0_401 = arith.constant 0 : index
    %c1_402 = arith.constant 1 : index
    %c12_403 = arith.constant 12 : index
    %c0_404 = arith.constant 0 : index
    %c0_405 = arith.constant 0 : index
    %729 = vector.load %arg6[%c0_401, %c1_402, %c12_403, %c0_404, %c0_405] : memref<1x2x16x6x80xf32, #tpu.memory_space<vmem>>, vector<1x1x1x6x80xf32>
    %730 = vector.shape_cast %729 : vector<1x1x1x6x80xf32> to vector<6x80xf32>
    %731 = vector.shape_cast %728 : vector<6x80xf32> to vector<1x1x1x6x80xf32>
    tpu.vector_store %arg6[%c0_401, %c1_402, %c12_403, %c0_404, %c0_405], %731 {strides = array<i32>} : memref<1x2x16x6x80xf32, #tpu.memory_space<vmem>>, vector<1x1x1x6x80xf32>,
    %c0_406 = arith.constant 0 : index
    %c1_407 = arith.constant 1 : index
    %c0_408 = arith.constant 0 : index
    %c0_409 = arith.constant 0 : index
    %732 = vector.load %arg9[%c0_406, %c1_407, %c0_408, %c0_409] : memref<2x4x6x100xf32, #tpu.memory_space<vmem>>, vector<1x1x6x100xf32>
    %733 = vector.shape_cast %732 : vector<1x1x6x100xf32> to vector<6x100xf32>
    %c1_410 = arith.constant 1 : index
    %c1_411 = arith.constant 1 : index
    %c0_412 = arith.constant 0 : index
    %c0_413 = arith.constant 0 : index
    %734 = vector.load %arg9[%c1_410, %c1_411, %c0_412, %c0_413] : memref<2x4x6x100xf32, #tpu.memory_space<vmem>>, vector<1x1x6x100xf32>
    %735 = vector.shape_cast %734 : vector<1x1x6x100xf32> to vector<6x100xf32>
    %736 = vector.extract_strided_slice %735 {offsets = [0, 90], sizes = [6, 10], strides = [1, 1]} : vector<6x100xf32> to vector<6x10xf32>
    %737 = vector.extract_strided_slice %735 {offsets = [0, 0], sizes = [6, 90], strides = [1, 1]} : vector<6x100xf32> to vector<6x90xf32>
    %738 = tpu.concatenate %736, %737 in 1 : vector<6x10xf32>, vector<6x90xf32> -> vector<6x100xf32>
    %739 = vector.broadcast %11 : vector<1x100xf32> to vector<6x100xf32>
    %740 = arith.mulf %739, %733 : vector<6x100xf32>
    %cst_414 = arith.constant 1.000000e+00 : f32
    %741 = vector.broadcast %cst_414 : f32 to vector<1x100xf32>
    %742 = arith.subf %741, %11 : vector<1x100xf32>
    %743 = vector.broadcast %742 : vector<1x100xf32> to vector<6x100xf32>
    %744 = arith.mulf %743, %738 : vector<6x100xf32>
    %745 = arith.addf %740, %744 : vector<6x100xf32>
    %746 = vector.extract_strided_slice %733 {offsets = [0, 10], sizes = [6, 90], strides = [1, 1]} : vector<6x100xf32> to vector<6x90xf32>
    %747 = vector.extract_strided_slice %733 {offsets = [0, 0], sizes = [6, 10], strides = [1, 1]} : vector<6x100xf32> to vector<6x10xf32>
    %748 = tpu.concatenate %746, %747 in 1 : vector<6x90xf32>, vector<6x10xf32> -> vector<6x100xf32>
    %749 = vector.broadcast %13 : vector<1x100xf32> to vector<6x100xf32>
    %750 = arith.mulf %749, %735 : vector<6x100xf32>
    %cst_415 = arith.constant 1.000000e+00 : f32
    %751 = vector.broadcast %cst_415 : f32 to vector<1x100xf32>
    %752 = arith.subf %751, %13 : vector<1x100xf32>
    %753 = vector.broadcast %752 : vector<1x100xf32> to vector<6x100xf32>
    %754 = arith.mulf %753, %748 : vector<6x100xf32>
    %755 = arith.addf %750, %754 : vector<6x100xf32>
    %cst_416 = arith.constant 2.500000e-01 : f32
    %756 = vector.broadcast %cst_416 : f32 to vector<6x100xf32>
    %757 = arith.mulf %756, %745 : vector<6x100xf32>
    %cst_417 = arith.constant 7.500000e-01 : f32
    %758 = vector.broadcast %cst_417 : f32 to vector<6x100xf32>
    %759 = arith.mulf %758, %733 : vector<6x100xf32>
    %760 = arith.addf %757, %759 : vector<6x100xf32>
    %761 = vector.extract_strided_slice %760 {offsets = [0, 0], sizes = [6, 80], strides = [1, 1]} : vector<6x100xf32> to vector<6x80xf32>
    %c0_418 = arith.constant 0 : index
    %c1_419 = arith.constant 1 : index
    %c1_420 = arith.constant 1 : index
    %c0_421 = arith.constant 0 : index
    %c0_422 = arith.constant 0 : index
    %762 = vector.load %arg6[%c0_418, %c1_419, %c1_420, %c0_421, %c0_422] : memref<1x2x16x6x80xf32, #tpu.memory_space<vmem>>, vector<1x1x1x6x80xf32>
    %763 = vector.shape_cast %762 : vector<1x1x1x6x80xf32> to vector<6x80xf32>
    %764 = vector.shape_cast %761 : vector<6x80xf32> to vector<1x1x1x6x80xf32>
    tpu.vector_store %arg6[%c0_418, %c1_419, %c1_420, %c0_421, %c0_422], %764 {strides = array<i32>} : memref<1x2x16x6x80xf32, #tpu.memory_space<vmem>>, vector<1x1x1x6x80xf32>,
    %cst_423 = arith.constant 7.500000e-01 : f32
    %765 = vector.broadcast %cst_423 : f32 to vector<6x100xf32>
    %766 = arith.mulf %765, %733 : vector<6x100xf32>
    %cst_424 = arith.constant 2.500000e-01 : f32
    %767 = vector.broadcast %cst_424 : f32 to vector<6x100xf32>
    %768 = arith.mulf %767, %735 : vector<6x100xf32>
    %769 = arith.addf %766, %768 : vector<6x100xf32>
    %770 = vector.extract_strided_slice %769 {offsets = [0, 0], sizes = [6, 80], strides = [1, 1]} : vector<6x100xf32> to vector<6x80xf32>
    %c0_425 = arith.constant 0 : index
    %c1_426 = arith.constant 1 : index
    %c5_427 = arith.constant 5 : index
    %c0_428 = arith.constant 0 : index
    %c0_429 = arith.constant 0 : index
    %771 = vector.load %arg6[%c0_425, %c1_426, %c5_427, %c0_428, %c0_429] : memref<1x2x16x6x80xf32, #tpu.memory_space<vmem>>, vector<1x1x1x6x80xf32>
    %772 = vector.shape_cast %771 : vector<1x1x1x6x80xf32> to vector<6x80xf32>
    %773 = vector.shape_cast %770 : vector<6x80xf32> to vector<1x1x1x6x80xf32>
    tpu.vector_store %arg6[%c0_425, %c1_426, %c5_427, %c0_428, %c0_429], %773 {strides = array<i32>} : memref<1x2x16x6x80xf32, #tpu.memory_space<vmem>>, vector<1x1x1x6x80xf32>,
    %cst_430 = arith.constant 2.500000e-01 : f32
    %774 = vector.broadcast %cst_430 : f32 to vector<6x100xf32>
    %775 = arith.mulf %774, %733 : vector<6x100xf32>
    %cst_431 = arith.constant 7.500000e-01 : f32
    %776 = vector.broadcast %cst_431 : f32 to vector<6x100xf32>
    %777 = arith.mulf %776, %735 : vector<6x100xf32>
    %778 = arith.addf %775, %777 : vector<6x100xf32>
    %779 = vector.extract_strided_slice %778 {offsets = [0, 0], sizes = [6, 80], strides = [1, 1]} : vector<6x100xf32> to vector<6x80xf32>
    %c0_432 = arith.constant 0 : index
    %c1_433 = arith.constant 1 : index
    %c9_434 = arith.constant 9 : index
    %c0_435 = arith.constant 0 : index
    %c0_436 = arith.constant 0 : index
    %780 = vector.load %arg6[%c0_432, %c1_433, %c9_434, %c0_435, %c0_436] : memref<1x2x16x6x80xf32, #tpu.memory_space<vmem>>, vector<1x1x1x6x80xf32>
    %781 = vector.shape_cast %780 : vector<1x1x1x6x80xf32> to vector<6x80xf32>
    %782 = vector.shape_cast %779 : vector<6x80xf32> to vector<1x1x1x6x80xf32>
    tpu.vector_store %arg6[%c0_432, %c1_433, %c9_434, %c0_435, %c0_436], %782 {strides = array<i32>} : memref<1x2x16x6x80xf32, #tpu.memory_space<vmem>>, vector<1x1x1x6x80xf32>,
    %cst_437 = arith.constant 7.500000e-01 : f32
    %783 = vector.broadcast %cst_437 : f32 to vector<6x100xf32>
    %784 = arith.mulf %783, %735 : vector<6x100xf32>
    %cst_438 = arith.constant 2.500000e-01 : f32
    %785 = vector.broadcast %cst_438 : f32 to vector<6x100xf32>
    %786 = arith.mulf %785, %755 : vector<6x100xf32>
    %787 = arith.addf %784, %786 : vector<6x100xf32>
    %788 = vector.extract_strided_slice %787 {offsets = [0, 0], sizes = [6, 80], strides = [1, 1]} : vector<6x100xf32> to vector<6x80xf32>
    %c0_439 = arith.constant 0 : index
    %c1_440 = arith.constant 1 : index
    %c13_441 = arith.constant 13 : index
    %c0_442 = arith.constant 0 : index
    %c0_443 = arith.constant 0 : index
    %789 = vector.load %arg6[%c0_439, %c1_440, %c13_441, %c0_442, %c0_443] : memref<1x2x16x6x80xf32, #tpu.memory_space<vmem>>, vector<1x1x1x6x80xf32>
    %790 = vector.shape_cast %789 : vector<1x1x1x6x80xf32> to vector<6x80xf32>
    %791 = vector.shape_cast %788 : vector<6x80xf32> to vector<1x1x1x6x80xf32>
    tpu.vector_store %arg6[%c0_439, %c1_440, %c13_441, %c0_442, %c0_443], %791 {strides = array<i32>} : memref<1x2x16x6x80xf32, #tpu.memory_space<vmem>>, vector<1x1x1x6x80xf32>,
    %c0_444 = arith.constant 0 : index
    %c2_445 = arith.constant 2 : index
    %c0_446 = arith.constant 0 : index
    %c0_447 = arith.constant 0 : index
    %792 = vector.load %arg9[%c0_444, %c2_445, %c0_446, %c0_447] : memref<2x4x6x100xf32, #tpu.memory_space<vmem>>, vector<1x1x6x100xf32>
    %793 = vector.shape_cast %792 : vector<1x1x6x100xf32> to vector<6x100xf32>
    %c1_448 = arith.constant 1 : index
    %c2_449 = arith.constant 2 : index
    %c0_450 = arith.constant 0 : index
    %c0_451 = arith.constant 0 : index
    %794 = vector.load %arg9[%c1_448, %c2_449, %c0_450, %c0_451] : memref<2x4x6x100xf32, #tpu.memory_space<vmem>>, vector<1x1x6x100xf32>
    %795 = vector.shape_cast %794 : vector<1x1x6x100xf32> to vector<6x100xf32>
    %796 = vector.extract_strided_slice %795 {offsets = [0, 90], sizes = [6, 10], strides = [1, 1]} : vector<6x100xf32> to vector<6x10xf32>
    %797 = vector.extract_strided_slice %795 {offsets = [0, 0], sizes = [6, 90], strides = [1, 1]} : vector<6x100xf32> to vector<6x90xf32>
    %798 = tpu.concatenate %796, %797 in 1 : vector<6x10xf32>, vector<6x90xf32> -> vector<6x100xf32>
    %799 = vector.broadcast %11 : vector<1x100xf32> to vector<6x100xf32>
    %800 = arith.mulf %799, %793 : vector<6x100xf32>
    %cst_452 = arith.constant 1.000000e+00 : f32
    %801 = vector.broadcast %cst_452 : f32 to vector<1x100xf32>
    %802 = arith.subf %801, %11 : vector<1x100xf32>
    %803 = vector.broadcast %802 : vector<1x100xf32> to vector<6x100xf32>
    %804 = arith.mulf %803, %798 : vector<6x100xf32>
    %805 = arith.addf %800, %804 : vector<6x100xf32>
    %806 = vector.extract_strided_slice %793 {offsets = [0, 10], sizes = [6, 90], strides = [1, 1]} : vector<6x100xf32> to vector<6x90xf32>
    %807 = vector.extract_strided_slice %793 {offsets = [0, 0], sizes = [6, 10], strides = [1, 1]} : vector<6x100xf32> to vector<6x10xf32>
    %808 = tpu.concatenate %806, %807 in 1 : vector<6x90xf32>, vector<6x10xf32> -> vector<6x100xf32>
    %809 = vector.broadcast %13 : vector<1x100xf32> to vector<6x100xf32>
    %810 = arith.mulf %809, %795 : vector<6x100xf32>
    %cst_453 = arith.constant 1.000000e+00 : f32
    %811 = vector.broadcast %cst_453 : f32 to vector<1x100xf32>
    %812 = arith.subf %811, %13 : vector<1x100xf32>
    %813 = vector.broadcast %812 : vector<1x100xf32> to vector<6x100xf32>
    %814 = arith.mulf %813, %808 : vector<6x100xf32>
    %815 = arith.addf %810, %814 : vector<6x100xf32>
    %cst_454 = arith.constant 2.500000e-01 : f32
    %816 = vector.broadcast %cst_454 : f32 to vector<6x100xf32>
    %817 = arith.mulf %816, %805 : vector<6x100xf32>
    %cst_455 = arith.constant 7.500000e-01 : f32
    %818 = vector.broadcast %cst_455 : f32 to vector<6x100xf32>
    %819 = arith.mulf %818, %793 : vector<6x100xf32>
    %820 = arith.addf %817, %819 : vector<6x100xf32>
    %821 = vector.extract_strided_slice %820 {offsets = [0, 0], sizes = [6, 80], strides = [1, 1]} : vector<6x100xf32> to vector<6x80xf32>
    %c0_456 = arith.constant 0 : index
    %c1_457 = arith.constant 1 : index
    %c2_458 = arith.constant 2 : index
    %c0_459 = arith.constant 0 : index
    %c0_460 = arith.constant 0 : index
    %822 = vector.load %arg6[%c0_456, %c1_457, %c2_458, %c0_459, %c0_460] : memref<1x2x16x6x80xf32, #tpu.memory_space<vmem>>, vector<1x1x1x6x80xf32>
    %823 = vector.shape_cast %822 : vector<1x1x1x6x80xf32> to vector<6x80xf32>
    %824 = vector.shape_cast %821 : vector<6x80xf32> to vector<1x1x1x6x80xf32>
    tpu.vector_store %arg6[%c0_456, %c1_457, %c2_458, %c0_459, %c0_460], %824 {strides = array<i32>} : memref<1x2x16x6x80xf32, #tpu.memory_space<vmem>>, vector<1x1x1x6x80xf32>,
    %cst_461 = arith.constant 7.500000e-01 : f32
    %825 = vector.broadcast %cst_461 : f32 to vector<6x100xf32>
    %826 = arith.mulf %825, %793 : vector<6x100xf32>
    %cst_462 = arith.constant 2.500000e-01 : f32
    %827 = vector.broadcast %cst_462 : f32 to vector<6x100xf32>
    %828 = arith.mulf %827, %795 : vector<6x100xf32>
    %829 = arith.addf %826, %828 : vector<6x100xf32>
    %830 = vector.extract_strided_slice %829 {offsets = [0, 0], sizes = [6, 80], strides = [1, 1]} : vector<6x100xf32> to vector<6x80xf32>
    %c0_463 = arith.constant 0 : index
    %c1_464 = arith.constant 1 : index
    %c6_465 = arith.constant 6 : index
    %c0_466 = arith.constant 0 : index
    %c0_467 = arith.constant 0 : index
    %831 = vector.load %arg6[%c0_463, %c1_464, %c6_465, %c0_466, %c0_467] : memref<1x2x16x6x80xf32, #tpu.memory_space<vmem>>, vector<1x1x1x6x80xf32>
    %832 = vector.shape_cast %831 : vector<1x1x1x6x80xf32> to vector<6x80xf32>
    %833 = vector.shape_cast %830 : vector<6x80xf32> to vector<1x1x1x6x80xf32>
    tpu.vector_store %arg6[%c0_463, %c1_464, %c6_465, %c0_466, %c0_467], %833 {strides = array<i32>} : memref<1x2x16x6x80xf32, #tpu.memory_space<vmem>>, vector<1x1x1x6x80xf32>,
    %cst_468 = arith.constant 2.500000e-01 : f32
    %834 = vector.broadcast %cst_468 : f32 to vector<6x100xf32>
    %835 = arith.mulf %834, %793 : vector<6x100xf32>
    %cst_469 = arith.constant 7.500000e-01 : f32
    %836 = vector.broadcast %cst_469 : f32 to vector<6x100xf32>
    %837 = arith.mulf %836, %795 : vector<6x100xf32>
    %838 = arith.addf %835, %837 : vector<6x100xf32>
    %839 = vector.extract_strided_slice %838 {offsets = [0, 0], sizes = [6, 80], strides = [1, 1]} : vector<6x100xf32> to vector<6x80xf32>
    %c0_470 = arith.constant 0 : index
    %c1_471 = arith.constant 1 : index
    %c10_472 = arith.constant 10 : index
    %c0_473 = arith.constant 0 : index
    %c0_474 = arith.constant 0 : index
    %840 = vector.load %arg6[%c0_470, %c1_471, %c10_472, %c0_473, %c0_474] : memref<1x2x16x6x80xf32, #tpu.memory_space<vmem>>, vector<1x1x1x6x80xf32>
    %841 = vector.shape_cast %840 : vector<1x1x1x6x80xf32> to vector<6x80xf32>
    %842 = vector.shape_cast %839 : vector<6x80xf32> to vector<1x1x1x6x80xf32>
    tpu.vector_store %arg6[%c0_470, %c1_471, %c10_472, %c0_473, %c0_474], %842 {strides = array<i32>} : memref<1x2x16x6x80xf32, #tpu.memory_space<vmem>>, vector<1x1x1x6x80xf32>,
    %cst_475 = arith.constant 7.500000e-01 : f32
    %843 = vector.broadcast %cst_475 : f32 to vector<6x100xf32>
    %844 = arith.mulf %843, %795 : vector<6x100xf32>
    %cst_476 = arith.constant 2.500000e-01 : f32
    %845 = vector.broadcast %cst_476 : f32 to vector<6x100xf32>
    %846 = arith.mulf %845, %815 : vector<6x100xf32>
    %847 = arith.addf %844, %846 : vector<6x100xf32>
    %848 = vector.extract_strided_slice %847 {offsets = [0, 0], sizes = [6, 80], strides = [1, 1]} : vector<6x100xf32> to vector<6x80xf32>
    %c0_477 = arith.constant 0 : index
    %c1_478 = arith.constant 1 : index
    %c14_479 = arith.constant 14 : index
    %c0_480 = arith.constant 0 : index
    %c0_481 = arith.constant 0 : index
    %849 = vector.load %arg6[%c0_477, %c1_478, %c14_479, %c0_480, %c0_481] : memref<1x2x16x6x80xf32, #tpu.memory_space<vmem>>, vector<1x1x1x6x80xf32>
    %850 = vector.shape_cast %849 : vector<1x1x1x6x80xf32> to vector<6x80xf32>
    %851 = vector.shape_cast %848 : vector<6x80xf32> to vector<1x1x1x6x80xf32>
    tpu.vector_store %arg6[%c0_477, %c1_478, %c14_479, %c0_480, %c0_481], %851 {strides = array<i32>} : memref<1x2x16x6x80xf32, #tpu.memory_space<vmem>>, vector<1x1x1x6x80xf32>,
    %c0_482 = arith.constant 0 : index
    %c3_483 = arith.constant 3 : index
    %c0_484 = arith.constant 0 : index
    %c0_485 = arith.constant 0 : index
    %852 = vector.load %arg9[%c0_482, %c3_483, %c0_484, %c0_485] : memref<2x4x6x100xf32, #tpu.memory_space<vmem>>, vector<1x1x6x100xf32>
    %853 = vector.shape_cast %852 : vector<1x1x6x100xf32> to vector<6x100xf32>
    %c1_486 = arith.constant 1 : index
    %c3_487 = arith.constant 3 : index
    %c0_488 = arith.constant 0 : index
    %c0_489 = arith.constant 0 : index
    %854 = vector.load %arg9[%c1_486, %c3_487, %c0_488, %c0_489] : memref<2x4x6x100xf32, #tpu.memory_space<vmem>>, vector<1x1x6x100xf32>
    %855 = vector.shape_cast %854 : vector<1x1x6x100xf32> to vector<6x100xf32>
    %856 = vector.extract_strided_slice %855 {offsets = [0, 90], sizes = [6, 10], strides = [1, 1]} : vector<6x100xf32> to vector<6x10xf32>
    %857 = vector.extract_strided_slice %855 {offsets = [0, 0], sizes = [6, 90], strides = [1, 1]} : vector<6x100xf32> to vector<6x90xf32>
    %858 = tpu.concatenate %856, %857 in 1 : vector<6x10xf32>, vector<6x90xf32> -> vector<6x100xf32>
    %859 = vector.broadcast %11 : vector<1x100xf32> to vector<6x100xf32>
    %860 = arith.mulf %859, %853 : vector<6x100xf32>
    %cst_490 = arith.constant 1.000000e+00 : f32
    %861 = vector.broadcast %cst_490 : f32 to vector<1x100xf32>
    %862 = arith.subf %861, %11 : vector<1x100xf32>
    %863 = vector.broadcast %862 : vector<1x100xf32> to vector<6x100xf32>
    %864 = arith.mulf %863, %858 : vector<6x100xf32>
    %865 = arith.addf %860, %864 : vector<6x100xf32>
    %866 = vector.extract_strided_slice %853 {offsets = [0, 10], sizes = [6, 90], strides = [1, 1]} : vector<6x100xf32> to vector<6x90xf32>
    %867 = vector.extract_strided_slice %853 {offsets = [0, 0], sizes = [6, 10], strides = [1, 1]} : vector<6x100xf32> to vector<6x10xf32>
    %868 = tpu.concatenate %866, %867 in 1 : vector<6x90xf32>, vector<6x10xf32> -> vector<6x100xf32>
    %869 = vector.broadcast %13 : vector<1x100xf32> to vector<6x100xf32>
    %870 = arith.mulf %869, %855 : vector<6x100xf32>
    %cst_491 = arith.constant 1.000000e+00 : f32
    %871 = vector.broadcast %cst_491 : f32 to vector<1x100xf32>
    %872 = arith.subf %871, %13 : vector<1x100xf32>
    %873 = vector.broadcast %872 : vector<1x100xf32> to vector<6x100xf32>
    %874 = arith.mulf %873, %868 : vector<6x100xf32>
    %875 = arith.addf %870, %874 : vector<6x100xf32>
    %cst_492 = arith.constant 2.500000e-01 : f32
    %876 = vector.broadcast %cst_492 : f32 to vector<6x100xf32>
    %877 = arith.mulf %876, %865 : vector<6x100xf32>
    %cst_493 = arith.constant 7.500000e-01 : f32
    %878 = vector.broadcast %cst_493 : f32 to vector<6x100xf32>
    %879 = arith.mulf %878, %853 : vector<6x100xf32>
    %880 = arith.addf %877, %879 : vector<6x100xf32>
    %881 = vector.extract_strided_slice %880 {offsets = [0, 0], sizes = [6, 80], strides = [1, 1]} : vector<6x100xf32> to vector<6x80xf32>
    %c0_494 = arith.constant 0 : index
    %c1_495 = arith.constant 1 : index
    %c3_496 = arith.constant 3 : index
    %c0_497 = arith.constant 0 : index
    %c0_498 = arith.constant 0 : index
    %882 = vector.load %arg6[%c0_494, %c1_495, %c3_496, %c0_497, %c0_498] : memref<1x2x16x6x80xf32, #tpu.memory_space<vmem>>, vector<1x1x1x6x80xf32>
    %883 = vector.shape_cast %882 : vector<1x1x1x6x80xf32> to vector<6x80xf32>
    %884 = vector.shape_cast %881 : vector<6x80xf32> to vector<1x1x1x6x80xf32>
    tpu.vector_store %arg6[%c0_494, %c1_495, %c3_496, %c0_497, %c0_498], %884 {strides = array<i32>} : memref<1x2x16x6x80xf32, #tpu.memory_space<vmem>>, vector<1x1x1x6x80xf32>,
    %cst_499 = arith.constant 7.500000e-01 : f32
    %885 = vector.broadcast %cst_499 : f32 to vector<6x100xf32>
    %886 = arith.mulf %885, %853 : vector<6x100xf32>
    %cst_500 = arith.constant 2.500000e-01 : f32
    %887 = vector.broadcast %cst_500 : f32 to vector<6x100xf32>
    %888 = arith.mulf %887, %855 : vector<6x100xf32>
    %889 = arith.addf %886, %888 : vector<6x100xf32>
    %890 = vector.extract_strided_slice %889 {offsets = [0, 0], sizes = [6, 80], strides = [1, 1]} : vector<6x100xf32> to vector<6x80xf32>
    %c0_501 = arith.constant 0 : index
    %c1_502 = arith.constant 1 : index
    %c7_503 = arith.constant 7 : index
    %c0_504 = arith.constant 0 : index
    %c0_505 = arith.constant 0 : index
    %891 = vector.load %arg6[%c0_501, %c1_502, %c7_503, %c0_504, %c0_505] : memref<1x2x16x6x80xf32, #tpu.memory_space<vmem>>, vector<1x1x1x6x80xf32>
    %892 = vector.shape_cast %891 : vector<1x1x1x6x80xf32> to vector<6x80xf32>
    %893 = vector.shape_cast %890 : vector<6x80xf32> to vector<1x1x1x6x80xf32>
    tpu.vector_store %arg6[%c0_501, %c1_502, %c7_503, %c0_504, %c0_505], %893 {strides = array<i32>} : memref<1x2x16x6x80xf32, #tpu.memory_space<vmem>>, vector<1x1x1x6x80xf32>,
    %cst_506 = arith.constant 2.500000e-01 : f32
    %894 = vector.broadcast %cst_506 : f32 to vector<6x100xf32>
    %895 = arith.mulf %894, %853 : vector<6x100xf32>
    %cst_507 = arith.constant 7.500000e-01 : f32
    %896 = vector.broadcast %cst_507 : f32 to vector<6x100xf32>
    %897 = arith.mulf %896, %855 : vector<6x100xf32>
    %898 = arith.addf %895, %897 : vector<6x100xf32>
    %899 = vector.extract_strided_slice %898 {offsets = [0, 0], sizes = [6, 80], strides = [1, 1]} : vector<6x100xf32> to vector<6x80xf32>
    %c0_508 = arith.constant 0 : index
    %c1_509 = arith.constant 1 : index
    %c11_510 = arith.constant 11 : index
    %c0_511 = arith.constant 0 : index
    %c0_512 = arith.constant 0 : index
    %900 = vector.load %arg6[%c0_508, %c1_509, %c11_510, %c0_511, %c0_512] : memref<1x2x16x6x80xf32, #tpu.memory_space<vmem>>, vector<1x1x1x6x80xf32>
    %901 = vector.shape_cast %900 : vector<1x1x1x6x80xf32> to vector<6x80xf32>
    %902 = vector.shape_cast %899 : vector<6x80xf32> to vector<1x1x1x6x80xf32>
    tpu.vector_store %arg6[%c0_508, %c1_509, %c11_510, %c0_511, %c0_512], %902 {strides = array<i32>} : memref<1x2x16x6x80xf32, #tpu.memory_space<vmem>>, vector<1x1x1x6x80xf32>,
    %cst_513 = arith.constant 7.500000e-01 : f32
    %903 = vector.broadcast %cst_513 : f32 to vector<6x100xf32>
    %904 = arith.mulf %903, %855 : vector<6x100xf32>
    %cst_514 = arith.constant 2.500000e-01 : f32
    %905 = vector.broadcast %cst_514 : f32 to vector<6x100xf32>
    %906 = arith.mulf %905, %875 : vector<6x100xf32>
    %907 = arith.addf %904, %906 : vector<6x100xf32>
    %908 = vector.extract_strided_slice %907 {offsets = [0, 0], sizes = [6, 80], strides = [1, 1]} : vector<6x100xf32> to vector<6x80xf32>
    %c0_515 = arith.constant 0 : index
    %c1_516 = arith.constant 1 : index
    %c15_517 = arith.constant 15 : index
    %c0_518 = arith.constant 0 : index
    %c0_519 = arith.constant 0 : index
    %909 = vector.load %arg6[%c0_515, %c1_516, %c15_517, %c0_518, %c0_519] : memref<1x2x16x6x80xf32, #tpu.memory_space<vmem>>, vector<1x1x1x6x80xf32>
    %910 = vector.shape_cast %909 : vector<1x1x1x6x80xf32> to vector<6x80xf32>
    %911 = vector.shape_cast %908 : vector<6x80xf32> to vector<1x1x1x6x80xf32>
    tpu.vector_store %arg6[%c0_515, %c1_516, %c15_517, %c0_518, %c0_519], %911 {strides = array<i32>} : memref<1x2x16x6x80xf32, #tpu.memory_space<vmem>>, vector<1x1x1x6x80xf32>,
    return
  }
  func.func @transform_0(%arg0: i32, %arg1: i32) -> (i32, i32, i32, i32) {
    %c0_i32 = arith.constant 0 : i32
    %c0_i32_0 = arith.constant 0 : i32
    %c0_i32_1 = arith.constant 0 : i32
    return %arg0, %arg1, %c0_i32, %c0_i32_0 : i32, i32, i32, i32
  }
  func.func @transform_1(%arg0: i32, %arg1: i32) -> (i32, i32, i32) {
    %c0_i32 = arith.constant 0 : i32
    %c0_i32_0 = arith.constant 0 : i32
    %c0_i32_1 = arith.constant 0 : i32
    %c0_i32_2 = arith.constant 0 : i32
    return %c0_i32, %c0_i32_0, %c0_i32_1 : i32, i32, i32
  }
  func.func @transform_2(%arg0: i32, %arg1: i32) -> (i32, i32, i32) {
    %c0_i32 = arith.constant 0 : i32
    %c0_i32_0 = arith.constant 0 : i32
    %c0_i32_1 = arith.constant 0 : i32
    %c0_i32_2 = arith.constant 0 : i32
    return %c0_i32, %c0_i32_0, %c0_i32_1 : i32, i32, i32
  }
  func.func @transform_3(%arg0: i32, %arg1: i32) -> (i32, i32, i32) {
    %c0_i32 = arith.constant 0 : i32
    %c0_i32_0 = arith.constant 0 : i32
    %c0_i32_1 = arith.constant 0 : i32
    %c0_i32_2 = arith.constant 0 : i32
    return %c0_i32, %c0_i32_0, %c0_i32_1 : i32, i32, i32
  }
  func.func @transform_4(%arg0: i32, %arg1: i32) -> (i32, i32, i32, i32, i32) {
    %c0_i32 = arith.constant 0 : i32
    %c0_i32_0 = arith.constant 0 : i32
    %c0_i32_1 = arith.constant 0 : i32
    %c0_i32_2 = arith.constant 0 : i32
    return %arg0, %arg1, %c0_i32, %c0_i32_0, %c0_i32_1 : i32, i32, i32, i32, i32
  }
}

</mosaic_0001>

<bundles_post_ra>
// kernel: densepose_forward.1
= control target key start
LH: loop header
LB: loop body
LE: loop exit
PB: predicated region body
PF: predicated region fallthrough
CT: control target
= control target key end

     0   :  { %s1766_s15 = smov 0   ;;  %s1768_s16 = smov 0   ;;  %s2477_s0 = inlined_call_operand.vmem [shape: bf16[15,2,32,100], index: 0, kind: input, shape index: {}]   ;;  %s2478_s1 = inlined_call_operand.vmem [shape: bf16[15,96,32], index: 1, kind: input, shape index: {}]   ;;  %s2479_s2 = inlined_call_operand.vmem [shape: f32[15,6,1], index: 2, kind: input, shape index: {}]   ;;  %s2480_s3 = inlined_call_operand.vmem [shape: f32[4,1,100], index: 3, kind: input, shape index: {}]   ;;  %s2481_s4 = inlined_call_operand.vmem [shape: f32[15,2,16,6,80], index: 4, kind: output, shape index: {}]  }
   0x1   :  { %s1770_s17 = smov 0  }
   0x2 LB: > { %s26_s18 = sadd.s32 1, %s1714_s16  ;;  %p1519_p0 = scmp.ge.s32.totalorder %s1718_s17, 1  ;;  %s1718_s17 = sphi %s1770_s17, %s14_s17   ;;  %s1714_s16 = sphi %s1768_s16, %s2483_s16   ;;  %s1710_s15 = sphi %s1766_s15, %s2482_s15  }
   0x3   : > { %p28_p1 = scmp.ge.s32.totalorder %s26_s18, 15  ;;  %p184_p2 = scmp.lt.s32.totalorder %s1718_s17, 16 }
   0x5   : > { %s2485_s18 = smov (%p28_p1, %s26_s18), 0  ;;  %p185_p3 = pnand %p1519_p0, %p184_p2 }
   0x6   : > { %p221_p4 = scmp.lt.s32.totalorder (!%p185_p3), %s1710_s15, 14  ;;  %s1590_s19 = smul.u32 (!%p185_p3), 48, %s1710_s15  ;;  %v1720_v0 = vmov (!%p185_p3), 0   ;;  %vm314_vm0 = vcmask (!%p185_p3), 261120   ;;  %vm414_vm1 = vcmask (!%p185_p3), 818176   ;;  %vm436_vm2 = vcmask (!%p185_p3), 809984  }
   0x7   : > { %188 = sbr.rel (%p185_p3) target bundleno = 764 (0x2fc), region = 36  ;;  %1684 = vset.pattern.permute.xlu1 (!%p185_p3), %v1720_v0  ;;  %1685 = vset.pattern.permute.xlu0 (!%p185_p3), %v1720_v0  ;;  %s1525_s28 = sshll.u32 (!%p185_p3), %s1710_s15, 3  ;;  %vm447_vm3 = vcmask (!%p185_p3), 736256   ;;  %vm458_vm4 = vcmask (!%p185_p3), 728064   ;;  %vm467_vm5 = vcmask (!%p185_p3), 816128   ;;  %vm486_vm6 = vcmask (!%p185_p3), 801792  }
   0x8   : > { %s1794_s23 = scalar_lea.vmem (!%p185_p3), %s2478_s1, %s1590_s19  ;;  %s259_s5 = scalar_lea.vmem (!%p185_p3), %s2479_s2, %s1525_s28  ;;  %vm507_vm7 = vcmask (!%p185_p3), 719872   ;;  %vm540_vm8 = vcmask (!%p185_p3), 654336   ;;  %vm551_vm9 = vcmask (!%p185_p3), 646144   ;;  %vm594_vm10 = vcmask (!%p185_p3), 637952  }
   0x9   : > { %v1688_v1 = vld [vmem:[%s1794_s23] sm:$0xff] (!%p185_p3)   ;;  %v1689_v4 = vld [vmem:[%s1794_s23 + $0x8] sm:$0xff] (!%p185_p3)   ;;  %v1690_v5 = vld [vmem:[%s1794_s23 + $0x10] sm:$0xff] (!%p185_p3)   ;;  %s1721_s6 = smov (!%p185_p3), 89   ;;  %s1722_s7 = smov (!%p185_p3), 117   ;;  %vm764_vm11 = vcmask (!%p185_p3), 652288  }
   0xa   : > { %1611 = vmatprep.mubr.msk.bf16.mxu0 (!%p185_p3), %vm314_vm0, %v1688_v1  ;;  %1627 = vmatprep.mubr.msk.bf16.mxu1 (!%p185_p3), %vm314_vm0, %v1688_v1  ;;  %v260_v8 = vld [vmem:[%s259_s5] sm:$0x3f] (!%p185_p3)  ;;  %v1691_v9 = vld [vmem:[%s1794_s23 + $0x18] sm:$0xff] (!%p185_p3)   ;;  %v1693_v11 = vld [vmem:[%s1794_s23 + $0x28] sm:$0xff] (!%p185_p3)   ;;  %s1723_s8 = smov (!%p185_p3), 99   ;;  %s1724_s9 = smov (!%p185_p3), 127  }
   0xb   : > { %463 = vperm.xlu1 (!%p185_p3), %1684, %v260_v8   ;;  %v1692_v10 = vld [vmem:[%s1794_s23 + $0x20] sm:$0xff] (!%p185_p3)   ;;  %s1725_s10 = smov (!%p185_p3), 118   ;;  %s1726_s11 = smov (!%p185_p3), 90   ;;  %vm609_vm12 = vcmask (!%p185_p3), 7168   ;;  %vm719_vm13 = vcmask (!%p185_p3), 80896  }
   0xc   : > { %s1727_s12 = smov (!%p185_p3), 126   ;;  %s1728_s13 = smov (!%p185_p3), 98  }
   0xd   : > { %s1729_s14 = smov (!%p185_p3), 116   ;;  %s1731_s19 = smov (!%p185_p3), 108  }
   0xe   : > { %s1789_s20 = scalar_select %p221_p4, %s1710_s15, 14 }
   0xf   : > { %s1730_s15 = smov 88   ;;  %s1732_s21 = smov 107  }
  0x10   : > { %s1588_s24 = sshll.u32 %s1789_s20, 5  ;;  %s1733_s22 = smov 80  }
  0x11   : > { %s229_s27 = scalar_lea.vmem %s2477_s0, %s1588_s24  ;;  %s1734_s23 = smov 79  }
  0x12   : > { %v1686_v2 = vld [vmem:[%s229_s27] sm:$0xff]   ;;  %v1687_v3 = vld [vmem:[%s229_s27 + $0x8] sm:$0xff]   ;;  %v1694_v6 = vld [vmem:[%s229_s27 + $0x10] sm:$0xff]   ;;  %s1735_s24 = smov 106   ;;  %s1736_s25 = smov 78  }
  0x13   : > { %1607 = vmatprep.subr.bf16.mxu0 %v1686_v2  ;;  %v1695_v7 = vld [vmem:[%s229_s27 + $0x18] sm:$0xff]   ;;  %1623 = vmatprep.subr.bf16.mxu1 %v1694_v6  ;;  %s1737_s26 = smov 1   ;;  %s1738_s27 = smov 29  }
  0x14   : > { %1608 = vmatpush3.bf16.msra.mxu0 %v1686_v2  ;;  %1624 = vmatpush3.bf16.msra.mxu1 %v1694_v6  ;;  %s1589_s28 = sshll.u32 %s1789_s20, 8 }
  0x15   : > { %1609 = vmatprep.subr.bf16.mxu0 %v1687_v3  ;;  %1625 = vmatprep.subr.bf16.mxu1 %v1695_v7  ;;  %s2046_s30 = scalar_lea.vmem %s2481_s4, %s1589_s28 }
  0x18   : > { %1610 = vmatpush3.bf16.msra.mxu0 %v1687_v3  ;;  %1626 = vmatpush3.bf16.msra.mxu1 %v1695_v7 }
  0x1b   : > { %1612 = vmatmul.mubr.msk.bf16.vlgmr.msra.gmra.mrb[0].mxu0 %vm314_vm0, %v1689_v4  ;;  %1628 = vmatmul.mubr.msk.bf16.vlgmr.msra.gmra.mrb[0].mxu1 %vm314_vm0, %v1689_v4 }
  0x1c   : > { %1615 = vmatprep.mubr.msk.bf16.mxu0 %vm314_vm0, %v1690_v5  ;;  %1631 = vmatprep.mubr.msk.bf16.mxu1 %vm314_vm0, %v1690_v5 }
  0x23   : > { %1616 = vmatmul.mubr.msk.bf16.gmra.mrb[4].mxu0 %vm314_vm0, %v1691_v9  ;;  %1632 = vmatmul.mubr.msk.bf16.gmra.mrb[4].mxu1 %vm314_vm0, %v1691_v9 }
  0x24   : > { %1619 = vmatprep.mubr.msk.bf16.mxu0 %vm314_vm0, %v1692_v10  ;;  %1635 = vmatprep.mubr.msk.bf16.mxu1 %vm314_vm0, %v1692_v10 }
  0x2b   : > { %1620 = vmatmul.mubr.msk.bf16.gmra.mrb[8].mxu0 %vm314_vm0, %v1693_v11  ;;  %1636 = vmatmul.mubr.msk.bf16.gmra.mrb[8].mxu1 %vm314_vm0, %v1693_v11 }
  0x8a   : > { %v1904_v2 = vpop.permute.xlu1 %463 }
  0xee   : > { %v1613_v12 = vpop.f32.mrb[0].mxu0  ;;  %v1629_v16 = vpop.f32.mrb[0].mxu1 }
  0xef   : > { %417 = vst.msk [vmem:[#allocation2 + $0x10] sm:$0xff] %vm414_vm1, %v1613_v12  ;;  %v367_v13 = vpop.f32.mrb[1].mxu0  ;;  %v956_v19 = vpop.f32.mrb[1].mxu1 }
  0xf0   : > { %415 = vst.msk [vmem:[#allocation2] sm:$0xff] %vm414_vm1, %v367_v13  ;;  %v1614_v14 = vpop.f32.mrb[2].mxu0  ;;  %v1630_v21 = vpop.f32.mrb[2].mxu1 }
  0xf1   : > { %418 = vst.msk [vmem:[#allocation2 + $0x18] sm:$0xff] %vm414_vm1, %v1614_v14  ;;  %v370_v15 = vpop.f32.mrb[3].mxu0  ;;  %v959_v24 = vpop.f32.mrb[3].mxu1 }
  0xf2   : > { %416 = vst.msk [vmem:[#allocation2 + $0x8] sm:$0xff] %vm414_vm1, %v370_v15 }
  0xf6   : > { %v1617_v17 = vpop.f32.mrb[4].mxu0  ;;  %v450_v18 = vld [vmem:[#allocation2 + $0x12] sm:$0x3f]  ;;  %v1633_v29 = vpop.f32.mrb[4].mxu1 }
  0xf7   : > { %421 = vst.msk [vmem:[#allocation2 + $0x30] sm:$0xff] %vm414_vm1, %v1617_v17  ;;  %455 = vrot.lane.b32.xlu0 %v450_v18, %s1721_s6  ;;  %452 = vrot.lane.b32.xlu1 %v450_v18, %s1722_s7  ;;  %v383_v20 = vpop.f32.mrb[5].mxu0  ;;  %v1830_v23 = vld [vmem:[#allocation2] sm:$0x3f]  ;;  %v972_v31 = vpop.f32.mrb[5].mxu1 }
  0xf8   : > { %419 = vst.msk [vmem:[#allocation2 + $0x20] sm:$0xff] %vm414_vm1, %v383_v20  ;;  %v1618_v22 = vpop.f32.mrb[6].mxu0  ;;  %v469_v28 = vld [vmem:[#allocation2 + $0x18] sm:$0x3f]  ;;  %v1634_v34 = vpop.f32.mrb[6].mxu1 }
  0xf9   : > { %v439_v25 = vld [vmem:[#allocation2 + $0xc] sm:$0x3f]  ;;  %v428_v26 = vld [vmem:[#allocation2 + $0x6] sm:$0x3f]  ;;  %422 = vst.msk [vmem:[#allocation2 + $0x38] sm:$0xff] %vm414_vm1, %v1618_v22  ;;  %v386_v27 = vpop.f32.mrb[7].mxu0 }
  0xfa   : > { %420 = vst.msk [vmem:[#allocation2 + $0x28] sm:$0xff] %vm414_vm1, %v386_v27  ;;  %1005 = vst.msk [vmem:[#allocation2 + $0x10] sm:$0xff] %vm414_vm1, %v1629_v16  ;;  %v975_v38 = vpop.f32.mrb[7].mxu1 }
  0xfb   : > { %1003 = vst.msk [vmem:[#allocation2] sm:$0xff] %vm414_vm1, %v956_v19  ;;  %1004 = vst.msk [vmem:[#allocation2 + $0x8] sm:$0xff] %vm414_vm1, %v959_v24  ;;  %474 = vrot.lane.b32.xlu0 %v469_v28, %s1723_s8  ;;  %471 = vrot.lane.b32.xlu1 %v469_v28, %s1724_s9 }
  0xfe   : > { %v1621_v30 = vpop.f32.mrb[8].mxu0  ;;  %v513_v35 = vld [vmem:[#allocation2 + $0x30] sm:$0x3f]  ;;  %v1637_v42 = vpop.f32.mrb[8].mxu1 }
  0xff   : > { %441 = vrot.lane.b32.xlu1 %v439_v25, %s1725_s10  ;;  %430 = vrot.lane.b32.xlu0 %v428_v26, %s1724_s9  ;;  %425 = vst.msk [vmem:[#allocation2 + $0x50] sm:$0xff] %vm414_vm1, %v1621_v30  ;;  %v399_v32 = vpop.f32.mrb[9].mxu0  ;;  %v478_v33 = vld [vmem:[#allocation2 + $0x1e] sm:$0x3f]  ;;  %v988_v43 = vpop.f32.mrb[9].mxu1 }
 0x100   : > { %423 = vst.msk [vmem:[#allocation2 + $0x40] sm:$0xff] %vm414_vm1, %v399_v32  ;;  %v522_v36 = vld [vmem:[#allocation2 + $0x36] sm:$0x3f]  ;;  %1006 = vst.msk [vmem:[#allocation2 + $0x18] sm:$0xff] %vm414_vm1, %v1630_v21  ;;  %v1622_v37 = vpop.f32.mrb[10].mxu0  ;;  %v1638_v49 = vpop.f32.mrb[10].mxu1 }
 0x101   : > { %v489_v39 = vld [vmem:[#allocation2 + $0x24] sm:$0x3f]  ;;  %1009 = vst.msk [vmem:[#allocation2 + $0x30] sm:$0xff] %vm414_vm1, %v1633_v29  ;;  %v499_v40 = vld [vmem:[#allocation2 + $0x2a] sm:$0x3f]  ;;  %426 = vst.msk [vmem:[#allocation2 + $0x58] sm:$0xff] %vm414_vm1, %v1622_v37 }
 0x102   : > { %1007 = vst.msk [vmem:[#allocation2 + $0x20] sm:$0xff] %vm414_vm1, %v972_v31  ;;  %v402_v41 = vpop.f32.mrb[11].mxu0  ;;  %1008 = vst.msk [vmem:[#allocation2 + $0x28] sm:$0xff] %vm414_vm1, %v975_v38  ;;  %v991_v51 = vpop.f32.mrb[11].mxu1  ;;  %v1016_v52 = vld [vmem:[#allocation2 + $0x6] sm:$0x3f] }
 0x103   : > { %433 = vrot.lane.b32.xlu0 %v428_v26, %s1723_s8  ;;  %515 = vrot.lane.b32.xlu1 %v513_v35, %s1725_s10  ;;  %424 = vst.msk [vmem:[#allocation2 + $0x48] sm:$0xff] %vm414_vm1, %v402_v41  ;;  %v1026_v53 = vld [vmem:[#allocation2 + $0xc] sm:$0x3f]  ;;  %v1036_v54 = vld [vmem:[#allocation2 + $0x12] sm:$0x3f] }
 0x107   : > { %444 = vrot.lane.b32.xlu0 %v439_v25, %s1726_s11  ;;  %480 = vrot.lane.b32.xlu1 %v478_v33, %s1727_s12  ;;  %v532_v44 = vld [vmem:[#allocation2 + $0x3c] sm:$0x3f]  ;;  %v543_v45 = vld [vmem:[#allocation2 + $0x42] sm:$0x3f] }
 0x108   : > { %1010 = vst.msk [vmem:[#allocation2 + $0x38] sm:$0xff] %vm414_vm1, %v1634_v34  ;;  %1011 = vst.msk [vmem:[#allocation2 + $0x40] sm:$0xff] %vm414_vm1, %v988_v43  ;;  %v576_v46 = vld [vmem:[#allocation2 + $0x54] sm:$0x3f]  ;;  %v586_v47 = vld [vmem:[#allocation2 + $0x5a] sm:$0x3f] }
 0x109   : > { %1014 = vst.msk [vmem:[#allocation2 + $0x58] sm:$0xff] %vm414_vm1, %v1638_v49  ;;  %v1048_v55 = vld [vmem:[#allocation2 + $0x18] sm:$0x3f]  ;;  %v1089_v56 = vld [vmem:[#allocation2 + $0x30] sm:$0x3f] }
 0x10a   : > { %v566_v48 = vld [vmem:[#allocation2 + $0x4e] sm:$0x3f]  ;;  %v557_v50 = vld [vmem:[#allocation2 + $0x48] sm:$0x3f]  ;;  %v1057_v57 = vld [vmem:[#allocation2 + $0x1e] sm:$0x3f] }
 0x10b   : > { %518 = vrot.lane.b32.xlu0 %v513_v35, %s1726_s11  ;;  %524 = vrot.lane.b32.xlu1 %v522_v36, %s1722_s7  ;;  %1013 = vst.msk [vmem:[#allocation2 + $0x50] sm:$0xff] %vm414_vm1, %v1637_v42  ;;  %1012 = vst.msk [vmem:[#allocation2 + $0x48] sm:$0xff] %vm414_vm1, %v991_v51  ;;  %v1067_v58 = vld [vmem:[#allocation2 + $0x24] sm:$0x3f]  ;;  %v1077_v59 = vld [vmem:[#allocation2 + $0x2a] sm:$0x3f] }
 0x10f   : > { %483 = vrot.lane.b32.xlu0 %v478_v33, %s1728_s13  ;;  %491 = vrot.lane.b32.xlu1 %v489_v39, %s1722_s7  ;;  %v1098_v60 = vld [vmem:[#allocation2 + $0x36] sm:$0x3f]  ;;  %v1108_v61 = vld [vmem:[#allocation2 + $0x3c] sm:$0x3f]  ;;  %v1118_v62 = vld [vmem:[#allocation2 + $0x42] sm:$0x3f] }
 0x110   : > { %v1159_v3 = vld [vmem:[#allocation2 + $0x5a] sm:$0x3f] }
 0x112   : > { %v1130_v63 = vld [vmem:[#allocation2 + $0x48] sm:$0x3f]  ;;  %v1139_v0 = vld [vmem:[#allocation2 + $0x4e] sm:$0x3f]  ;;  %v1149_v1 = vld [vmem:[#allocation2 + $0x54] sm:$0x3f] }
 0x113   : > { %527 = vrot.lane.b32.xlu0 %v522_v36, %s1721_s6  ;;  %501 = vrot.lane.b32.xlu1 %v499_v40, %s1729_s14 }
 0x117   : > { %494 = vrot.lane.b32.xlu0 %v489_v39, %s1721_s6  ;;  %1018 = vrot.lane.b32.xlu1 %v1016_v52, %s1724_s9 }
 0x11b   : > { %504 = vrot.lane.b32.xlu0 %v499_v40, %s1730_s15  ;;  %1028 = vrot.lane.b32.xlu1 %v1026_v53, %s1725_s10 }
 0x11f   : > { %1021 = vrot.lane.b32.xlu0 %v1016_v52, %s1723_s8  ;;  %1038 = vrot.lane.b32.xlu1 %v1036_v54, %s1722_s7 }
 0x123   : > { %1031 = vrot.lane.b32.xlu0 %v1026_v53, %s1726_s11  ;;  %534 = vrot.lane.b32.xlu1 %v532_v44, %s1731_s19 }
 0x127   : > { %1041 = vrot.lane.b32.xlu0 %v1036_v54, %s1721_s6  ;;  %545 = vrot.lane.b32.xlu1 %v543_v45, %s1732_s21 }
 0x12b   : > { %537 = vrot.lane.b32.xlu0 %v532_v44, %s1733_s22  ;;  %1050 = vrot.lane.b32.xlu1 %v1048_v55, %s1724_s9 }
 0x12f   : > { %548 = vrot.lane.b32.xlu0 %v543_v45, %s1734_s23  ;;  %578 = vrot.lane.b32.xlu1 %v576_v46, %s1732_s21  ;;  %v1015_v45 = vld [vmem:[#allocation2] sm:$0x3f] }
 0x133   : > { %1053 = vrot.lane.b32.xlu0 %v1048_v55, %s1723_s8  ;;  %588 = vrot.lane.b32.xlu1 %v586_v47, %s1735_s24 }
 0x137   : > { %581 = vrot.lane.b32.xlu0 %v576_v46, %s1734_s23  ;;  %1091 = vrot.lane.b32.xlu1 %v1089_v56, %s1725_s10 }
 0x13b   : > { %591 = vrot.lane.b32.xlu0 %v586_v47, %s1736_s25  ;;  %559 = vrot.lane.b32.xlu1 %v557_v50, %s1722_s7 }
 0x13f   : > { %1094 = vrot.lane.b32.xlu0 %v1089_v56, %s1726_s11  ;;  %568 = vrot.lane.b32.xlu1 %v566_v48, %s1729_s14 }
 0x143   : > { %562 = vrot.lane.b32.xlu0 %v557_v50, %s1721_s6  ;;  %1059 = vrot.lane.b32.xlu1 %v1057_v57, %s1727_s12 }
 0x147   : > { %571 = vrot.lane.b32.xlu0 %v566_v48, %s1730_s15  ;;  %1069 = vrot.lane.b32.xlu1 %v1067_v58, %s1722_s7 }
 0x14b   : > { %1062 = vrot.lane.b32.xlu0 %v1057_v57, %s1728_s13  ;;  %1079 = vrot.lane.b32.xlu1 %v1077_v59, %s1729_s14 }
 0x14f   : > { %1072 = vrot.lane.b32.xlu0 %v1067_v58, %s1721_s6  ;;  %1100 = vrot.lane.b32.xlu1 %v1098_v60, %s1722_s7 }
 0x153   : > { %1082 = vrot.lane.b32.xlu0 %v1077_v59, %s1730_s15  ;;  %1110 = vrot.lane.b32.xlu1 %v1108_v61, %s1731_s19 }
 0x157   : > { %1103 = vrot.lane.b32.xlu0 %v1098_v60, %s1721_s6  ;;  %1120 = vrot.lane.b32.xlu1 %v1118_v62, %s1732_s21 }
 0x15b   : > { %1113 = vrot.lane.b32.xlu0 %v1108_v61, %s1733_s22  ;;  %1132 = vrot.lane.b32.xlu1 %v1130_v63, %s1722_s7  ;;  %s1739_s7 = smov 10  }
 0x15f   : > { %1123 = vrot.lane.b32.xlu0 %v1118_v62, %s1734_s23  ;;  %1141 = vrot.lane.b32.xlu1 %v1139_v0, %s1729_s14 }
 0x163   : > { %1135 = vrot.lane.b32.xlu0 %v1130_v63, %s1721_s6  ;;  %1151 = vrot.lane.b32.xlu1 %v1149_v1, %s1732_s21 }
 0x167   : > { %1144 = vrot.lane.b32.xlu0 %v1139_v0, %s1730_s15  ;;  %1161 = vrot.lane.b32.xlu1 %v1159_v3, %s1735_s24 }
 0x169   : > { %v456_v4 = vpop.permute.xlu0 %455  ;;  %v453_v5 = vpop.permute.xlu1 %452 }
 0x16a   : > { %v459_v18 = vsel %vm458_vm4, %v453_v5, %v456_v4 }
 0x16b   : > { %1154 = vrot.lane.b32.xlu0 %v1149_v1, %s1734_s23 }
 0x16d   : > { %v475_v6 = vpop.permute.xlu0 %474  ;;  %v472_v7 = vpop.permute.xlu1 %471 }
 0x16e   : > { %v477_v31 = vsel %vm436_vm2, %v472_v7, %v475_v6 }
 0x16f   : > { %1164 = vrot.lane.b32.xlu0 %v1159_v3, %s1736_s25 }
 0x171   : > { %v442_v8 = vpop.permute.xlu1 %441  ;;  %v431_v9 = vpop.permute.xlu0 %430 }
 0x175   : > { %v434_v10 = vpop.permute.xlu0 %433  ;;  %v1910_v11 = vpop.permute.xlu1 %515 }
 0x176   : > { %v437_v12 = vsel %vm436_vm2, %v431_v9, %v434_v10 }
 0x177   : > { %v438_v13 = vadd.f32 %v437_v12, %v1830_v23 }
 0x179   : > { %v445_v14 = vpop.permute.xlu0 %444  ;;  %v481_v15 = vpop.permute.xlu1 %480 }
 0x17a   : > { %v448_v16 = vsel %vm447_vm3, %v442_v8, %v445_v14 }
 0x17b   : > { %v449_v17 = vadd.f32 %v448_v16, %v438_v13 }
 0x17d   : > { %v460_v19 = vadd.f32 %v459_v18, %v449_v17  ;;  %v519_v20 = vpop.permute.xlu0 %518  ;;  %v525_v21 = vpop.permute.xlu1 %524 }
 0x17e   : > { %v521_v0 = vsel %vm447_vm3, %v1910_v11, %v519_v20 }
 0x17f   : > { %v466_v22 = vadd.f32 %v1904_v2, %v460_v19 }
 0x181   : > { %468 = vst.msk [vmem:[#allocation3] sm:$0x3f] %vm467_vm5, %v466_v22  ;;  %v484_v24 = vpop.permute.xlu0 %483  ;;  %v492_v25 = vpop.permute.xlu1 %491 }
 0x182   : > { %v487_v27 = vsel %vm486_vm6, %v481_v15, %v484_v24 }
 0x183   : > { %v488_v33 = vadd.f32 %v487_v27, %v477_v31 }
 0x185   : > { %v528_v26 = vpop.permute.xlu0 %527  ;;  %v502_v23 = vpop.permute.xlu1 %501 }
 0x186   : > { %v530_v58 = vsel %vm458_vm4, %v525_v21, %v528_v26 }
 0x187   : > { %v531_v3 = vadd.f32 %v530_v58, %v521_v0 }
 0x188   : > { %v1919_v28 = vld [vmem:[#allocation3] sm:$0x3f] }
 0x189   : > { %v495_v29 = vpop.permute.xlu0 %494  ;;  %v1019_v30 = vpop.permute.xlu1 %1018  ;;  %631 = vrot.lane.b32.xlu0 %v1919_v28, %s1723_s8  ;;  %628 = vrot.lane.b32.xlu1 %v1919_v28, %s1724_s9  ;;  %v1933_v51 = vmul.f32 0.75, %v1919_v28  ;;  %v659_v54 = vmul.f32 0.25, %v1919_v28 }
 0x18a   : > { %v497_v32 = vsel %vm458_vm4, %v492_v25, %v495_v29 }
 0x18b   : > { %v498_v34 = vadd.f32 %v497_v32, %v488_v33 }
 0x18d   : > { %v505_v35 = vpop.permute.xlu0 %504  ;;  %v1029_v36 = vpop.permute.xlu1 %1028 }
 0x18e   : > { %v508_v37 = vsel %vm507_vm7, %v502_v23, %v505_v35 }
 0x18f   : > { %v509_v38 = vadd.f32 %v508_v37, %v498_v34 }
 0x191   : > { %v510_v39 = vadd.f32 %v509_v38, %v1904_v2  ;;  %v1022_v40 = vpop.permute.xlu0 %1021  ;;  %v1039_v41 = vpop.permute.xlu1 %1038 }
 0x192   : > { %v1024_v42 = vsel %vm436_vm2, %v1019_v30, %v1022_v40 }
 0x193   : > { %512 = vst.msk [vmem:[#allocation3 + $0x8] sm:$0x3f] %vm467_vm5, %v510_v39  ;;  %v1025_v47 = vadd.f32 %v1024_v42, %v1015_v45 }
 0x195   : > { %v1032_v43 = vpop.permute.xlu0 %1031  ;;  %v535_v44 = vpop.permute.xlu1 %534 }
 0x196   : > { %v1034_v46 = vsel %vm447_vm3, %v1029_v36, %v1032_v43 }
 0x197   : > { %v1035_v48 = vadd.f32 %v1034_v46, %v1025_v47 }
 0x199   : > { %v1042_v49 = vpop.permute.xlu0 %1041  ;;  %v546_v50 = vpop.permute.xlu1 %545 }
 0x19a   : > { %v1044_v52 = vsel %vm458_vm4, %v1039_v41, %v1042_v49  ;;  %v1936_v53 = vld [vmem:[#allocation3 + $0x8] sm:$0x3f] }
 0x19b   : > { %v1045_v55 = vadd.f32 %v1044_v52, %v1035_v48  ;;  %v655_v56 = vmul.f32 0.25, %v1936_v53  ;;  %v1941_v57 = vmul.f32 0.75, %v1936_v53  ;;  %606 = vrot.lane.b32.xlu0 %v1936_v53, %s1737_s26  ;;  %603 = vrot.lane.b32.xlu1 %v1936_v53, %s1738_s27 }
 0x19d   : > { %v1046_v59 = vadd.f32 %v1045_v55, %v1904_v2  ;;  %v656_v60 = vadd.f32 %v655_v56, %v1933_v51  ;;  %v661_v61 = vadd.f32 %v1941_v57, %v659_v54  ;;  %v538_v62 = vpop.permute.xlu0 %537  ;;  %v1051_v63 = vpop.permute.xlu1 %1050 }
 0x19e   : > { %v541_v1 = vsel %vm540_vm8, %v535_v44, %v538_v62 }
 0x19f   : > { %1047 = vst.msk [vmem:[#allocation3] sm:$0x3f] %vm467_vm5, %v1046_v59  ;;  %658 = vst.msk [vmem:[#allocation4 + $0x8] sm:$0x3f] %vm467_vm5, %v656_v60  ;;  %v542_v4 = vadd.f32 %v541_v1, %v531_v3 }
 0x1a0   : > { %663 = vst.msk [vmem:[#allocation4 + $0x10] sm:$0x3f] %vm467_vm5, %v661_v61 }
 0x1a1   : > { %v549_v5 = vpop.permute.xlu0 %548  ;;  %v579_v6 = vpop.permute.xlu1 %578 }
 0x1a2   : > { %v552_v7 = vsel %vm551_vm9, %v546_v50, %v549_v5 }
 0x1a3   : > { %v553_v8 = vadd.f32 %v552_v7, %v542_v4 }
 0x1a5   : > { %v554_v9 = vadd.f32 %v553_v8, %v1904_v2  ;;  %v1054_v10 = vpop.permute.xlu0 %1053  ;;  %v589_v11 = vpop.permute.xlu1 %588 }
 0x1a6   : > { %v1959_v12 = vld [vmem:[#allocation3] sm:$0x3f]  ;;  %v1056_v38 = vsel %vm436_vm2, %v1051_v63, %v1054_v10 }
 0x1a7   : > { %556 = vst.msk [vmem:[#allocation3 + $0x10] sm:$0x3f] %vm467_vm5, %v554_v9  ;;  %1188 = vrot.lane.b32.xlu0 %v1959_v12, %s1723_s8  ;;  %1185 = vrot.lane.b32.xlu1 %v1959_v12, %s1724_s9  ;;  %v2006_v4 = vmul.f32 0.75, %v1959_v12  ;;  %v1202_v7 = vmul.f32 0.25, %v1959_v12 }
 0x1a9   : > { %v582_v13 = vpop.permute.xlu0 %581  ;;  %v1092_v14 = vpop.permute.xlu1 %1091 }
 0x1aa   : > { %v584_v27 = vsel %vm551_vm9, %v579_v6, %v582_v13  ;;  %v2022_v13 = vld [vmem:[#allocation4 + $0x10] sm:$0x3f] }
 0x1ad   : > { %v592_v15 = vpop.permute.xlu0 %591  ;;  %v560_v16 = vpop.permute.xlu1 %559 }
 0x1ae   : > { %v1966_v17 = vld [vmem:[#allocation3 + $0x10] sm:$0x3f]  ;;  %v595_v32 = vsel %vm594_vm10, %v589_v11, %v592_v15  ;;  %v2020_v11 = vld [vmem:[#allocation4 + $0x8] sm:$0x3f] }
 0x1af   : > { %685 = vrot.lane.b32.xlu0 %v1966_v17, %s1723_s8  ;;  %682 = vrot.lane.b32.xlu1 %v1966_v17, %s1724_s9  ;;  %v1986_v50 = vmul.f32 0.75, %v1966_v17  ;;  %v701_v52 = vmul.f32 0.25, %v1966_v17 }
 0x1b1   : > { %v1095_v18 = vpop.permute.xlu0 %1094  ;;  %v569_v19 = vpop.permute.xlu1 %568 }
 0x1b2   : > { %v1097_v61 = vsel %vm447_vm3, %v1092_v14, %v1095_v18 }
 0x1b5   : > { %v563_v20 = vpop.permute.xlu0 %562  ;;  %v1060_v21 = vpop.permute.xlu1 %1059 }
 0x1b6   : > { %v565_v25 = vsel %vm458_vm4, %v560_v16, %v563_v20 }
 0x1b9   : > { %v572_v22 = vpop.permute.xlu0 %571  ;;  %v1070_v24 = vpop.permute.xlu1 %1069 }
 0x1ba   : > { %v574_v26 = vsel %vm507_vm7, %v569_v19, %v572_v22  ;;  %v812_v22 = vmul.f32 0.25, %v2020_v11 }
 0x1bb   : > { %v575_v23 = vadd.f32 %v574_v26, %v565_v25  ;;  %v854_v25 = vmul.f32 0.25, %v2022_v13 }
 0x1bd   : > { %v585_v29 = vadd.f32 %v584_v27, %v575_v23  ;;  %v1063_v30 = vpop.permute.xlu0 %1062  ;;  %v1080_v31 = vpop.permute.xlu1 %1079  ;;  %v2049_v23 = vmul.f32 0.75, %v2020_v11 }
 0x1be   : > { %v1065_v34 = vsel %vm486_vm6, %v1060_v21, %v1063_v30 }
 0x1bf   : > { %v596_v33 = vadd.f32 %v595_v32, %v585_v29  ;;  %v1066_v40 = vadd.f32 %v1065_v34, %v1056_v38  ;;  %v2053_v29 = vmul.f32 0.75, %v2022_v13 }
 0x1c1   : > { %v597_v35 = vadd.f32 %v596_v33, %v1904_v2  ;;  %v1073_v36 = vpop.permute.xlu0 %1072  ;;  %v1101_v37 = vpop.permute.xlu1 %1100 }
 0x1c2   : > { %v1075_v39 = vsel %vm458_vm4, %v1070_v24, %v1073_v36 }
 0x1c3   : > { %599 = vst.msk [vmem:[#allocation3 + $0x18] sm:$0x3f] %vm467_vm5, %v597_v35  ;;  %v1076_v41 = vadd.f32 %v1075_v39, %v1066_v40 }
 0x1c5   : > { %v1083_v42 = vpop.permute.xlu0 %1082  ;;  %v1111_v43 = vpop.permute.xlu1 %1110 }
 0x1c6   : > { %v1085_v44 = vsel %vm507_vm7, %v1080_v31, %v1083_v42 }
 0x1c7   : > { %v1086_v45 = vadd.f32 %v1085_v44, %v1076_v41 }
 0x1c9   : > { %v1087_v46 = vadd.f32 %v1086_v45, %v1904_v2  ;;  %v1104_v47 = vpop.permute.xlu0 %1103  ;;  %v1121_v48 = vpop.permute.xlu1 %1120 }
 0x1ca   : > { %v1983_v49 = vld [vmem:[#allocation3 + $0x18] sm:$0x3f]  ;;  %v1106_v56 = vsel %vm458_vm4, %v1101_v37, %v1104_v47 }
 0x1cb   : > { %1088 = vst.msk [vmem:[#allocation3 + $0x8] sm:$0x3f] %vm467_vm5, %v1087_v46  ;;  %v697_v54 = vmul.f32 0.25, %v1983_v49  ;;  %v1992_v55 = vmul.f32 0.75, %v1983_v49  ;;  %674 = vrot.lane.b32.xlu0 %v1983_v49, %s1737_s26  ;;  %671 = vrot.lane.b32.xlu1 %v1983_v49, %s1738_s27  ;;  %v1107_v63 = vadd.f32 %v1106_v56, %v1097_v61 }
 0x1cd   : > { %v698_v58 = vadd.f32 %v697_v54, %v1986_v50  ;;  %v703_v59 = vadd.f32 %v1992_v55, %v701_v52  ;;  %v1114_v60 = vpop.permute.xlu0 %1113  ;;  %v1133_v0 = vpop.permute.xlu1 %1132  ;;  %v612_v54 = vlaneseq }
 0x1ce   : > { %v1116_v62 = vsel %vm540_vm8, %v1111_v43, %v1114_v60 }
 0x1cf   : > { %700 = vst.msk [vmem:[#allocation4 + $0x28] sm:$0x3f] %vm467_vm5, %v698_v58  ;;  %705 = vst.msk [vmem:[#allocation4 + $0x30] sm:$0x3f] %vm467_vm5, %v703_v59  ;;  %v1117_v1 = vadd.f32 %v1116_v62, %v1107_v63  ;;  %v613_v62 = vshrl.u32 %v612_v54, 7 }
 0x1d0   : > { %v1526_v63 = vld [vmem:[%s2480_s3 + $0x1] sm:$0x1] }
 0x1d1   : > { %v1124_v3 = vpop.permute.xlu0 %1123  ;;  %v1142_v15 = vpop.permute.xlu1 %1141 }
 0x1d2   : > { %v1126_v5 = vsel %vm551_vm9, %v1121_v48, %v1124_v3  ;;  %v2009_v6 = vld [vmem:[#allocation3 + $0x8] sm:$0x3f] }
 0x1d3   : > { %v1127_v8 = vadd.f32 %v1126_v5, %v1117_v1  ;;  %v1199_v9 = vmul.f32 0.25, %v2009_v6  ;;  %v2014_v10 = vmul.f32 0.75, %v2009_v6  ;;  %1177 = vrot.lane.b32.xlu0 %v2009_v6, %s1737_s26  ;;  %1174 = vrot.lane.b32.xlu1 %v2009_v6, %s1738_s27  ;;  %v2101_v1 = vsub.s32 0, %v613_v62 }
 0x1d5   : > { %v1128_v14 = vadd.f32 %v1127_v8, %v1904_v2  ;;  %v1200_v16 = vadd.f32 %v1199_v9, %v2006_v4  ;;  %v1204_v18 = vadd.f32 %v2014_v10, %v1202_v7  ;;  %v1136_v19 = vpop.permute.xlu0 %1135  ;;  %v1152_v36 = vpop.permute.xlu1 %1151  ;;  %v2110_v5 = vrot.slane %v1526_v63, %v2101_v1 }
 0x1d6   : > { %v2028_v20 = vld [vmem:[#allocation4 + $0x28] sm:$0x3f]  ;;  %v2030_v21 = vld [vmem:[#allocation4 + $0x30] sm:$0x3f]  ;;  %v1138_v39 = vsel %vm458_vm4, %v1133_v0, %v1136_v19  ;;  %v642_v0 = vsub.f32 1.0, %v1526_v63 }
 0x1d7   : > { %1129 = vst.msk [vmem:[#allocation3 + $0x10] sm:$0x3f] %vm467_vm5, %v1128_v14  ;;  %1201 = vst.msk [vmem:[#allocation4 + $0x8] sm:$0x3f] %vm467_vm5, %v1200_v16  ;;  %v2037_v24 = vmul.f32 0.75, %v2028_v20  ;;  %v2041_v26 = vmul.f32 0.75, %v2030_v21 }
 0x1d8   : > { %1205 = vst.msk [vmem:[#allocation4 + $0x10] sm:$0x3f] %vm467_vm5, %v1204_v18  ;;  %v808_v27 = vmul.f32 0.25, %v2028_v20  ;;  %v850_v30 = vmul.f32 0.25, %v2030_v21  ;;  %v2115_v8 = vrot.slane %v642_v0, %v2101_v1 }
 0x1d9   : > { %v1145_v31 = vpop.permute.xlu0 %1144  ;;  %v814_v32 = vadd.f32 %v2037_v24, %v812_v22  ;;  %v856_v33 = vadd.f32 %v2041_v26, %v854_v25  ;;  %v1162_v42 = vpop.permute.xlu1 %1161 }
 0x1da   : > { %v809_v34 = vadd.f32 %v808_v27, %v2049_v23  ;;  %v851_v35 = vadd.f32 %v850_v30, %v2053_v29  ;;  %v1147_v37 = vsel %vm507_vm7, %v1142_v15, %v1145_v31  ;;  %v641_v31 = vmul.f32 %v2110_v5, %v1936_v53 }
 0x1db   : > { %1548 = vst.msk [vmem:[%s2046_s30 + $0x48] sm:$0x3f] %vm764_vm11, %v814_v32  ;;  %1552 = vst.msk [vmem:[%s2046_s30 + $0x50] sm:$0x3f] %vm764_vm11, %v856_v33  ;;  %v1148_v41 = vadd.f32 %v1147_v37, %v1138_v39 }
 0x1dc   : > { %1547 = vst.msk [vmem:[%s2046_s30 + $0x28] sm:$0x3f] %vm764_vm11, %v809_v34  ;;  %1551 = vst.msk [vmem:[%s2046_s30 + $0x30] sm:$0x3f] %vm764_vm11, %v851_v35 }
 0x1dd   : > { %v1155_v38 = vpop.permute.xlu0 %1154 }
 0x1de   : > { %v1157_v40 = vsel %vm551_vm9, %v1152_v36, %v1155_v38  ;;  %v2074_v48 = vld [vmem:[#allocation3 + $0x10] sm:$0x3f]  ;;  %v2107_v3 = vld [vmem:[#allocation4 + $0x8] sm:$0x3f] }
 0x1df   : > { %v1158_v43 = vadd.f32 %v1157_v40, %v1148_v41  ;;  %v1240_v59 = vmul.f32 0.25, %v2074_v48  ;;  %v2112_v7 = vld [vmem:[#allocation4 + $0x10] sm:$0x3f]  ;;  %v1322_v9 = vmul.f32 0.25, %v2107_v3  ;;  %v2123_v16 = vmul.f32 0.75, %v2107_v3 }
 0x1e0   : > { %v2135_v30 = vmul.f32 0.75, %v2112_v7  ;;  %v1364_v33 = vmul.f32 0.25, %v2112_v7 }
 0x1e1   : > { %v1165_v44 = vpop.permute.xlu0 %1164 }
 0x1e2   : > { %v1167_v45 = vsel %vm594_vm10, %v1162_v42, %v1165_v44  ;;  %v261_v42 = vld [vmem:[%s2480_s3] sm:$0x1] }
 0x1e3   : > { %v1168_v46 = vadd.f32 %v1167_v45, %v1158_v43  ;;  %v618_v43 = vsub.f32 1.0, %v261_v42 }
 0x1e5   : > { %v1169_v47 = vadd.f32 %v1168_v46, %v1904_v2  ;;  %v2087_v2 = vmul.f32 0.75, %v2074_v48  ;;  %v2182_v44 = vrot.slane %v618_v43, %v2101_v1 }
 0x1e7   : > { %1170 = vst.msk [vmem:[#allocation3 + $0x18] sm:$0x3f] %vm467_vm5, %v1169_v47 }
 0x1ee   : > { %v2076_v52 = vld [vmem:[#allocation3 + $0x18] sm:$0x3f] }
 0x1ef   : > { %1215 = vrot.lane.b32.xlu0 %v2076_v52, %s1737_s26  ;;  %v1237_v56 = vmul.f32 0.25, %v2076_v52  ;;  %v2082_v58 = vmul.f32 0.75, %v2076_v52  ;;  %1212 = vrot.lane.b32.xlu1 %v2076_v52, %s1738_s27 }
 0x1f1   : > { %v1238_v60 = vadd.f32 %v1237_v56, %v2087_v2  ;;  %v1242_v61 = vadd.f32 %v2082_v58, %v1240_v59 }
 0x1f3   : > { %1226 = vrot.lane.b32.xlu0 %v2074_v48, %s1723_s8  ;;  %1223 = vrot.lane.b32.xlu1 %v2074_v48, %s1724_s9  ;;  %1239 = vst.msk [vmem:[#allocation4 + $0x28] sm:$0x3f] %vm467_vm5, %v1238_v60  ;;  %1243 = vst.msk [vmem:[#allocation4 + $0x30] sm:$0x3f] %vm467_vm5, %v1242_v61  ;;  %s1740_s8 = smov 38  }
 0x1f7   : > { %796 = vrot.lane.b32.xlu0 %v2020_v11, %s1726_s11  ;;  %793 = vrot.lane.b32.xlu1 %v2020_v11, %s1725_s10 }
 0x1fa   : > { %v2118_v14 = vld [vmem:[#allocation4 + $0x28] sm:$0x3f]  ;;  %v2120_v15 = vld [vmem:[#allocation4 + $0x30] sm:$0x3f] }
 0x1fb   : > { %v632_v18 = vpop.permute.xlu0 %631  ;;  %838 = vrot.lane.b32.xlu0 %v2022_v13, %s1726_s11  ;;  %835 = vrot.lane.b32.xlu1 %v2022_v13, %s1725_s10  ;;  %v629_v19 = vpop.permute.xlu1 %628  ;;  %v1318_v22 = vmul.f32 0.25, %v2118_v14  ;;  %v1360_v25 = vmul.f32 0.25, %v2120_v15  ;;  %v2132_v27 = vmul.f32 0.75, %v2118_v14  ;;  %v2142_v34 = vmul.f32 0.75, %v2120_v15 }
 0x1fc   : > { %v634_v32 = vsel %vm436_vm2, %v629_v19, %v632_v18 }
 0x1fd   : > { %v649_v35 = vmul.f32 %v2115_v8, %v634_v32  ;;  %v1324_v36 = vadd.f32 %v2132_v27, %v1322_v9  ;;  %v1319_v37 = vadd.f32 %v1318_v22, %v2123_v16  ;;  %v1361_v38 = vadd.f32 %v1360_v25, %v2135_v30 }
 0x1fe   : > { %v1366_v39 = vadd.f32 %v2142_v34, %v1364_v33  ;;  %v1192_v9 = vmul.f32 %v2009_v6, %v2110_v5  ;;  %v689_v6 = vmul.f32 %v1983_v49, %v2110_v5 }
 0x1ff   : > { %v650_v53 = vadd.f32 %v649_v35, %v641_v31  ;;  %785 = vrot.lane.b32.xlu0 %v2028_v20, %s1739_s7  ;;  %782 = vrot.lane.b32.xlu1 %v2028_v20, %s1740_s8  ;;  %1576 = vst.msk [vmem:[%s2046_s30 + $0xc8] sm:$0x3f] %vm764_vm11, %v1324_v36  ;;  %1575 = vst.msk [vmem:[%s2046_s30 + $0xa8] sm:$0x3f] %vm764_vm11, %v1319_v37 }
 0x200   : > { %1579 = vst.msk [vmem:[%s2046_s30 + $0xb0] sm:$0x3f] %vm764_vm11, %v1361_v38  ;;  %1580 = vst.msk [vmem:[%s2046_s30 + $0xd0] sm:$0x3f] %vm764_vm11, %v1366_v39 }
 0x201   : > { %v664_v40 = vmul.f32 0.25, %v650_v53 }
 0x203   : > { %v665_v41 = vadd.f32 %v664_v40, %v1941_v57  ;;  %827 = vrot.lane.b32.xlu0 %v2030_v21, %s1739_s7  ;;  %824 = vrot.lane.b32.xlu1 %v2030_v21, %s1740_s8  ;;  %v2179_v57 = vrot.slane %v261_v42, %v2101_v1 }
 0x205   : > { %667 = vst.msk [vmem:[#allocation4 + $0x18] sm:$0x3f] %vm467_vm5, %v665_v41  ;;  %v617_v54 = vmul.f32 %v2179_v57, %v1919_v28 }
 0x207   : > { %1306 = vrot.lane.b32.xlu0 %v2107_v3, %s1726_s11  ;;  %1303 = vrot.lane.b32.xlu1 %v2107_v3, %s1725_s10 }
 0x20b   : > { %1348 = vrot.lane.b32.xlu0 %v2112_v7, %s1726_s11  ;;  %1345 = vrot.lane.b32.xlu1 %v2112_v7, %s1725_s10 }
 0x20c   : > { %v2197_v62 = vld [vmem:[#allocation4 + $0x18] sm:$0x3f] }
 0x20d   : > { %v607_v45 = vpop.permute.xlu0 %606  ;;  %v604_v46 = vpop.permute.xlu1 %603  ;;  %v896_v39 = vmul.f32 0.25, %v2197_v62  ;;  %v2233_v53 = vmul.f32 0.75, %v2197_v62 }
 0x20e   : > { %v610_v47 = vsel %vm609_vm12, %v604_v46, %v607_v45  ;;  %v678_v46 = vmul.f32 %v1966_v17, %v2179_v57 }
 0x20f   : > { %v625_v56 = vmul.f32 %v2182_v44, %v610_v47  ;;  %1295 = vrot.lane.b32.xlu0 %v2118_v14, %s1739_s7  ;;  %1292 = vrot.lane.b32.xlu1 %v2118_v14, %s1740_s8 }
 0x211   : > { %v626_v59 = vadd.f32 %v625_v56, %v617_v54 }
 0x213   : > { %v651_v60 = vmul.f32 0.25, %v626_v59  ;;  %1337 = vrot.lane.b32.xlu0 %v2120_v15, %s1739_s7  ;;  %1334 = vrot.lane.b32.xlu1 %v2120_v15, %s1740_s8 }
 0x215   : > { %v653_v61 = vadd.f32 %v1933_v51, %v651_v60 }
 0x217   : > { %654 = vst.msk [vmem:[#allocation4] sm:$0x3f] %vm467_vm5, %v653_v61  ;;  %880 = vrot.lane.b32.xlu0 %v2197_v62, %s1726_s11  ;;  %877 = vrot.lane.b32.xlu1 %v2197_v62, %s1725_s10 }
 0x219   : > { %v1189_v28 = vpop.permute.xlu0 %1188  ;;  %v1186_v63 = vpop.permute.xlu1 %1185 }
 0x21a   : > { %v1191_v0 = vsel %vm436_vm2, %v1186_v63, %v1189_v28  ;;  %v1181_v63 = vmul.f32 %v1959_v12, %v2179_v57 }
 0x21b   : > { %v1193_v18 = vmul.f32 %v1191_v0, %v2115_v8 }
 0x21d   : > { %v1194_v51 = vadd.f32 %v1193_v18, %v1192_v9 }
 0x21e   : > { %v2208_v19 = vld [vmem:[#allocation4] sm:$0x3f] }
 0x21f   : > { %v1206_v22 = vmul.f32 0.25, %v1194_v51  ;;  %741 = vrot.lane.b32.xlu0 %v2208_v19, %s1726_s11  ;;  %738 = vrot.lane.b32.xlu1 %v2208_v19, %s1725_s10 }
 0x221   : > { %v1207_v25 = vadd.f32 %v1206_v22, %v2014_v10  ;;  %v686_v31 = vpop.permute.xlu0 %685  ;;  %v683_v32 = vpop.permute.xlu1 %682  ;;  %v2265_v22 = vmul.f32 0.75, %v2208_v19 }
 0x222   : > { %v688_v33 = vsel %vm436_vm2, %v683_v32, %v686_v31 }
 0x223   : > { %1208 = vst.msk [vmem:[#allocation4 + $0x18] sm:$0x3f] %vm467_vm5, %v1207_v25  ;;  %v690_v35 = vmul.f32 %v688_v33, %v2115_v8 }
 0x225   : > { %v691_v36 = vadd.f32 %v690_v35, %v689_v6 }
 0x227   : > { %v706_v37 = vmul.f32 0.25, %v691_v36  ;;  %v1528_v36 = vld [vmem:[%s2480_s3 + $0x3] sm:$0x1] }
 0x229   : > { %v707_v38 = vadd.f32 %v706_v37, %v1992_v55  ;;  %v1219_v37 = vmul.f32 %v2074_v48, %v2179_v57 }
 0x22b   : > { %709 = vst.msk [vmem:[#allocation4 + $0x38] sm:$0x3f] %vm467_vm5, %v707_v38 }
 0x232   : > { %v2222_v10 = vld [vmem:[#allocation4 + $0x38] sm:$0x3f] }
 0x233   : > { %869 = vrot.lane.b32.xlu0 %v2222_v10, %s1739_s7  ;;  %866 = vrot.lane.b32.xlu1 %v2222_v10, %s1740_s8  ;;  %v2230_v49 = vmul.f32 0.75, %v2222_v10  ;;  %v892_v55 = vmul.f32 0.25, %v2222_v10 }
 0x235   : > { %v898_v40 = vadd.f32 %v2230_v49, %v896_v39  ;;  %v893_v41 = vadd.f32 %v892_v55, %v2233_v53  ;;  %v752_v39 = vsub.f32 1.0, %v1528_v36 }
 0x237   : > { %1556 = vst.msk [vmem:[%s2046_s30 + $0x58] sm:$0x3f] %vm764_vm11, %v898_v40  ;;  %1555 = vst.msk [vmem:[%s2046_s30 + $0x38] sm:$0x3f] %vm764_vm11, %v893_v41 }
 0x23d   : > { %v675_v42 = vpop.permute.xlu0 %674  ;;  %v672_v43 = vpop.permute.xlu1 %671 }
 0x23e   : > { %v677_v45 = vsel %vm609_vm12, %v672_v43, %v675_v42  ;;  %v2289_v43 = vrot.slane %v1528_v36, %v2101_v1 }
 0x23f   : > { %v679_v47 = vmul.f32 %v677_v45, %v2182_v44 }
 0x241   : > { %v680_v54 = vadd.f32 %v679_v47, %v678_v46  ;;  %v1230_v46 = vmul.f32 %v2076_v52, %v2110_v5  ;;  %v800_v52 = vmul.f32 %v2028_v20, %v2289_v43 }
 0x243   : > { %v692_v56 = vmul.f32 0.25, %v680_v54  ;;  %v2295_v54 = vrot.slane %v752_v39, %v2101_v1  ;;  %v2332_v39 = vld [vmem:[#allocation4 + $0x18] sm:$0x3f] }
 0x245   : > { %v694_v59 = vadd.f32 %v1986_v50, %v692_v56  ;;  %v1178_v60 = vpop.permute.xlu0 %1177  ;;  %v1175_v61 = vpop.permute.xlu1 %1174  ;;  %v770_v50 = vmul.f32 0.25, %v2208_v19 }
 0x246   : > { %v1180_v28 = vsel %vm609_vm12, %v1175_v61, %v1178_v60  ;;  %v1527_v60 = vld [vmem:[%s2480_s3 + $0x2] sm:$0x1] }
 0x247   : > { %696 = vst.msk [vmem:[#allocation4 + $0x20] sm:$0x3f] %vm467_vm5, %v694_v59  ;;  %v1182_v0 = vmul.f32 %v1180_v28, %v2182_v44 }
 0x249   : > { %v1183_v17 = vadd.f32 %v1182_v0, %v1181_v63 }
 0x24b   : > { %v1195_v9 = vmul.f32 0.25, %v1183_v17  ;;  %v842_v17 = vmul.f32 %v2030_v21, %v2289_v43 }
 0x24d   : > { %v1197_v18 = vadd.f32 %v2006_v4, %v1195_v9 }
 0x24e   : > { %v2253_v51 = vld [vmem:[#allocation4 + $0x20] sm:$0x3f] }
 0x24f   : > { %1198 = vst.msk [vmem:[#allocation4] sm:$0x3f] %vm467_vm5, %v1197_v18  ;;  %716 = vrot.lane.b32.xlu0 %v2253_v51, %s1739_s7  ;;  %713 = vrot.lane.b32.xlu1 %v2253_v51, %s1740_s8  ;;  %v2262_v12 = vmul.f32 0.75, %v2253_v51  ;;  %v766_v4 = vmul.f32 0.25, %v2253_v51  ;;  %v2311_v18 = vrot.slane %v1527_v60, %v2101_v1 }
 0x251   : > { %v772_v25 = vadd.f32 %v2262_v12, %v770_v50  ;;  %v767_v31 = vadd.f32 %v766_v4, %v2265_v22  ;;  %v789_v21 = vmul.f32 %v2020_v11, %v2311_v18 }
 0x253   : > { %1544 = vst.msk [vmem:[%s2046_s30 + $0x40] sm:$0x3f] %vm764_vm11, %v772_v25  ;;  %1543 = vst.msk [vmem:[%s2046_s30 + $0x20] sm:$0x3f] %vm764_vm11, %v767_v31 }
 0x256   : > { %v2274_v32 = vld [vmem:[#allocation4] sm:$0x3f] }
 0x257   : > { %1264 = vrot.lane.b32.xlu0 %v2274_v32, %s1726_s11  ;;  %1261 = vrot.lane.b32.xlu1 %v2274_v32, %s1725_s10 }
 0x261   : > { %v1216_v33 = vpop.permute.xlu0 %1215  ;;  %v1213_v6 = vpop.permute.xlu1 %1212 }
 0x262   : > { %v1218_v35 = vsel %vm609_vm12, %v1213_v6, %v1216_v33 }
 0x263   : > { %v1220_v38 = vmul.f32 %v1218_v35, %v2182_v44 }
 0x265   : > { %v1221_v55 = vadd.f32 %v1220_v38, %v1219_v37  ;;  %v1227_v40 = vpop.permute.xlu0 %1226  ;;  %v1224_v41 = vpop.permute.xlu1 %1223  ;;  %v1280_v38 = vmul.f32 0.25, %v2274_v32 }
 0x266   : > { %v1229_v42 = vsel %vm436_vm2, %v1224_v41, %v1227_v40 }
 0x267   : > { %v1233_v45 = vmul.f32 0.25, %v1221_v55  ;;  %v1231_v47 = vmul.f32 %v1229_v42, %v2115_v8  ;;  %v728_v8 = vsub.f32 1.0, %v1527_v60 }
 0x269   : > { %v1235_v48 = vadd.f32 %v2087_v2, %v1233_v45  ;;  %v1232_v57 = vadd.f32 %v1231_v47, %v1230_v46  ;;  %v797_v44 = vpop.permute.xlu0 %796  ;;  %v794_v56 = vpop.permute.xlu1 %793  ;;  %v831_v46 = vmul.f32 %v2022_v13, %v2311_v18  ;;  %v2354_v13 = vmul.f32 0.75, %v2332_v39 }
 0x26a   : > { %v799_v59 = vsel %vm447_vm3, %v794_v56, %v797_v44 }
 0x26b   : > { %1236 = vst.msk [vmem:[#allocation4 + $0x20] sm:$0x3f] %vm467_vm5, %v1235_v48  ;;  %v1244_v61 = vmul.f32 0.25, %v1232_v57  ;;  %v801_v5 = vmul.f32 %v799_v59, %v2295_v54  ;;  %v1406_v59 = vmul.f32 0.25, %v2332_v39 }
 0x26d   : > { %v1245_v2 = vadd.f32 %v1244_v61, %v2082_v58  ;;  %v802_v28 = vadd.f32 %v801_v5, %v800_v52  ;;  %v839_v63 = vpop.permute.xlu0 %838  ;;  %v836_v0 = vpop.permute.xlu1 %835  ;;  %v2316_v58 = vrot.slane %v728_v8, %v2101_v1 }
 0x26e   : > { %v841_v9 = vsel %vm447_vm3, %v836_v0, %v839_v63 }
 0x26f   : > { %1246 = vst.msk [vmem:[#allocation4 + $0x38] sm:$0x3f] %vm467_vm5, %v1245_v2  ;;  %v817_v20 = vmul.f32 0.25, %v802_v28  ;;  %v843_v50 = vmul.f32 %v841_v9, %v2295_v54 }
 0x271   : > { %v818_v4 = vadd.f32 %v817_v20, %v2037_v24  ;;  %v844_v25 = vadd.f32 %v843_v50, %v842_v17  ;;  %v786_v31 = vpop.permute.xlu0 %785  ;;  %v783_v33 = vpop.permute.xlu1 %782  ;;  %v2329_v24 = vmul.f32 0.75, %v2274_v32  ;;  %v1310_v17 = vmul.f32 %v2118_v14, %v2289_v43 }
 0x272   : > { %v788_v6 = vsel %vm719_vm13, %v783_v33, %v786_v31  ;;  %v2322_v35 = vld [vmem:[#allocation4 + $0x20] sm:$0x3f]  ;;  %v1352_v31 = vmul.f32 %v2120_v15, %v2289_v43  ;;  %v1299_v15 = vmul.f32 %v2107_v3, %v2311_v18 }
 0x273   : > { %1549 = vst.msk [vmem:[%s2046_s30 + $0x68] sm:$0x3f] %vm764_vm11, %v818_v4  ;;  %v859_v36 = vmul.f32 0.25, %v844_v25  ;;  %v790_v37 = vmul.f32 %v788_v6, %v2316_v58  ;;  %v1276_v1 = vmul.f32 0.25, %v2322_v35  ;;  %v2335_v11 = vmul.f32 0.75, %v2322_v35 }
 0x275   : > { %v860_v55 = vadd.f32 %v859_v36, %v2041_v26  ;;  %v791_v40 = vadd.f32 %v790_v37, %v789_v21  ;;  %v828_v41 = vpop.permute.xlu0 %827  ;;  %v825_v42 = vpop.permute.xlu1 %824  ;;  %v1277_v45 = vadd.f32 %v1276_v1, %v2329_v24  ;;  %v1282_v57 = vadd.f32 %v2335_v11, %v1280_v38 }
 0x276   : > { %v830_v47 = vsel %vm719_vm13, %v825_v42, %v828_v41  ;;  %v2342_v48 = vld [vmem:[#allocation4 + $0x38] sm:$0x3f] }
 0x277   : > { %1553 = vst.msk [vmem:[%s2046_s30 + $0x70] sm:$0x3f] %vm764_vm11, %v860_v55  ;;  %v803_v44 = vmul.f32 0.25, %v791_v40  ;;  %v832_v26 = vmul.f32 %v830_v47, %v2316_v58  ;;  %1379 = vrot.lane.b32.xlu0 %v2342_v48, %s1739_s7  ;;  %v1402_v56 = vmul.f32 0.25, %v2342_v48  ;;  %1376 = vrot.lane.b32.xlu1 %v2342_v48, %s1740_s8  ;;  %1571 = vst.msk [vmem:[%s2046_s30 + $0xa0] sm:$0x3f] %vm764_vm11, %v1277_v45 }
 0x278   : > { %1572 = vst.msk [vmem:[%s2046_s30 + $0xc0] sm:$0x3f] %vm764_vm11, %v1282_v57  ;;  %v2362_v60 = vmul.f32 0.75, %v2342_v48 }
 0x279   : > { %v805_v61 = vadd.f32 %v2049_v23, %v803_v44  ;;  %v833_v52 = vadd.f32 %v832_v26, %v831_v46  ;;  %v1307_v5 = vpop.permute.xlu0 %1306  ;;  %v1304_v8 = vpop.permute.xlu1 %1303  ;;  %v1403_v2 = vadd.f32 %v1402_v56, %v2354_v13  ;;  %v1341_v46 = vmul.f32 %v2112_v7, %v2311_v18 }
 0x27a   : > { %v1309_v28 = vsel %vm447_vm3, %v1304_v8, %v1307_v5  ;;  %v1408_v63 = vadd.f32 %v2362_v60, %v1406_v59  ;;  %v884_v59 = vmul.f32 %v2222_v10, %v2289_v43  ;;  %v751_v10 = vmul.f32 %v2289_v43, %v2253_v51 }
 0x27b   : > { %1546 = vst.msk [vmem:[%s2046_s30 + $0x8] sm:$0x3f] %vm764_vm11, %v805_v61  ;;  %v845_v0 = vmul.f32 0.25, %v833_v52  ;;  %v1311_v9 = vmul.f32 %v1309_v28, %v2295_v54  ;;  %1253 = vrot.lane.b32.xlu0 %v2322_v35, %s1739_s7  ;;  %1250 = vrot.lane.b32.xlu1 %v2322_v35, %s1740_s8  ;;  %1583 = vst.msk [vmem:[%s2046_s30 + $0xb8] sm:$0x3f] %vm764_vm11, %v1403_v2 }
 0x27c   : > { %1584 = vst.msk [vmem:[%s2046_s30 + $0xd8] sm:$0x3f] %vm764_vm11, %v1408_v63 }
 0x27d   : > { %v847_v23 = vadd.f32 %v2053_v29, %v845_v0  ;;  %v1312_v20 = vadd.f32 %v1311_v9, %v1310_v17  ;;  %v1349_v50 = vpop.permute.xlu0 %1348  ;;  %v1346_v4 = vpop.permute.xlu1 %1345 }
 0x27e   : > { %v1351_v14 = vsel %vm447_vm3, %v1346_v4, %v1349_v50 }
 0x27f   : > { %1550 = vst.msk [vmem:[%s2046_s30 + $0x10] sm:$0x3f] %vm764_vm11, %v847_v23  ;;  %v1327_v25 = vmul.f32 0.25, %v1312_v20  ;;  %v1353_v33 = vmul.f32 %v1351_v14, %v2295_v54  ;;  %1390 = vrot.lane.b32.xlu0 %v2332_v39, %s1726_s11  ;;  %1387 = vrot.lane.b32.xlu1 %v2332_v39, %s1725_s10  ;;  %v873_v20 = vmul.f32 %v2197_v62, %v2311_v18 }
 0x281   : > { %v1328_v29 = vadd.f32 %v1327_v25, %v2132_v27  ;;  %v1354_v21 = vadd.f32 %v1353_v33, %v1352_v31  ;;  %v1296_v6 = vpop.permute.xlu0 %1295  ;;  %v1293_v36 = vpop.permute.xlu1 %1292  ;;  %v727_v33 = vmul.f32 %v2311_v18, %v2208_v19 }
 0x282   : > { %v1298_v37 = vsel %vm719_vm13, %v1293_v36, %v1296_v6 }
 0x283   : > { %1577 = vst.msk [vmem:[%s2046_s30 + $0xe8] sm:$0x3f] %vm764_vm11, %v1328_v29  ;;  %v1369_v1 = vmul.f32 0.25, %v1354_v21  ;;  %v1300_v38 = vmul.f32 %v1298_v37, %v2316_v58 }
 0x285   : > { %v1370_v55 = vadd.f32 %v1369_v1, %v2142_v34  ;;  %v1301_v40 = vadd.f32 %v1300_v38, %v1299_v15  ;;  %v1338_v41 = vpop.permute.xlu0 %1337  ;;  %v1335_v42 = vpop.permute.xlu1 %1334  ;;  %v1268_v1 = vmul.f32 %v2322_v35, %v2289_v43 }
 0x286   : > { %v1340_v27 = vsel %vm719_vm13, %v1335_v42, %v1338_v41  ;;  %v1383_v42 = vmul.f32 %v2332_v39, %v2311_v18 }
 0x287   : > { %1581 = vst.msk [vmem:[%s2046_s30 + $0xf0] sm:$0x3f] %vm764_vm11, %v1370_v55  ;;  %v1313_v45 = vmul.f32 0.25, %v1301_v40  ;;  %v1342_v47 = vmul.f32 %v1340_v27, %v2316_v58 }
 0x289   : > { %v1315_v3 = vadd.f32 %v2123_v16, %v1313_v45  ;;  %v1343_v57 = vadd.f32 %v1342_v47, %v1341_v46  ;;  %v881_v44 = vpop.permute.xlu0 %880  ;;  %v878_v34 = vpop.permute.xlu1 %877 }
 0x28a   : > { %v883_v26 = vsel %vm447_vm3, %v878_v34, %v881_v44 }
 0x28b   : > { %1574 = vst.msk [vmem:[%s2046_s30 + $0x88] sm:$0x3f] %vm764_vm11, %v1315_v3  ;;  %v1355_v56 = vmul.f32 0.25, %v1343_v57  ;;  %v885_v61 = vmul.f32 %v883_v26, %v2295_v54 }
 0x28d   : > { %v1357_v7 = vadd.f32 %v2135_v30, %v1355_v56  ;;  %v886_v52 = vadd.f32 %v885_v61, %v884_v59  ;;  %v1394_v61 = vmul.f32 %v2342_v48, %v2289_v43 }
 0x28f   : > { %1578 = vst.msk [vmem:[%s2046_s30 + $0x90] sm:$0x3f] %vm764_vm11, %v1357_v7  ;;  %v901_v16 = vmul.f32 0.25, %v886_v52 }
 0x291   : > { %v902_v5 = vadd.f32 %v901_v16, %v2230_v49  ;;  %v742_v8 = vpop.permute.xlu0 %741  ;;  %v739_v2 = vpop.permute.xlu1 %738 }
 0x292   : > { %v744_v28 = vsel %vm447_vm3, %v739_v2, %v742_v8 }
 0x293   : > { %1557 = vst.msk [vmem:[%s2046_s30 + $0x78] sm:$0x3f] %vm764_vm11, %v902_v5  ;;  %v759_v63 = vmul.f32 %v2295_v54, %v744_v28 }
 0x295   : > { %v760_v0 = vadd.f32 %v759_v63, %v751_v10 }
 0x297   : > { %v775_v30 = vmul.f32 0.25, %v760_v0 }
 0x299   : > { %v776_v17 = vadd.f32 %v775_v30, %v2262_v12 }
 0x29b   : > { %1545 = vst.msk [vmem:[%s2046_s30 + $0x60] sm:$0x3f] %vm764_vm11, %v776_v17 }
 0x2a5   : > { %v870_v9 = vpop.permute.xlu0 %869  ;;  %v867_v49 = vpop.permute.xlu1 %866 }
 0x2a6   : > { %v872_v23 = vsel %vm719_vm13, %v867_v49, %v870_v9 }
 0x2a7   : > { %v874_v50 = vmul.f32 %v872_v23, %v2316_v58 }
 0x2a9   : > { %v875_v4 = vadd.f32 %v874_v50, %v873_v20 }
 0x2ab   : > { %v887_v51 = vmul.f32 0.25, %v875_v4 }
 0x2ad   : > { %v889_v14 = vadd.f32 %v2233_v53, %v887_v51 }
 0x2af   : > { %1554 = vst.msk [vmem:[%s2046_s30 + $0x18] sm:$0x3f] %vm764_vm11, %v889_v14 }
 0x2c1   : > { %v717_v25 = vpop.permute.xlu0 %716  ;;  %v714_v12 = vpop.permute.xlu1 %713 }
 0x2c2   : > { %v720_v31 = vsel %vm719_vm13, %v714_v12, %v717_v25 }
 0x2c3   : > { %v735_v29 = vmul.f32 %v2316_v58, %v720_v31 }
 0x2c5   : > { %v736_v62 = vadd.f32 %v735_v29, %v727_v33 }
 0x2c7   : > { %v761_v21 = vmul.f32 0.25, %v736_v62 }
 0x2c9   : > { %v763_v6 = vadd.f32 %v2265_v22, %v761_v21  ;;  %v1265_v36 = vpop.permute.xlu0 %1264  ;;  %v1262_v37 = vpop.permute.xlu1 %1261 }
 0x2ca   : > { %v1267_v53 = vsel %vm447_vm3, %v1262_v37, %v1265_v36 }
 0x2cb   : > { %765 = vst.msk [vmem:[%s2046_s30] sm:$0x3f] %vm764_vm11, %v763_v6  ;;  %v1269_v15 = vmul.f32 %v1267_v53, %v2295_v54 }
 0x2cd   : > { %v1270_v38 = vadd.f32 %v1269_v15, %v1268_v1 }
 0x2cf   : > { %v1285_v55 = vmul.f32 0.25, %v1270_v38 }
 0x2d1   : > { %v1286_v19 = vadd.f32 %v1285_v55, %v2335_v11  ;;  %v1257_v11 = vmul.f32 %v2274_v32, %v2311_v18 }
 0x2d3   : > { %1573 = vst.msk [vmem:[%s2046_s30 + $0xe0] sm:$0x3f] %vm764_vm11, %v1286_v19 }
 0x2e9   : > { %v1380_v40 = vpop.permute.xlu0 %1379  ;;  %v1377_v41 = vpop.permute.xlu1 %1376 }
 0x2ea   : > { %v1382_v22 = vsel %vm719_vm13, %v1377_v41, %v1380_v40 }
 0x2eb   : > { %v1384_v27 = vmul.f32 %v1382_v22, %v2316_v58 }
 0x2ed   : > { %v1385_v45 = vadd.f32 %v1384_v27, %v1383_v42  ;;  %v1254_v35 = vpop.permute.xlu0 %1253  ;;  %v1251_v46 = vpop.permute.xlu1 %1250 }
 0x2ee   : > { %v1256_v47 = vsel %vm719_vm13, %v1251_v46, %v1254_v35 }
 0x2ef   : > { %v1397_v3 = vmul.f32 0.25, %v1385_v45  ;;  %v1258_v57 = vmul.f32 %v1256_v47, %v2316_v58 }
 0x2f1   : > { %v1399_v44 = vadd.f32 %v2354_v13, %v1397_v3  ;;  %v1259_v34 = vadd.f32 %v1258_v57, %v1257_v11  ;;  %v1391_v26 = vpop.permute.xlu0 %1390  ;;  %v1388_v39 = vpop.permute.xlu1 %1387 }
 0x2f2   : > { %v1393_v56 = vsel %vm447_vm3, %v1388_v39, %v1391_v26 }
 0x2f3   : > { %1582 = vst.msk [vmem:[%s2046_s30 + $0x98] sm:$0x3f] %vm764_vm11, %v1399_v44  ;;  %v1271_v59 = vmul.f32 0.25, %v1259_v34  ;;  %v1395_v7 = vmul.f32 %v1393_v56, %v2295_v54 }
 0x2f5   : > { %v1273_v32 = vadd.f32 %v2329_v24, %v1271_v59  ;;  %v1396_v18 = vadd.f32 %v1395_v7, %v1394_v61 }
 0x2f7   : > { %1570 = vst.msk [vmem:[%s2046_s30 + $0x80] sm:$0x3f] %vm764_vm11, %v1273_v32  ;;  %v1411_v58 = vmul.f32 0.25, %v1396_v18 }
 0x2f9   : > { %v1412_v13 = vadd.f32 %v1411_v58, %v2362_v60 }
 0x2fb   : > { %1585 = vst.msk [vmem:[%s2046_s30 + $0xf8] sm:$0x3f] %vm764_vm11, %v1412_v13 }
 0x2fc PF: > { %s14_s17 = sadd.s32 1, %s1718_s17   ;;  %s2482_s15 = smov %s1714_s16 }
 0x2fd   : > { %p11_p5 = scmp.ge.s32.totalorder %s14_s17, 17   ;;  %s2483_s16 = smov %s2485_s18 }
 0x2ff   :  { %13 = sbr.rel (!%p11_p5) target bundleno = 2 (0x2), region = 113 }

</bundles_post_ra>
